<compile_context>
chip_gen: v7x
topology: tpu7x:2x2x1
jax: 0.10.0
libtpu: 0.0.40
codegen_flags: <defaults>
</compile_context>

<pallas_src>
import functools

import jax
import jax.numpy as jnp
from jax.experimental import pallas as pl
from jax.experimental.pallas import tpu as pltpu


def _convlstm_cell_kernel(xh_ref, w_ref, b_ref, wci_ref, wcf_ref, wco_ref,
                          c_prev_ref, h_out_ref, c_out_ref, *, K, pad,
                          activation):
    """One grid step == one batch element: im2col conv matmul + fused gates."""
    Hp, Wp, Cc = xh_ref.shape
    H, W = Hp - 2 * pad, Wp - 2 * pad
    HW = H * W
    Cout = c_prev_ref.shape[-1]

    if activation == "tanh":
        act = jnp.tanh
    else:  # "relu"
        act = lambda v: jnp.maximum(v, 0.0)

    # --- conv(concat(X, H_prev)) as ONE deep MXU matmul -------------------
    # im2col: concatenate the K*K shifted (H, W, Cc) windows of the padded
    # input along the contraction axis -> (H*W, K*K*Cc), then a single bf16
    # matmul with f32 accumulation against the (K*K*Cc, 4*Cout) weight.
    xh = xh_ref[...]                                       # (Hp, Wp, Cc) bf16
    cols = [xh[kh:kh + H, kw:kw + W, :].reshape(HW, Cc)
            for kh in range(K) for kw in range(K)]
    col = jnp.concatenate(cols, axis=-1)                   # (HW, K*K*Cc)

    gates = jnp.dot(col, w_ref[...],
                    preferred_element_type=jnp.float32)    # (HW, 4*Cout) f32
    gates = gates + b_ref[...]                             # bias broadcast

    i_conv = gates[:, 0 * Cout:1 * Cout]
    f_conv = gates[:, 1 * Cout:2 * Cout]
    g_conv = gates[:, 2 * Cout:3 * Cout]
    o_conv = gates[:, 3 * Cout:4 * Cout]

    # --- gate math in f32 on the VPU / EUP --------------------------------
    c_prev = c_prev_ref[...]                               # (HW, Cout) f32
    i_gate = jax.nn.sigmoid(i_conv + wci_ref[...] * c_prev)
    f_gate = jax.nn.sigmoid(f_conv + wcf_ref[...] * c_prev)
    c_new = f_gate * c_prev + i_gate * act(g_conv)
    o_gate = jax.nn.sigmoid(o_conv + wco_ref[...] * c_new)
    h_new = o_gate * act(c_new)

    h_out_ref[...] = h_new.astype(h_out_ref.dtype)
    c_out_ref[...] = c_new.astype(c_out_ref.dtype)


def convlstm_cell_forward(X, H_prev, C_prev, params, *, kernel_size, padding,
                          activation="tanh"):
    """Matches ConvLSTMCell.forward.

    X: (B, Cin, H, W); H_prev, C_prev: (B, Cout, H, W).
    Returns (H, C), each (B, Cout, H, W).
    """
    B, Cin, H, W = X.shape
    Cout = H_prev.shape[1]
    K, p = kernel_size, padding
    assert H + 2 * p - K + 1 == H, "module semantics assume a 'same' conv"

    Cc = Cin + Cout
    Hp, Wp = H + 2 * p, W + 2 * p
    HW = H * W

    # ---- layout plumbing (tiny one-off XLA ops) ---------------------------
    xh = jnp.concatenate([X, H_prev.astype(X.dtype)], axis=1)   # (B, Cc, H, W)
    xh = jnp.transpose(xh, (0, 2, 3, 1))                        # (B, H, W, Cc)
    xh = jnp.pad(xh, ((0, 0), (p, p), (p, p), (0, 0)))          # zero padding
    xh = xh.astype(jnp.bfloat16)

    # conv weight (4Cout, Cc, K, K) -> im2col order (kh-major, kw, c-minor).
    w_col = jnp.transpose(params["conv_w"], (2, 3, 1, 0)).reshape(
        K * K * Cc, 4 * Cout).astype(jnp.bfloat16)
    bias = params["conv_b"].reshape(1, 4 * Cout).astype(jnp.float32)

    # peephole weights in the kernel's (H*W, Cout) layout.
    wci = jnp.transpose(params["W_ci"], (1, 2, 0)).reshape(HW, Cout)
    wcf = jnp.transpose(params["W_cf"], (1, 2, 0)).reshape(HW, Cout)
    wco = jnp.transpose(params["W_co"], (1, 2, 0)).reshape(HW, Cout)

    c_prev = jnp.transpose(C_prev, (0, 2, 3, 1)).reshape(
        B, HW, Cout).astype(jnp.float32)

    kernel = functools.partial(_convlstm_cell_kernel, K=K, pad=p,
                               activation=activation)

    grid_spec = pltpu.PrefetchScalarGridSpec(
        num_scalar_prefetch=0,
        grid=(B,),
        in_specs=[
            # per-batch padded concat input
            pl.BlockSpec((pl.Squeezed(), Hp, Wp, Cc), lambda b: (b, 0, 0, 0)),
            # grid-invariant operands (block index constant -> fetched once)
            pl.BlockSpec((K * K * Cc, 4 * Cout), lambda b: (0, 0)),
            pl.BlockSpec((1, 4 * Cout), lambda b: (0, 0)),
            pl.BlockSpec((HW, Cout), lambda b: (0, 0)),
            pl.BlockSpec((HW, Cout), lambda b: (0, 0)),
            pl.BlockSpec((HW, Cout), lambda b: (0, 0)),
            # per-batch previous cell state
            pl.BlockSpec((pl.Squeezed(), HW, Cout), lambda b: (b, 0, 0)),
        ],
        out_specs=[
            pl.BlockSpec((pl.Squeezed(), HW, Cout), lambda b: (b, 0, 0)),
            pl.BlockSpec((pl.Squeezed(), HW, Cout), lambda b: (b, 0, 0)),
        ],
    )

    h_flat, c_flat = pl.pallas_call(
        kernel,
        out_shape=(jax.ShapeDtypeStruct((B, HW, Cout), X.dtype),
                   jax.ShapeDtypeStruct((B, HW, Cout), jnp.float32)),
        grid_spec=grid_spec,
        compiler_params=pltpu.CompilerParams(
            # batch elements are independent -> megacore can split them
            dimension_semantics=("parallel",)),
    )(xh, w_col, bias, wci, wcf, wco, c_prev)

    h_out = jnp.transpose(h_flat.reshape(B, H, W, Cout), (0, 3, 1, 2))
    c_out = jnp.transpose(c_flat.reshape(B, H, W, Cout), (0, 3, 1, 2))
    return h_out, c_out


def convlstm_cell_reference(X, H_prev, C_prev, params, *, kernel_size, padding,
                            activation="tanh"):
    """Pure-JAX replica of the PyTorch ConvLSTMCell.forward for validation."""
    del kernel_size  # implied by the weight shape
    act = jnp.tanh if activation == "tanh" else (lambda v: jnp.maximum(v, 0.0))
    inp = jnp.concatenate([X, H_prev], axis=1)
    conv = jax.lax.conv_general_dilated(
        inp, params["conv_w"], (1, 1),
        [(padding, padding), (padding, padding)],
        dimension_numbers=("NCHW", "OIHW", "NCHW"))
    conv = conv + params["conv_b"][None, :, None, None]
    i_c, f_c, g_c, o_c = jnp.split(conv, 4, axis=1)
    i_g = jax.nn.sigmoid(i_c + params["W_ci"][None] * C_prev)
    f_g = jax.nn.sigmoid(f_c + params["W_cf"][None] * C_prev)
    C = f_g * C_prev + i_g * act(g_c)
    o_g = jax.nn.sigmoid(o_c + params["W_co"][None] * C)
    H = o_g * act(C)
    return H, C


def init_convlstm_params(key, in_channels, out_channels, kernel_size,
                         frame_size):
    """Deterministic synthetic parameters matching the PyTorch module shapes."""
    K = kernel_size
    Cin, Cout = in_channels, out_channels
    fan_in = (Cin + Cout) * K * K
    bound = 1.0 / (fan_in ** 0.5)
    k1, k2, k3, k4, k5 = jax.random.split(key, 5)
    return {
        "conv_w": jax.random.uniform(k1, (4 * Cout, Cin + Cout, K, K),
                                     jnp.float32, -bound, bound),
        "conv_b": jax.random.uniform(k2, (4 * Cout,), jnp.float32,
                                     -bound, bound),
        "W_ci": jax.random.normal(k3, (Cout, *frame_size), jnp.float32),
        "W_co": jax.random.normal(k4, (Cout, *frame_size), jnp.float32),
        "W_cf": jax.random.normal(k5, (Cout, *frame_size), jnp.float32),
    }


if __name__ == "__main__":
    B, Cin, H, W = 2, 4, 16, 16
    Cout, K, pad = 32, 3, 1

    key = jax.random.PRNGKey(0)
    kx, kh, kc, kp = jax.random.split(key, 4)
    X = jax.random.normal(kx, (B, Cin, H, W), jnp.float32)
    H_prev = jax.random.normal(kh, (B, Cout, H, W), jnp.float32)
    C_prev = jax.random.normal(kc, (B, Cout, H, W), jnp.float32)
    params = init_convlstm_params(kp, Cin, Cout, K, frame_size=(H, W))

    fwd = jax.jit(functools.partial(convlstm_cell_forward, kernel_size=K,
                                    padding=pad, activation="tanh"))
    h_out, c_out = fwd(X, H_prev, C_prev, params)
    h_out, c_out = jax.block_until_ready((h_out, c_out))

    h_ref, c_ref = convlstm_cell_reference(X, H_prev, C_prev, params,
                                           kernel_size=K, padding=pad,
                                           activation="tanh")
    h_ref, c_ref = jax.block_until_ready((h_ref, c_ref))

    assert h_out.shape == (B, Cout, H, W) and c_out.shape == (B, Cout, H, W)
    # bf16 MXU operands with f32 accumulation -> small tolerance vs f32 ref.
    assert float(jnp.max(jnp.abs(h_out - h_ref))) < 3e-2
    assert float(jnp.max(jnp.abs(c_out - c_ref))) < 3e-2
    print("KERNEL_OK")
</pallas_src>

<mosaic_0001>
module attributes {stable_mosaic.version = 11 : i64} {
  func.func @_convlstm_cell_kernel(%arg0: i32, %arg1: memref<1x18x18x36xbf16, #tpu.memory_space<vmem>>, %arg2: memref<324x128xbf16, #tpu.memory_space<vmem>>, %arg3: memref<1x128xf32, #tpu.memory_space<vmem>>, %arg4: memref<256x32xf32, #tpu.memory_space<vmem>>, %arg5: memref<256x32xf32, #tpu.memory_space<vmem>>, %arg6: memref<256x32xf32, #tpu.memory_space<vmem>>, %arg7: memref<1x256x32xf32, #tpu.memory_space<vmem>>, %arg8: memref<1x256x32xf32, #tpu.memory_space<vmem>>, %arg9: memref<1x256x32xf32, #tpu.memory_space<vmem>>) attributes {dimension_semantics = [#tpu.dimension_semantics<parallel>], iteration_bounds = array<i64: 2>, scalar_prefetch = 0 : i64, scratch_operands = 0 : i64, tpu.core_type = #tpu.core_type<tc>, window_params = [{transform_indices = @transform_0, window_bounds = array<i64: 1, 18, 18, 36>}, {pipeline_mode = #tpu.pipeline_mode<synchronous>, transform_indices = @transform_1, window_bounds = array<i64: 324, 128>}, {pipeline_mode = #tpu.pipeline_mode<synchronous>, transform_indices = @transform_2, window_bounds = array<i64: 1, 128>}, {pipeline_mode = #tpu.pipeline_mode<synchronous>, transform_indices = @transform_3, window_bounds = array<i64: 256, 32>}, {pipeline_mode = #tpu.pipeline_mode<synchronous>, transform_indices = @transform_4, window_bounds = array<i64: 256, 32>}, {pipeline_mode = #tpu.pipeline_mode<synchronous>, transform_indices = @transform_5, window_bounds = array<i64: 256, 32>}, {transform_indices = @transform_6, window_bounds = array<i64: 1, 256, 32>}, {transform_indices = @transform_7, window_bounds = array<i64: 1, 256, 32>}, {transform_indices = @transform_8, window_bounds = array<i64: 1, 256, 32>}]} {
    %c0 = arith.constant 0 : index
    %c0_0 = arith.constant 0 : index
    %c0_1 = arith.constant 0 : index
    %c0_2 = arith.constant 0 : index
    %0 = vector.load %arg1[%c0, %c0_0, %c0_1, %c0_2] : memref<1x18x18x36xbf16, #tpu.memory_space<vmem>>, vector<1x18x18x36xbf16>
    %1 = vector.shape_cast %0 : vector<1x18x18x36xbf16> to vector<18x18x36xbf16>
    %2 = vector.extract_strided_slice %1 {offsets = [0, 0, 0], sizes = [16, 16, 36], strides = [1, 1, 1]} : vector<18x18x36xbf16> to vector<16x16x36xbf16>
    %3 = vector.shape_cast %2 : vector<16x16x36xbf16> to vector<256x36xbf16>
    %4 = vector.extract_strided_slice %1 {offsets = [0, 1, 0], sizes = [16, 16, 36], strides = [1, 1, 1]} : vector<18x18x36xbf16> to vector<16x16x36xbf16>
    %5 = vector.shape_cast %4 : vector<16x16x36xbf16> to vector<256x36xbf16>
    %6 = vector.extract_strided_slice %1 {offsets = [0, 2, 0], sizes = [16, 16, 36], strides = [1, 1, 1]} : vector<18x18x36xbf16> to vector<16x16x36xbf16>
    %7 = vector.shape_cast %6 : vector<16x16x36xbf16> to vector<256x36xbf16>
    %8 = vector.extract_strided_slice %1 {offsets = [1, 0, 0], sizes = [16, 16, 36], strides = [1, 1, 1]} : vector<18x18x36xbf16> to vector<16x16x36xbf16>
    %9 = vector.shape_cast %8 : vector<16x16x36xbf16> to vector<256x36xbf16>
    %10 = vector.extract_strided_slice %1 {offsets = [1, 1, 0], sizes = [16, 16, 36], strides = [1, 1, 1]} : vector<18x18x36xbf16> to vector<16x16x36xbf16>
    %11 = vector.shape_cast %10 : vector<16x16x36xbf16> to vector<256x36xbf16>
    %12 = vector.extract_strided_slice %1 {offsets = [1, 2, 0], sizes = [16, 16, 36], strides = [1, 1, 1]} : vector<18x18x36xbf16> to vector<16x16x36xbf16>
    %13 = vector.shape_cast %12 : vector<16x16x36xbf16> to vector<256x36xbf16>
    %14 = vector.extract_strided_slice %1 {offsets = [2, 0, 0], sizes = [16, 16, 36], strides = [1, 1, 1]} : vector<18x18x36xbf16> to vector<16x16x36xbf16>
    %15 = vector.shape_cast %14 : vector<16x16x36xbf16> to vector<256x36xbf16>
    %16 = vector.extract_strided_slice %1 {offsets = [2, 1, 0], sizes = [16, 16, 36], strides = [1, 1, 1]} : vector<18x18x36xbf16> to vector<16x16x36xbf16>
    %17 = vector.shape_cast %16 : vector<16x16x36xbf16> to vector<256x36xbf16>
    %18 = vector.extract_strided_slice %1 {offsets = [2, 2, 0], sizes = [16, 16, 36], strides = [1, 1, 1]} : vector<18x18x36xbf16> to vector<16x16x36xbf16>
    %19 = vector.shape_cast %18 : vector<16x16x36xbf16> to vector<256x36xbf16>
    %20 = tpu.concatenate %3, %5, %7, %9, %11, %13, %15, %17, %19 in 1 : vector<256x36xbf16>, vector<256x36xbf16>, vector<256x36xbf16>, vector<256x36xbf16>, vector<256x36xbf16>, vector<256x36xbf16>, vector<256x36xbf16>, vector<256x36xbf16>, vector<256x36xbf16> -> vector<256x324xbf16>
    %c0_3 = arith.constant 0 : index
    %c0_4 = arith.constant 0 : index
    %21 = vector.load %arg2[%c0_3, %c0_4] : memref<324x128xbf16, #tpu.memory_space<vmem>>, vector<324x128xbf16>
    %cst = arith.constant dense<0.000000e+00> : vector<256x128xf32>
    %22 = tpu.matmul %20, %21, %cst {dimension_numbers = #tpu.dot_dimension_numbers<[1], [0], [0], [1], [0, 0, 1, 1], [], []>} : vector<256x324xbf16>, vector<324x128xbf16>, vector<256x128xf32> -> vector<256x128xf32>
    %c0_5 = arith.constant 0 : index
    %c0_6 = arith.constant 0 : index
    %23 = vector.load %arg3[%c0_5, %c0_6] : memref<1x128xf32, #tpu.memory_space<vmem>>, vector<1x128xf32>
    %24 = vector.broadcast %23 : vector<1x128xf32> to vector<256x128xf32>
    %25 = arith.addf %22, %24 : vector<256x128xf32>
    %26 = vector.extract_strided_slice %25 {offsets = [0, 0], sizes = [256, 32], strides = [1, 1]} : vector<256x128xf32> to vector<256x32xf32>
    %27 = vector.extract_strided_slice %25 {offsets = [0, 32], sizes = [256, 32], strides = [1, 1]} : vector<256x128xf32> to vector<256x32xf32>
    %28 = vector.extract_strided_slice %25 {offsets = [0, 64], sizes = [256, 32], strides = [1, 1]} : vector<256x128xf32> to vector<256x32xf32>
    %29 = vector.extract_strided_slice %25 {offsets = [0, 96], sizes = [256, 32], strides = [1, 1]} : vector<256x128xf32> to vector<256x32xf32>
    %c0_7 = arith.constant 0 : index
    %c0_8 = arith.constant 0 : index
    %c0_9 = arith.constant 0 : index
    %30 = vector.load %arg7[%c0_7, %c0_8, %c0_9] : memref<1x256x32xf32, #tpu.memory_space<vmem>>, vector<1x256x32xf32>
    %31 = vector.shape_cast %30 : vector<1x256x32xf32> to vector<256x32xf32>
    %c0_10 = arith.constant 0 : index
    %c0_11 = arith.constant 0 : index
    %32 = vector.load %arg4[%c0_10, %c0_11] : memref<256x32xf32, #tpu.memory_space<vmem>>, vector<256x32xf32>
    %33 = arith.mulf %32, %31 : vector<256x32xf32>
    %34 = arith.addf %26, %33 : vector<256x32xf32>
    %35 = arith.negf %34 : vector<256x32xf32>
    %36 = math.exp %35 : vector<256x32xf32>
    %cst_12 = arith.constant 1.000000e+00 : f32
    %37 = vector.broadcast %cst_12 : f32 to vector<256x32xf32>
    %38 = arith.addf %37, %36 : vector<256x32xf32>
    %39 = arith.divf %37, %38 : vector<256x32xf32>
    %c0_13 = arith.constant 0 : index
    %c0_14 = arith.constant 0 : index
    %40 = vector.load %arg5[%c0_13, %c0_14] : memref<256x32xf32, #tpu.memory_space<vmem>>, vector<256x32xf32>
    %41 = arith.mulf %40, %31 : vector<256x32xf32>
    %42 = arith.addf %27, %41 : vector<256x32xf32>
    %43 = arith.negf %42 : vector<256x32xf32>
    %44 = math.exp %43 : vector<256x32xf32>
    %cst_15 = arith.constant 1.000000e+00 : f32
    %45 = vector.broadcast %cst_15 : f32 to vector<256x32xf32>
    %46 = arith.addf %45, %44 : vector<256x32xf32>
    %47 = arith.divf %45, %46 : vector<256x32xf32>
    %48 = arith.mulf %47, %31 : vector<256x32xf32>
    %49 = math.tanh %28 : vector<256x32xf32>
    %50 = arith.mulf %39, %49 : vector<256x32xf32>
    %51 = arith.addf %48, %50 : vector<256x32xf32>
    %c0_16 = arith.constant 0 : index
    %c0_17 = arith.constant 0 : index
    %52 = vector.load %arg6[%c0_16, %c0_17] : memref<256x32xf32, #tpu.memory_space<vmem>>, vector<256x32xf32>
    %53 = arith.mulf %52, %51 : vector<256x32xf32>
    %54 = arith.addf %29, %53 : vector<256x32xf32>
    %55 = arith.negf %54 : vector<256x32xf32>
    %56 = math.exp %55 : vector<256x32xf32>
    %cst_18 = arith.constant 1.000000e+00 : f32
    %57 = vector.broadcast %cst_18 : f32 to vector<256x32xf32>
    %58 = arith.addf %57, %56 : vector<256x32xf32>
    %59 = arith.divf %57, %58 : vector<256x32xf32>
    %60 = math.tanh %51 : vector<256x32xf32>
    %61 = arith.mulf %59, %60 : vector<256x32xf32>
    %c0_19 = arith.constant 0 : index
    %c0_20 = arith.constant 0 : index
    %c0_21 = arith.constant 0 : index
    %62 = vector.load %arg8[%c0_19, %c0_20, %c0_21] : memref<1x256x32xf32, #tpu.memory_space<vmem>>, vector<1x256x32xf32>
    %63 = vector.shape_cast %62 : vector<1x256x32xf32> to vector<256x32xf32>
    %64 = vector.shape_cast %61 : vector<256x32xf32> to vector<1x256x32xf32>
    tpu.vector_store %arg8[%c0_19, %c0_20, %c0_21], %64 {strides = array<i32>} : memref<1x256x32xf32, #tpu.memory_space<vmem>>, vector<1x256x32xf32>,
    %c0_22 = arith.constant 0 : index
    %c0_23 = arith.constant 0 : index
    %c0_24 = arith.constant 0 : index
    %65 = vector.load %arg9[%c0_22, %c0_23, %c0_24] : memref<1x256x32xf32, #tpu.memory_space<vmem>>, vector<1x256x32xf32>
    %66 = vector.shape_cast %65 : vector<1x256x32xf32> to vector<256x32xf32>
    %67 = vector.shape_cast %51 : vector<256x32xf32> to vector<1x256x32xf32>
    tpu.vector_store %arg9[%c0_22, %c0_23, %c0_24], %67 {strides = array<i32>} : memref<1x256x32xf32, #tpu.memory_space<vmem>>, vector<1x256x32xf32>,
    return
  }
  func.func @transform_0(%arg0: i32) -> (i32, i32, i32, i32) {
    %c0_i32 = arith.constant 0 : i32
    %c0_i32_0 = arith.constant 0 : i32
    %c0_i32_1 = arith.constant 0 : i32
    %c0_i32_2 = arith.constant 0 : i32
    return %arg0, %c0_i32, %c0_i32_0, %c0_i32_1 : i32, i32, i32, i32
  }
  func.func @transform_1(%arg0: i32) -> (i32, i32) {
    %c0_i32 = arith.constant 0 : i32
    %c0_i32_0 = arith.constant 0 : i32
    %c0_i32_1 = arith.constant 0 : i32
    return %c0_i32, %c0_i32_0 : i32, i32
  }
  func.func @transform_2(%arg0: i32) -> (i32, i32) {
    %c0_i32 = arith.constant 0 : i32
    %c0_i32_0 = arith.constant 0 : i32
    %c0_i32_1 = arith.constant 0 : i32
    return %c0_i32, %c0_i32_0 : i32, i32
  }
  func.func @transform_3(%arg0: i32) -> (i32, i32) {
    %c0_i32 = arith.constant 0 : i32
    %c0_i32_0 = arith.constant 0 : i32
    %c0_i32_1 = arith.constant 0 : i32
    return %c0_i32, %c0_i32_0 : i32, i32
  }
  func.func @transform_4(%arg0: i32) -> (i32, i32) {
    %c0_i32 = arith.constant 0 : i32
    %c0_i32_0 = arith.constant 0 : i32
    %c0_i32_1 = arith.constant 0 : i32
    return %c0_i32, %c0_i32_0 : i32, i32
  }
  func.func @transform_5(%arg0: i32) -> (i32, i32) {
    %c0_i32 = arith.constant 0 : i32
    %c0_i32_0 = arith.constant 0 : i32
    %c0_i32_1 = arith.constant 0 : i32
    return %c0_i32, %c0_i32_0 : i32, i32
  }
  func.func @transform_6(%arg0: i32) -> (i32, i32, i32) {
    %c0_i32 = arith.constant 0 : i32
    %c0_i32_0 = arith.constant 0 : i32
    %c0_i32_1 = arith.constant 0 : i32
    return %arg0, %c0_i32, %c0_i32_0 : i32, i32, i32
  }
  func.func @transform_7(%arg0: i32) -> (i32, i32, i32) {
    %c0_i32 = arith.constant 0 : i32
    %c0_i32_0 = arith.constant 0 : i32
    %c0_i32_1 = arith.constant 0 : i32
    return %arg0, %c0_i32, %c0_i32_0 : i32, i32, i32
  }
  func.func @transform_8(%arg0: i32) -> (i32, i32, i32) {
    %c0_i32 = arith.constant 0 : i32
    %c0_i32_0 = arith.constant 0 : i32
    %c0_i32_1 = arith.constant 0 : i32
    return %arg0, %c0_i32, %c0_i32_0 : i32, i32, i32
  }
}

</mosaic_0001>

<bundles_post_ra>
// kernel: convlstm_cell_forward.1
= control target key start
LH: loop header
LB: loop body
LE: loop exit
PB: predicated region body
PF: predicated region fallthrough
CT: control target
= control target key end

     0   :  { %14 = vsyncpa [#allocation3], 0  ;;  %s8592_s0 = inlined_call_operand.vmem [shape: bf16[2,18,18,36], index: 0, kind: input, shape index: {}]   ;;  %s8593_s1 = inlined_call_operand.vmem [shape: bf16[324,128], index: 1, kind: input, shape index: {}]   ;;  %s8594_s2 = inlined_call_operand.vmem [shape: f32[1,128], index: 2, kind: input, shape index: {}]   ;;  %s8595_s3 = inlined_call_operand.vmem [shape: f32[256,32], index: 3, kind: input, shape index: {}]   ;;  %s8596_s4 = inlined_call_operand.vmem [shape: f32[256,32], index: 4, kind: input, shape index: {}]   ;;  %s8597_s5 = inlined_call_operand.vmem [shape: f32[256,32], index: 5, kind: input, shape index: {}]   ;;  %s8598_s6 = inlined_call_operand.vmem [shape: f32[2,256,32], index: 6, kind: input, shape index: {}]   ;;  %s8599_s7 = inlined_call_operand.hbm [shape: f32[2,256,32], index: 7, kind: output, shape index: {0}]   ;;  %s8600_s8 = inlined_call_operand.hbm [shape: f32[2,256,32], index: 8, kind: output, shape index: {1}]  }
   0x1   :  { %16 = vsyncpa [#allocation3 + $0x1], 0 }
   0x2   :  { %17 = vsyncpa [#allocation5], 0 }
   0x3   :  { %19 = vsyncpa [#allocation5 + $0x1], 0  ;;  %s5810_s27 = smov 0   ;;  %s5812_s28 = smov 0  }
   0x4   :  { %s5814_s29 = smov 0   ;;  %s5816_s30 = smov 0  }
   0x5 LB: > { %s5831_s9 = sadd.s32 4294967295, %s5749_s30   ;;  %s4585_s10 = sadd.s32 4294967294, %s5749_s30   ;;  %s5749_s30 = sphi %s5816_s30, %s8844_s30   ;;  %s5745_s29 = sphi %s5814_s29, %s8843_s29   ;;  %s5741_s28 = sphi %s5812_s28, %s8842_s28   ;;  %s5737_s27 = sphi %s5810_s27, %s8841_s27  }
   0x6   : > { %s5835_s11 = sadd.s32 1, %s5749_s30   ;;  %s189_s12 = sadd.s32 1, %s5745_s29 }
   0x7   : > { %s186_s13 = ssub.s32 %s5749_s30, %s5835_s11  ;;  %p199_p0 = scmp.ne.s32.totalorder %s5745_s29, %s5741_s28 }
   0x8   : > { %p187_p1 = scmp.eq.s32.totalorder %s186_s13, 0  ;;  %p200_p2 = scmp.eq.s32.totalorder %s5831_s9, 1 }
   0x9   : > { %p205_p3 = scmp.ne.s32.totalorder %s5741_s28, %s5737_s27  ;;  %p206_p4 = scmp.eq.s32.totalorder %s4585_s10, 1 }
   0xa   : > { %s5846_s14 = scalar_select %p187_p1, %s5745_s29, %s189_s12  }
   0xb   : > { %p5848_p5 = por %p200_p2, %p199_p0  ;;  %p5852_p6 = por %p206_p4, %p205_p3 }
   0xc   : > { %p4588_p7 = scmp.ge.s32.totalorder %s5749_s30, 1  ;;  %p281_p8 = scmp.lt.s32.totalorder %s5749_s30, 3 }
   0xe   : > { %p282_p9 = pnand %p4588_p7, %p281_p8 }
  0x10   : > { %285 = sbr.rel (%p282_p9) target bundleno = 1339 (0x53b), region = 48 }
  0x17   : > { %p325_p10 = scmp.lt.s32.totalorder %s5831_s9, 1  ;;  %vm390_vm0 = vsmask.f32 3328  ;;  %vm391_vm1 = vsmask.f32 7440  ;;  %s5751_s22 = smov 36  }
  0x18   : > { %vm5904_vm2 = vmor %vm390_vm0, %vm391_vm1  ;;  %vm825_vm3 = vcmask 1042432   ;;  %vm826_vm4 = vcmask 1046532   ;;  %s5752_s23 = smov 72   ;;  %s5753_s25 = smov 108   ;;  %vm1426_vm6 = vcmask 293888   ;;  %vm1557_vm7 = vcmask 130048  }
  0x19   : > { %s5860_s17 = scalar_select %p325_p10, %s5831_s9, 1  ;;  %vm6207_vm5 = vmor %vm825_vm3, %vm826_vm4  ;;  %vm1590_vm8 = vcmask 424960   ;;  %vm1623_vm9 = vcmask 719872   ;;  %vm1475_vm10 = vcmask 588800   ;;  %vm1656_vm11 = vcmask 1014784  }
  0x1a   : > { %s5754_s26 = smov 52   ;;  %s5755_s10 = smov 16   ;;  %vm1508_vm12 = vcmask 883712   ;;  %vm1942_vm13 = vcmask 1041408   ;;  %vm1705_vm14 = vcmask 261120   ;;  %vm1909_vm15 = vcmask 556032  }
  0x1b   : > { %s5003_s18 = smul.u32 216, %s5860_s17  ;;  %s5756_s12 = smov 124  }
  0x1c   : > { %s5757_s13 = smov 88   ;;  %s8075_s19 = sand.u32 1, %s5741_s28  }
  0x1d   : > { %s5866_s21 = scalar_lea.vmem %s8592_s0, %s5003_s18  ;;  %s8655_s20 = sshll.u32 %s8075_s19, 8 }
  0x1e   : > { %v5869_v0 = vld [vmem:[%s5866_s21 + $0x18] sm:$0xf]  ;;  %v5872_v1 = vld [vmem:[%s5866_s21 + $0x1c] sm:$0xf]  ;;  %v5875_v2 = vld [vmem:[%s5866_s21 + $0x20] sm:$0x1] }
  0x1f   : > { %v442_v3 = vshrl.u32 %v5869_v0, 16  ;;  %v445_v4 = vshll.u32 %v5869_v0, 16  ;;  %v451_v5 = vshll.u32 %v5872_v1, 16  ;;  %v455_v6 = vshrl.u32 %v5872_v1, 16  ;;  %v5882_v7 = vld [vmem:[%s5866_s21] sm:$0xf] }
  0x20   : > { %v461_v8 = vshll.u32 %v5875_v2, 16  ;;  %v5886_v9 = vld [vmem:[%s5866_s21 + $0x4] sm:$0xf]  ;;  %v5889_v10 = vld [vmem:[%s5866_s21 + $0x8] sm:$0x1]  ;;  %v394_v11 = vshrl.u32 %v5882_v7, 16 }
  0x21   : > { %v444_v12 = vrot.slane %v442_v3, 4  ;;  %v447_v13 = vrot.slane %v445_v4, 5  ;;  %v453_v14 = vrot.slane %v451_v5, 5  ;;  %v457_v15 = vrot.slane %v455_v6, 4  ;;  %v5893_v16 = vld [vmem:[%s5866_s21 + $0x24] sm:$0xf] }
  0x22   : > { %v463_v17 = vrot.slane %v461_v8, 5  ;;  %v396_v18 = vrot.slane %v394_v11, 4  ;;  %v397_v19 = vshll.u32 %v5882_v7, 16  ;;  %v403_v20 = vshll.u32 %v5886_v9, 16  ;;  %v5900_v25 = vld [vmem:[%s5866_s21 + $0x28] sm:$0xf] }
  0x23   : > { %v448_v21 = vor.u32 %v447_v13, %v444_v12  ;;  %v458_v22 = vor.u32 %v457_v15, %v453_v14  ;;  %v407_v23 = vshrl.u32 %v5886_v9, 16  ;;  %v413_v24 = vshll.u32 %v5889_v10, 16  ;;  %v5911_v35 = vld [vmem:[%s5866_s21 + $0x2c] sm:$0x1]  ;;  %v5923_v45 = vld [vmem:[%s5866_s21 + $0x10] sm:$0xf] }
  0x24   : > { %v399_v27 = vrot.slane %v397_v19, 5  ;;  %v405_v28 = vrot.slane %v403_v20, 5  ;;  %v466_v29 = vshrl.u32 %v5893_v16, 16  ;;  %v469_v30 = vshll.u32 %v5893_v16, 16  ;;  %v5915_v40 = vld [vmem:[%s5866_s21 + $0xc] sm:$0xf] }
  0x25   : > { %v449_v31 = vrot.slane %v448_v21, 4  ;;  %v459_v32 = vrot.slane %v458_v22, 4  ;;  %v409_v33 = vrot.slane %v407_v23, 4  ;;  %v415_v34 = vrot.slane %v413_v24, 5  ;;  %v5929_v53 = vld [vmem:[%s5866_s21 + $0x14] sm:$0x1] }
  0x26   : > { %v400_v36 = vor.u32 %v399_v27, %v396_v18  ;;  %v468_v37 = vrot.slane %v466_v29, 4  ;;  %v471_v38 = vrot.slane %v469_v30, 5  ;;  %v475_v39 = vshll.u32 %v5900_v25, 16  ;;  %v5939_v59 = vld [vmem:[%s5866_s21 + $0x3c] sm:$0xf]  ;;  %s8090_s24 = scalar_lea.vmem [#allocation4], %s8655_s20 }
  0x27   : > { %v454_v41 = vsel %vm5904_vm2, %v449_v31, %v453_v14  ;;  %v464_v42 = vsel %vm5904_vm2, %v459_v32, %v463_v17  ;;  %v410_v43 = vor.u32 %v409_v33, %v405_v28  ;;  %v479_v44 = vshrl.u32 %v5900_v25, 16  ;;  %v5944_v3 = vld [vmem:[%s5866_s21 + $0x40] sm:$0xf]  ;;  %v5951_v14 = vld [vmem:[%s5866_s21 + $0x44] sm:$0x1] }
  0x28   : > { %v5925_v46 = vcombine.low %v454_v41, %v464_v42  ;;  %v401_v47 = vrot.slane %v400_v36, 4  ;;  %v472_v48 = vor.u32 %v471_v38, %v468_v37  ;;  %v477_v49 = vrot.slane %v475_v39, 5  ;;  %v5959_v21 = vld [vmem:[%s5866_s21 + $0x30] sm:$0xf]  ;;  %v5975_v41 = vld [vmem:[%s5866_s21 + $0x38] sm:$0x1] }
  0x29   : > { %v411_v50 = vrot.slane %v410_v43, 4  ;;  %v481_v51 = vrot.slane %v479_v44, 4  ;;  %v485_v52 = vshll.u32 %v5911_v35, 16  ;;  %v418_v54 = vshrl.u32 %v5915_v40, 16  ;;  %v5980_v44 = vld [vmem:[%s5866_s21 + $0x54] sm:$0xf] }
  0x2a   : > { %8660 = vst [vmem:[#allocation8_spill] sm:$0xff] %v5925_v46  ;;  %1108 = vrot.lane.b32.xlu1 %v5925_v46, %s5751_s22  ;;  %v406_v55 = vsel %vm5904_vm2, %v401_v47, %v405_v28  ;;  %v473_v56 = vrot.slane %v472_v48, 4  ;;  %v421_v57 = vshll.u32 %v5915_v40, 16  ;;  %v427_v58 = vshll.u32 %v5923_v45, 16  ;;  %v5964_v28 = vld [vmem:[%s5866_s21 + $0x34] sm:$0xf] }
  0x2b   : > { %v416_v60 = vsel %vm5904_vm2, %v411_v50, %v415_v34  ;;  %v482_v61 = vor.u32 %v481_v51, %v477_v49  ;;  %v487_v62 = vrot.slane %v485_v52, 5  ;;  %v420_v63 = vrot.slane %v418_v54, 4 }
  0x2c   : > { %v4628_v4 = vcombine.low %v406_v55, %v416_v60  ;;  %v478_v5 = vsel %vm5904_vm2, %v473_v56, %v477_v49  ;;  %v423_v6 = vrot.slane %v421_v57, 5  ;;  %v429_v8 = vrot.slane %v427_v58, 5  ;;  %v5987_v60 = vld [vmem:[%s5866_s21 + $0x58] sm:$0xf] }
  0x2d   : > { %v483_v11 = vrot.slane %v482_v61, 4  ;;  %v431_v12 = vshrl.u32 %v5923_v45, 16  ;;  %v437_v13 = vshll.u32 %v5929_v53, 16  ;;  %v514_v15 = vshrl.u32 %v5939_v59, 16 }
  0x2e   : > { %1104 = vrot.lane.b32.xlu0 %v4628_v4, %s5751_s22  ;;  %v424_v17 = vor.u32 %v423_v6, %v420_v63  ;;  %v517_v18 = vshll.u32 %v5939_v59, 16  ;;  %v523_v19 = vshll.u32 %v5944_v3, 16  ;;  %v527_v20 = vshrl.u32 %v5944_v3, 16  ;;  %v5995_v6 = vld [vmem:[%s5866_s21 + $0x5c] sm:$0x1] }
  0x2f   : > { %v488_v22 = vsel %vm5904_vm2, %v483_v11, %v487_v62  ;;  %v433_v23 = vrot.slane %v431_v12, 4  ;;  %v439_v24 = vrot.slane %v437_v13, 5  ;;  %v516_v27 = vrot.slane %v514_v15, 4 }
  0x30   : > { %v5966_v29 = vcombine.low %v478_v5, %v488_v22  ;;  %v425_v30 = vrot.slane %v424_v17, 4  ;;  %v519_v31 = vrot.slane %v517_v18, 5  ;;  %v525_v32 = vrot.slane %v523_v19, 5 }
  0x31   : > { %v434_v33 = vor.u32 %v433_v23, %v429_v8  ;;  %v529_v34 = vrot.slane %v527_v20, 4  ;;  %v533_v36 = vshll.u32 %v5951_v14, 16  ;;  %v490_v37 = vshrl.u32 %v5959_v21, 16 }
  0x32   : > { %8661 = vst [vmem:[#allocation9_spill] sm:$0xff] %v5966_v29  ;;  %1110 = vrot.lane.b32.xlu1 %v5966_v29, %s5751_s22  ;;  %v430_v38 = vsel %vm5904_vm2, %v425_v30, %v429_v8  ;;  %v520_v39 = vor.u32 %v519_v31, %v516_v27  ;;  %v493_v42 = vshll.u32 %v5959_v21, 16  ;;  %v499_v43 = vshll.u32 %v5964_v28, 16  ;;  %v5998_v8 = vld [vmem:[%s5866_s21 + $0x48] sm:$0xf] }
  0x33   : > { %v435_v47 = vrot.slane %v434_v33, 4  ;;  %v530_v48 = vor.u32 %v529_v34, %v525_v32  ;;  %v535_v49 = vrot.slane %v533_v36, 5  ;;  %v492_v50 = vrot.slane %v490_v37, 4  ;;  %v6011_v27 = vld [vmem:[%s5866_s21 + $0x4c] sm:$0xf] }
  0x34   : > { %v521_v51 = vrot.slane %v520_v39, 4  ;;  %v495_v52 = vrot.slane %v493_v42, 5  ;;  %v501_v54 = vrot.slane %v499_v43, 5  ;;  %v503_v55 = vshrl.u32 %v5964_v28, 16  ;;  %v6019_v34 = vld [vmem:[%s5866_s21 + $0x50] sm:$0x1] }
  0x35   : > { %v440_v56 = vsel %vm5904_vm2, %v435_v47, %v439_v24  ;;  %v531_v57 = vrot.slane %v530_v48, 4  ;;  %v509_v58 = vshll.u32 %v5975_v41, 16  ;;  %v562_v61 = vshrl.u32 %v5980_v44, 16  ;;  %v6023_v43 = vld [vmem:[%s5866_s21 + $0x6c] sm:$0xf] }
  0x36   : > { %v5990_v62 = vcombine.low %v430_v38, %v440_v56  ;;  %v526_v63 = vsel %vm5904_vm2, %v521_v51, %v525_v32  ;;  %v496_v4 = vor.u32 %v495_v52, %v492_v50  ;;  %v505_v5 = vrot.slane %v503_v55, 4  ;;  %v6033_v56 = vld [vmem:[%s5866_s21 + $0x70] sm:$0xf] }
  0x37   : > { %v536_v11 = vsel %vm5904_vm2, %v531_v57, %v535_v49  ;;  %v511_v12 = vrot.slane %v509_v58, 5  ;;  %v564_v13 = vrot.slane %v562_v61, 4  ;;  %v565_v15 = vshll.u32 %v5980_v44, 16 }
  0x38   : > { %8662 = vst [vmem:[#allocation10_spill] sm:$0xff] %v5990_v62  ;;  %1106 = vrot.lane.b32.xlu0 %v5990_v62, %s5751_s22  ;;  %v6005_v17 = vcombine.low %v526_v63, %v536_v11  ;;  %v497_v18 = vrot.slane %v496_v4, 4  ;;  %v506_v19 = vor.u32 %v505_v5, %v501_v54  ;;  %v571_v20 = vshll.u32 %v5987_v60, 16  ;;  %v6036_v63 = vld [vmem:[%s5866_s21 + $0x74] sm:$0x1] }
  0x39   : > { %v567_v22 = vrot.slane %v565_v15, 5  ;;  %v575_v23 = vshrl.u32 %v5987_v60, 16  ;;  %v581_v24 = vshll.u32 %v5995_v6, 16  ;;  %v538_v30 = vshrl.u32 %v5998_v8, 16 }
  0x3a   : > { %8663 = vst [vmem:[#allocation11_spill] sm:$0xff] %v6005_v17  ;;  %1114 = vrot.lane.b32.xlu1 %v6005_v17, %s5751_s22  ;;  %v502_v31 = vsel %vm5904_vm2, %v497_v18, %v501_v54  ;;  %v507_v32 = vrot.slane %v506_v19, 4  ;;  %v573_v33 = vrot.slane %v571_v20, 5  ;;  %v541_v36 = vshll.u32 %v5998_v8, 16 }
  0x3b   : > { %v568_v37 = vor.u32 %v567_v22, %v564_v13  ;;  %v577_v38 = vrot.slane %v575_v23, 4  ;;  %v583_v39 = vrot.slane %v581_v24, 5  ;;  %v540_v42 = vrot.slane %v538_v30, 4  ;;  %v6046_v22 = vld [vmem:[%s5866_s21 + $0x60] sm:$0xf] }
  0x3c   : > { %v512_v47 = vsel %vm5904_vm2, %v507_v32, %v511_v12  ;;  %v543_v48 = vrot.slane %v541_v36, 5  ;;  %v547_v49 = vshll.u32 %v6011_v27, 16  ;;  %v551_v50 = vshrl.u32 %v6011_v27, 16  ;;  %v6053_v32 = vld [vmem:[%s5866_s21 + $0x64] sm:$0xf] }
  0x3d   : > { %v6029_v51 = vcombine.low %v502_v31, %v512_v47  ;;  %v569_v52 = vrot.slane %v568_v37, 4  ;;  %v578_v54 = vor.u32 %v577_v38, %v573_v33  ;;  %v557_v55 = vshll.u32 %v6019_v34, 16  ;;  %v6063_v47 = vld [vmem:[%s5866_s21 + $0x84] sm:$0xf] }
  0x3e   : > { %v544_v57 = vor.u32 %v543_v48, %v540_v42  ;;  %v549_v58 = vrot.slane %v547_v49, 5  ;;  %v553_v61 = vrot.slane %v551_v50, 4  ;;  %v610_v4 = vshrl.u32 %v6023_v43, 16  ;;  %v6060_v42 = vld [vmem:[%s5866_s21 + $0x68] sm:$0x1] }
  0x3f   : > { %8664 = vst [vmem:[#allocation12_spill] sm:$0xff] %v6029_v51  ;;  %1112 = vrot.lane.b32.xlu0 %v6029_v51, %s5751_s22  ;;  %v574_v5 = vsel %vm5904_vm2, %v569_v52, %v573_v33  ;;  %v579_v11 = vrot.slane %v578_v54, 4  ;;  %v559_v12 = vrot.slane %v557_v55, 5  ;;  %v613_v13 = vshll.u32 %v6023_v43, 16  ;;  %v6067_v52 = vld [vmem:[%s5866_s21 + $0x88] sm:$0xf] }
  0x40   : > { %v545_v15 = vrot.slane %v544_v57, 4  ;;  %v554_v18 = vor.u32 %v553_v61, %v549_v58  ;;  %v612_v19 = vrot.slane %v610_v4, 4  ;;  %v619_v20 = vshll.u32 %v6033_v56, 16 }
  0x41   : > { %v584_v23 = vsel %vm5904_vm2, %v579_v11, %v583_v39  ;;  %v615_v24 = vrot.slane %v613_v13, 5  ;;  %v623_v30 = vshrl.u32 %v6033_v56, 16  ;;  %v629_v31 = vshll.u32 %v6036_v63, 16 }
  0x42   : > { %v6055_v33 = vcombine.low %v574_v5, %v584_v23  ;;  %v550_v36 = vsel %vm5904_vm2, %v545_v15, %v549_v58  ;;  %v555_v37 = vrot.slane %v554_v18, 4  ;;  %v621_v38 = vrot.slane %v619_v20, 5  ;;  %v6080_v20 = vld [vmem:[%s5866_s21 + $0x8c] sm:$0x1] }
  0x43   : > { %v616_v48 = vor.u32 %v615_v24, %v612_v19  ;;  %v625_v39 = vrot.slane %v623_v30, 4  ;;  %v631_v49 = vrot.slane %v629_v31, 5  ;;  %v586_v50 = vshrl.u32 %v6046_v22, 16 }
  0x44   : > { %8665 = vst [vmem:[#allocation13_spill] sm:$0xff] %v6055_v33  ;;  %1118 = vrot.lane.b32.xlu1 %v6055_v33, %s5751_s22  ;;  %v560_v54 = vsel %vm5904_vm2, %v555_v37, %v559_v12  ;;  %v589_v55 = vshll.u32 %v6046_v22, 16  ;;  %v595_v57 = vshll.u32 %v6053_v32, 16  ;;  %v599_v58 = vshrl.u32 %v6053_v32, 16  ;;  %v6083_v12 = vld [vmem:[%s5866_s21 + $0x78] sm:$0xf] }
  0x45   : > { %v6076_v61 = vcombine.low %v550_v36, %v560_v54  ;;  %v617_v4 = vrot.slane %v616_v48, 4  ;;  %v626_v5 = vor.u32 %v625_v39, %v621_v38  ;;  %v588_v11 = vrot.slane %v586_v50, 4  ;;  %v6092_v36 = vld [vmem:[%s5866_s21 + $0x7c] sm:$0xf] }
  0x46   : > { %v591_v13 = vrot.slane %v589_v55, 5  ;;  %v597_v15 = vrot.slane %v595_v57, 5  ;;  %v601_v18 = vrot.slane %v599_v58, 4  ;;  %v605_v19 = vshll.u32 %v6060_v42, 16 }
  0x47   : > { %8666 = vst [vmem:[#allocation14_spill] sm:$0xff] %v6076_v61  ;;  %1116 = vrot.lane.b32.xlu0 %v6076_v61, %s5751_s22  ;;  %v622_v23 = vsel %vm5904_vm2, %v617_v4, %v621_v38  ;;  %v627_v24 = vrot.slane %v626_v5, 4  ;;  %v658_v30 = vshrl.u32 %v6063_v47, 16  ;;  %v661_v31 = vshll.u32 %v6063_v47, 16  ;;  %v6101_v61 = vld [vmem:[%s5866_s21 + $0x80] sm:$0x1] }
  0x48   : > { %v592_v37 = vor.u32 %v591_v13, %v588_v11  ;;  %v602_v48 = vor.u32 %v601_v18, %v597_v15  ;;  %v607_v39 = vrot.slane %v605_v19, 5  ;;  %v667_v50 = vshll.u32 %v6067_v52, 16  ;;  %v6104_v11 = vld [vmem:[%s5866_s21 + $0x9c] sm:$0xf] }
  0x49   : > { %v632_v54 = vsel %vm5904_vm2, %v627_v24, %v631_v49  ;;  %v660_v55 = vrot.slane %v658_v30, 4  ;;  %v663_v57 = vrot.slane %v661_v31, 5  ;;  %v671_v38 = vshrl.u32 %v6067_v52, 16  ;;  %8668 = vst [vmem:[#allocation16_spill] sm:$0xff] %v6104_v11 }
  0x4a   : > { %v6098_v58 = vcombine.low %v622_v23, %v632_v54  ;;  %v593_v4 = vrot.slane %v592_v37, 4  ;;  %v603_v5 = vrot.slane %v602_v48, 4  ;;  %v669_v33 = vrot.slane %v667_v50, 5 }
  0x4b   : > { %v664_v13 = vor.u32 %v663_v57, %v660_v55  ;;  %v673_v18 = vrot.slane %v671_v38, 4  ;;  %v677_v19 = vshll.u32 %v6080_v20, 16  ;;  %v634_v49 = vshrl.u32 %v6083_v12, 16  ;;  %v6119_v55 = vld [vmem:[%s5866_s21 + $0xa0] sm:$0xf] }
  0x4c   : > { %8667 = vst [vmem:[#allocation15_spill] sm:$0xff] %v6098_v58  ;;  %1122 = vrot.lane.b32.xlu1 %v6098_v58, %s5751_s22  ;;  %v598_v23 = vsel %vm5904_vm2, %v593_v4, %v597_v15  ;;  %v608_v24 = vsel %vm5904_vm2, %v603_v5, %v607_v39  ;;  %v637_v30 = vshll.u32 %v6083_v12, 16  ;;  %v643_v31 = vshll.u32 %v6092_v36, 16  ;;  %8670 = vst [vmem:[#allocation18_spill] sm:$0xff] %v6119_v55  ;;  %v6123_v15 = vld [vmem:[%s5866_s21 + $0xa4] sm:$0x1] }
  0x4d   : > { %v6116_v37 = vcombine.low %v598_v23, %v608_v24  ;;  %v665_v48 = vrot.slane %v664_v13, 4  ;;  %v674_v50 = vor.u32 %v673_v18, %v669_v33  ;;  %v679_v54 = vrot.slane %v677_v19, 5  ;;  %8671 = vst [vmem:[#allocation19_spill] sm:$0xff] %v6123_v15  ;;  %v6126_v39 = vld [vmem:[%s5866_s21 + $0x90] sm:$0xf] }
  0x4e   : > { %v636_v57 = vrot.slane %v634_v49, 4  ;;  %v639_v38 = vrot.slane %v637_v30, 5  ;;  %v645_v58 = vrot.slane %v643_v31, 5  ;;  %v647_v17 = vshrl.u32 %v6092_v36, 16  ;;  %8672 = vst [vmem:[#allocation20_spill] sm:$0xff] %v6126_v39 }
  0x4f   : > { %8669 = vst [vmem:[#allocation17_spill] sm:$0xff] %v6116_v37  ;;  %1120 = vrot.lane.b32.xlu0 %v6116_v37, %s5751_s22  ;;  %v670_v4 = vsel %vm5904_vm2, %v665_v48, %v669_v33  ;;  %v675_v5 = vrot.slane %v674_v50, 4  ;;  %v653_v13 = vshll.u32 %v6101_v61, 16  ;;  %v706_v18 = vshrl.u32 %v6104_v11, 16  ;;  %v6140_v48 = vld [vmem:[%s5866_s21 + $0x94] sm:$0xf] }
  0x50   : > { %v640_v19 = vor.u32 %v639_v38, %v636_v57  ;;  %v649_v49 = vrot.slane %v647_v17, 4  ;;  %v709_v23 = vshll.u32 %v6104_v11, 16  ;;  %v715_v24 = vshll.u32 %v6119_v55, 16  ;;  %v6145_v38 = vld [vmem:[%s5866_s21 + $0x98] sm:$0x1] }
  0x51   : > { %v680_v30 = vsel %vm5904_vm2, %v675_v5, %v679_v54  ;;  %v655_v31 = vrot.slane %v653_v13, 5  ;;  %v708_v37 = vrot.slane %v706_v18, 4  ;;  %v719_v33 = vshrl.u32 %v6119_v55, 16  ;;  %v6150_v5 = vld [vmem:[%s5866_s21 + $0xb4] sm:$0xf] }
  0x52   : > { %v6142_v50 = vcombine.low %v670_v4, %v680_v30  ;;  %v641_v51 = vrot.slane %v640_v19, 4  ;;  %v650_v57 = vor.u32 %v649_v49, %v645_v58  ;;  %v711_v17 = vrot.slane %v709_v23, 5  ;;  %8674 = vst [vmem:[#allocation22_spill] sm:$0xff] %v6150_v5  ;;  %v6158_v49 = vld [vmem:[%s5866_s21 + $0xb8] sm:$0xf] }
  0x53   : > { %v717_v29 = vrot.slane %v715_v24, 5  ;;  %v721_v11 = vrot.slane %v719_v33, 4  ;;  %v725_v46 = vshll.u32 %v6123_v15, 16  ;;  %v682_v54 = vshrl.u32 %v6126_v39, 16  ;;  %8675 = vst [vmem:[#allocation23_spill] sm:$0xff] %v6158_v49 }
  0x54   : > { %8673 = vst [vmem:[#allocation21_spill] sm:$0xff] %v6142_v50  ;;  %1126 = vrot.lane.b32.xlu1 %v6142_v50, %s5751_s22  ;;  %v646_v4 = vsel %vm5904_vm2, %v641_v51, %v645_v58  ;;  %v651_v13 = vrot.slane %v650_v57, 4  ;;  %v712_v18 = vor.u32 %v711_v17, %v708_v37  ;;  %v685_v19 = vshll.u32 %v6126_v39, 16  ;;  %v6165_v37 = vld [vmem:[%s5866_s21 + $0xbc] sm:$0x1] }
  0x55   : > { %v722_v23 = vor.u32 %v721_v11, %v717_v29  ;;  %v727_v24 = vrot.slane %v725_v46, 5  ;;  %v684_v30 = vrot.slane %v682_v54, 4  ;;  %v691_v33 = vshll.u32 %v6140_v48, 16  ;;  %8676 = vst [vmem:[#allocation24_spill] sm:$0xff] %v6165_v37  ;;  %v6171_v54 = vld [vmem:[%s5866_s21 + $0xa8] sm:$0xf] }
  0x56   : > { %v656_v50 = vsel %vm5904_vm2, %v651_v13, %v655_v31  ;;  %v713_v15 = vrot.slane %v712_v18, 4  ;;  %v687_v51 = vrot.slane %v685_v19, 5  ;;  %v695_v58 = vshrl.u32 %v6140_v48, 16  ;;  %8678 = vst [vmem:[#allocation26_spill] sm:$0xff] %v6171_v54  ;;  %v6177_v13 = vld [vmem:[%s5866_s21 + $0xac] sm:$0xf] }
  0x57   : > { %v6167_v57 = vcombine.low %v646_v4, %v656_v50  ;;  %v723_v17 = vrot.slane %v722_v23, 4  ;;  %v693_v11 = vrot.slane %v691_v33, 5  ;;  %v701_v46 = vshll.u32 %v6145_v38, 16 }
  0x58   : > { %v718_v62 = vsel %vm5904_vm2, %v713_v15, %v717_v29  ;;  %v688_v55 = vor.u32 %v687_v51, %v684_v30  ;;  %v697_v39 = vrot.slane %v695_v58, 4  ;;  %v754_v31 = vshrl.u32 %v6150_v5, 16 }
  0x59   : > { %8677 = vst [vmem:[#allocation25_spill] sm:$0xff] %v6167_v57  ;;  %1124 = vrot.lane.b32.xlu0 %v6167_v57, %s5751_s22  ;;  %v728_v50 = vsel %vm5904_vm2, %v723_v17, %v727_v24  ;;  %v703_v4 = vrot.slane %v701_v46, 5  ;;  %v757_v18 = vshll.u32 %v6150_v5, 16  ;;  %v763_v19 = vshll.u32 %v6158_v49, 16 }
  0x5a   : > { %v6185_v23 = vcombine.low %v718_v62, %v728_v50  ;;  %v689_v29 = vrot.slane %v688_v55, 4  ;;  %v698_v15 = vor.u32 %v697_v39, %v693_v11  ;;  %v756_v30 = vrot.slane %v754_v31, 4  ;;  %v6196_v50 = vld [vmem:[%s5866_s21 + $0xb0] sm:$0x1] }
  0x5b   : > { %v759_v33 = vrot.slane %v757_v18, 5  ;;  %v765_v51 = vrot.slane %v763_v19, 5  ;;  %v767_v58 = vshrl.u32 %v6158_v49, 16  ;;  %v773_v57 = vshll.u32 %v6165_v37, 16 }
  0x5c   : > { %8679 = vst [vmem:[#allocation27_spill] sm:$0xff] %v6185_v23  ;;  %1130 = vrot.lane.b32.xlu1 %v6185_v23, %s5751_s22  ;;  %v694_v24 = vsel %vm5904_vm2, %v689_v29, %v693_v11  ;;  %v699_v17 = vrot.slane %v698_v15, 4  ;;  %v730_v62 = vshrl.u32 %v6171_v54, 16  ;;  %v733_v46 = vshll.u32 %v6171_v54, 16 }
  0x5d   : > { %v760_v55 = vor.u32 %v759_v33, %v756_v30  ;;  %v769_v39 = vrot.slane %v767_v58, 4  ;;  %v775_v31 = vrot.slane %v773_v57, 5  ;;  %v739_v18 = vshll.u32 %v6177_v13, 16 }
  0x5e   : > { %v704_v19 = vsel %vm5904_vm2, %v699_v17, %v703_v4  ;;  %v732_v37 = vrot.slane %v730_v62, 4  ;;  %v735_v23 = vrot.slane %v733_v46, 5  ;;  %v743_v5 = vshrl.u32 %v6177_v13, 16 }
  0x5f   : > { %v6202_v11 = vcombine.low %v694_v24, %v704_v19  ;;  %v761_v29 = vrot.slane %v760_v55, 4  ;;  %v770_v15 = vor.u32 %v769_v39, %v765_v51  ;;  %v741_v49 = vrot.slane %v739_v18, 5  ;;  %v5079_v39 = vld [vmem:[%s8593_s1] sm:$0xff]  }
  0x60   : > { %v736_v54 = vor.u32 %v735_v23, %v732_v37  ;;  %v745_v30 = vrot.slane %v743_v5, 4  ;;  %v749_v57 = vshll.u32 %v6196_v50, 16  ;;  %v4595_v4 = vrot.slane %v5915_v40, 9  ;;  %v5078_v23 = vld [vmem:[%s8593_s1 + $0x40] sm:$0xff]  }
  0x61   : > { %1128 = vrot.lane.b32.xlu0 %v6202_v11, %s5751_s22  ;;  %v766_v58 = vsel %vm5904_vm2, %v761_v29, %v765_v51  ;;  %v771_v24 = vrot.slane %v770_v15, 4  ;;  %v837_v37 = vrot.slane %v5923_v45, 5  ;;  %v840_v5 = vrot.slane %v5929_v53, 5  ;;  %4811 = vmatprep.subr.bf16.mxu0 %v5078_v23 }
  0x62   : > { %v737_v17 = vrot.slane %v736_v54, 4  ;;  %v746_v62 = vor.u32 %v745_v30, %v741_v49  ;;  %v751_v46 = vrot.slane %v749_v57, 5  ;;  %v4594_v55 = vrot.slane %v5882_v7, 9  ;;  %4986 = vmatprep.subr.bf16.mxu1 %v5078_v23  ;;  %4812 = vmatpush3.bf16.msra.mxu0 %v5079_v39 }
  0x63   : > { %v776_v51 = vsel %vm5904_vm2, %v771_v24, %v775_v31  ;;  %v838_v18 = vsel %vm6207_vm5, %v4595_v4, %v837_v37  ;;  %v839_v53 = vrot.slane %v837_v37, 4  ;;  %v830_v19 = vrot.slane %v5886_v9, 5  ;;  %4994 = vmatpush3.bf16.msra.mxu1 %v5079_v39  ;;  %v5080_v4 = vld [vmem:[%s8593_s1 + $0x48] sm:$0xff]  }
  0x64   : > { %v6230_v54 = vcombine.low %v766_v58, %v776_v51  ;;  %v742_v7 = vsel %vm5904_vm2, %v737_v17, %v741_v49  ;;  %v747_v29 = vrot.slane %v746_v62, 4  ;;  %v833_v15 = vrot.slane %v5889_v10, 5  ;;  %4813 = vmatprep.subr.bf16.mxu0 %v5080_v4  ;;  %4987 = vmatprep.subr.bf16.mxu1 %v5080_v4  ;;  %v5082_v51 = vld [vmem:[%s8593_s1 + $0x50] sm:$0xff]  }
  0x65   : > { %v841_v31 = vsel %vm6207_vm5, %v839_v53, %v840_v5  ;;  %v831_v30 = vsel %vm6207_vm5, %v4594_v55, %v830_v19  ;;  %v832_v57 = vrot.slane %v830_v19, 4  ;;  %v4597_v9 = vrot.slane %v5893_v16, 9  ;;  %v5081_v16 = vld [vmem:[%s8593_s1 + $0x8] sm:$0xff]  }
  0x66   : > { %1134 = vrot.lane.b32.xlu1 %v6230_v54, %s5751_s22  ;;  %v752_v10 = vsel %vm5904_vm2, %v747_v29, %v751_v46  ;;  %v6247_v49 = vcombine.low %v838_v18, %v841_v31  ;;  %v851_v58 = vrot.slane %v5900_v25, 5  ;;  %v854_v24 = vrot.slane %v5911_v35, 5  ;;  %4814 = vmatpush3.bf16.msra.mxu0 %v5081_v16 }
  0x67   : > { %v6254_v37 = vcombine.low %v742_v7, %v752_v10  ;;  %v834_v5 = vsel %vm6207_vm5, %v832_v57, %v833_v15  ;;  %v4596_v23 = vrot.slane %v5869_v0, 9  ;;  %v844_v17 = vrot.slane %v5872_v1, 5  ;;  %4995 = vmatpush3.bf16.msra.mxu1 %v5081_v16  ;;  %4815 = vmatprep.subr.bf16.mxu0 %v5082_v51 }
  0x68   : > { %v4644_v62 = vcombine.low %v831_v30, %v834_v5  ;;  %v852_v25 = vsel %vm6207_vm5, %v4597_v9, %v851_v58  ;;  %v853_v35 = vrot.slane %v851_v58, 4  ;;  %v847_v46 = vrot.slane %v5875_v2, 5  ;;  %4988 = vmatprep.subr.bf16.mxu1 %v5082_v51 }
  0x69   : > { %1132 = vrot.lane.b32.xlu0 %v6254_v37, %s5751_s22  ;;  %v845_v55 = vsel %vm6207_vm5, %v4596_v23, %v844_v17  ;;  %v846_v0 = vrot.slane %v844_v17, 4  ;;  %v4599_v1 = vrot.slane %v5939_v59, 9  ;;  %v865_v39 = vrot.slane %v5944_v3, 5  ;;  %v5083_v59 = vld [vmem:[%s8593_s1 + $0x10] sm:$0xff]  }
  0x6a   : > { %1186 = vrot.lane.b32.xlu1 %v6247_v49, %s5752_s23  ;;  %v855_v2 = vsel %vm6207_vm5, %v853_v35, %v854_v24  ;;  %v868_v18 = vrot.slane %v5951_v14, 5  ;;  %v4598_v53 = vrot.slane %v5959_v21, 9  ;;  %v858_v19 = vrot.slane %v5964_v28, 5  ;;  %4816 = vmatpush3.bf16.msra.mxu0 %v5083_v59  ;;  %v5084_v24 = vld [vmem:[%s8593_s1 + $0x58] sm:$0xff]  }
  0x6b   : > { %v6282_v3 = vcombine.low %v852_v25, %v855_v2  ;;  %v848_v7 = vsel %vm6207_vm5, %v846_v0, %v847_v46  ;;  %v866_v29 = vsel %vm6207_vm5, %v4599_v1, %v865_v39  ;;  %v867_v15 = vrot.slane %v865_v39, 4  ;;  %4996 = vmatpush3.bf16.msra.mxu1 %v5083_v59  ;;  %4817 = vmatprep.subr.bf16.mxu0 %v5084_v24 }
  0x6c   : > { %v6288_v14 = vcombine.low %v845_v55, %v848_v7  ;;  %v859_v31 = vsel %vm6207_vm5, %v4598_v53, %v858_v19  ;;  %v860_v30 = vrot.slane %v858_v19, 4  ;;  %v861_v57 = vrot.slane %v5975_v41, 5  ;;  %4989 = vmatprep.subr.bf16.mxu1 %v5084_v24  ;;  %v5089_v24 = vld [vmem:[%s8593_s1 + $0x28] sm:$0xff]  }
  0x6d   : > { %1184 = vrot.lane.b32.xlu0 %v4644_v62, %s5752_s23  ;;  %v869_v9 = vsel %vm6207_vm5, %v867_v15, %v868_v18  ;;  %v4601_v4 = vrot.slane %v5980_v44, 9  ;;  %v879_v10 = vrot.slane %v5987_v60, 5  ;;  %v882_v58 = vrot.slane %v5995_v6, 5  ;;  %v5085_v6 = vld [vmem:[%s8593_s1 + $0x18] sm:$0xff]  }
  0x6e   : > { %1190 = vrot.lane.b32.xlu1 %v6282_v3, %s5752_s23  ;;  %v6304_v41 = vcombine.low %v866_v29, %v869_v9  ;;  %v862_v16 = vsel %vm6207_vm5, %v860_v30, %v861_v57  ;;  %v4600_v5 = vrot.slane %v5998_v8, 9  ;;  %v872_v23 = vrot.slane %v6011_v27, 5  ;;  %4818 = vmatpush3.bf16.msra.mxu0 %v5085_v6  ;;  %v5088_v9 = vld [vmem:[%s8593_s1 + $0x68] sm:$0xff]  }
  0x6f   : > { %v880_v17 = vsel %vm6207_vm5, %v4601_v4, %v879_v10  ;;  %v881_v62 = vrot.slane %v879_v10, 4  ;;  %v875_v25 = vrot.slane %v6019_v34, 5  ;;  %v6316_v35 = vcombine.low %v859_v31, %v862_v16  ;;  %4997 = vmatpush3.bf16.msra.mxu1 %v5085_v6 }
  0x70   : > { %v874_v46 = vrot.slane %v872_v23, 4  ;;  %v4603_v55 = vrot.slane %v6023_v43, 9  ;;  %v893_v0 = vrot.slane %v6033_v56, 5  ;;  %v896_v39 = vrot.slane %v6036_v63, 5  ;;  %v5086_v43 = vld [vmem:[%s8593_s1 + $0x60] sm:$0xff]  }
  0x71   : > { %1188 = vrot.lane.b32.xlu0 %v6288_v14, %s5752_s23  ;;  %v883_v1 = vsel %vm6207_vm5, %v881_v62, %v882_v58  ;;  %v4602_v34 = vrot.slane %v6046_v22, 9  ;;  %v886_v51 = vrot.slane %v6053_v32, 5  ;;  %v873_v2 = vsel %vm6207_vm5, %v4600_v5, %v872_v23  ;;  %v5087_v22 = vld [vmem:[%s8593_s1 + $0x20] sm:$0xff]   ;;  %4819 = vmatprep.subr.bf16.mxu0 %v5086_v43 }
  0x72   : > { %1194 = vrot.lane.b32.xlu1 %v6304_v41, %s5752_s23  ;;  %v6332_v56 = vcombine.low %v880_v17, %v883_v1  ;;  %v876_v18 = vsel %vm6207_vm5, %v874_v46, %v875_v25  ;;  %v895_v63 = vrot.slane %v893_v0, 4  ;;  %v894_v32 = vsel %vm6207_vm5, %v4603_v55, %v893_v0  ;;  %4990 = vmatprep.subr.bf16.mxu1 %v5086_v43  ;;  %v8682_v62 = vld [vmem:[#allocation20_spill] sm:$0xff]  ;;  %v5090_v46 = vld [vmem:[%s8593_s1 + $0x70] sm:$0xff]  }
  0x73   : > { %v888_v53 = vrot.slane %v886_v51, 4  ;;  %v889_v19 = vrot.slane %v6060_v42, 5  ;;  %v4605_v7 = vrot.slane %v6063_v47, 9  ;;  %v907_v29 = vrot.slane %v6067_v52, 5  ;;  %4820 = vmatpush3.bf16.msra.mxu0 %v5087_v22  ;;  %4998 = vmatpush3.bf16.msra.mxu1 %v5087_v22  ;;  %v8684_v43 = vld [vmem:[#allocation22_spill] sm:$0xff] }
  0x74   : > { %v897_v59 = vsel %vm6207_vm5, %v895_v63, %v896_v39  ;;  %v910_v15 = vrot.slane %v6080_v20, 5  ;;  %v6351_v31 = vcombine.low %v873_v2, %v876_v18  ;;  %v887_v42 = vsel %vm6207_vm5, %v4602_v34, %v886_v51  ;;  %4821 = vmatprep.subr.bf16.mxu0 %v5088_v9  ;;  %4991 = vmatprep.subr.bf16.mxu1 %v5088_v9  ;;  %v5091_v34 = vld [vmem:[%s8593_s1 + $0x30] sm:$0xff]   ;;  %v8683_v51 = vld [vmem:[#allocation23_spill] sm:$0xff] }
  0x75   : > { %1192 = vrot.lane.b32.xlu0 %v6316_v35, %s5752_s23  ;;  %v4604_v30 = vrot.slane %v6083_v12, 9  ;;  %v900_v57 = vrot.slane %v6092_v36, 5  ;;  %v6362_v20 = vcombine.low %v894_v32, %v897_v59  ;;  %v890_v4 = vsel %vm6207_vm5, %v888_v53, %v889_v19  ;;  %v8685_v18 = vld [vmem:[#allocation26_spill] sm:$0xff] }
  0x76   : > { %1198 = vrot.lane.b32.xlu1 %v6332_v56, %s5752_s23  ;;  %v909_v10 = vrot.slane %v907_v29, 4  ;;  %v903_v58 = vrot.slane %v6101_v61, 5  ;;  %v908_v16 = vsel %vm6207_vm5, %v4605_v7, %v907_v29  ;;  %v914_v6 = vrot.slane %v6140_v48, 5 }
  0x77   : > { %v902_v5 = vrot.slane %v900_v57, 4  ;;  %4822 = vmatpush3.bf16.msra.mxu0 %v5089_v24  ;;  %4999 = vmatpush3.bf16.msra.mxu1 %v5089_v24  ;;  %v6377_v61 = vcombine.low %v887_v42, %v890_v4  ;;  %v901_v17 = vsel %vm6207_vm5, %v4604_v30, %v900_v57  ;;  %v4606_v25 = vrot.slane %v8682_v62, 9  ;;  %v8686_v42 = vld [vmem:[#allocation24_spill] sm:$0xff] }
  0x78   : > { %v911_v23 = vsel %vm6207_vm5, %v909_v10, %v910_v15  ;;  %v916_v1 = vrot.slane %v914_v6, 4  ;;  %v917_v39 = vrot.slane %v6145_v38, 5  ;;  %v6397_v2 = vcombine.low %v8684_v43, %v8683_v51  ;;  %4823 = vmatprep.subr.bf16.mxu0 %v5090_v46  ;;  %4992 = vmatprep.subr.bf16.mxu1 %v5090_v46  ;;  %v5611_v46 = vld [vmem:[%s5866_s21 + $0x18] sm:$0xf] }
  0x79   : > { %1196 = vrot.lane.b32.xlu0 %v6351_v31, %s5752_s23  ;;  %v6387_v55 = vcombine.low %v908_v16, %v911_v23  ;;  %v904_v0 = vsel %vm6207_vm5, %v902_v5, %v903_v58  ;;  %v4608_v63 = vrot.slane %v8685_v18, 9  ;;  %v6402_v22 = vcombine.low %v5915_v40, %v5923_v45  ;;  %v5092_v40 = vld [vmem:[%s8593_s1 + $0x78] sm:$0xff]   ;;  %v8687_v23 = vld [vmem:[#allocation18_spill] sm:$0xff] }
  0x7a   : > { %1202 = vrot.lane.b32.xlu1 %v6362_v20, %s5752_s23  ;;  %v928_v32 = vrot.slane %v6177_v13, 5  ;;  %v6407_v38 = vcombine.low %v901_v17, %v904_v0  ;;  %v915_v53 = vsel %vm6207_vm5, %v4606_v25, %v914_v6  ;;  %v931_v19 = vrot.slane %v6196_v50, 5  ;;  %v5093_v50 = vld [vmem:[%s8593_s1 + $0x38] sm:$0xff]   ;;  %v8688_v25 = vld [vmem:[#allocation10_spill] sm:$0xff] }
  0x7b   : > { %4824 = vmatpush3.bf16.msra.mxu0 %v5091_v34  ;;  %5000 = vmatpush3.bf16.msra.mxu1 %v5091_v34  ;;  %v4609_v59 = vrot.slane %v8684_v43, 9  ;;  %v918_v45 = vsel %vm6207_vm5, %v916_v1, %v917_v39  ;;  %v935_v15 = vrot.slane %v8683_v51, 5  ;;  %v938_v30 = vrot.slane %v8686_v42, 5  ;;  %v5612_v0 = vld [vmem:[%s5866_s21 + $0x1c] sm:$0xf] }
  0x7c   : > { %v929_v7 = vsel %vm6207_vm5, %v4608_v63, %v928_v32  ;;  %v930_v29 = vrot.slane %v928_v32, 4  ;;  %4825 = vmatprep.subr.bf16.mxu0 %v5092_v40  ;;  %4993 = vmatprep.subr.bf16.mxu1 %v5092_v40  ;;  %v6433_v10 = vcombine.low %v915_v53, %v918_v45  ;;  %v6447_v5 = vcombine.low %v6063_v47, %v6067_v52  ;;  %v8689_v52 = vld [vmem:[#allocation8_spill] sm:$0xff] }
  0x7d   : > { %1200 = vrot.lane.b32.xlu0 %v6377_v61, %s5752_s23  ;;  %v936_v9 = vsel %vm6207_vm5, %v4609_v59, %v935_v15  ;;  %v937_v4 = vrot.slane %v935_v15, 4  ;;  %v921_v6 = vrot.slane %v8687_v23, 5  ;;  %v6454_v17 = vcombine.low %v6083_v12, %v6092_v36  ;;  %v8691_v36 = vld [vmem:[#allocation19_spill] sm:$0xff]  ;;  %v5616_v15 = vld [vmem:[%s5866_s21 + $0x40] sm:$0xf] }
  0x7e   : > { %1206 = vrot.lane.b32.xlu1 %v6387_v55, %s5752_s23  ;;  %v932_v57 = vsel %vm6207_vm5, %v930_v29, %v931_v19  ;;  %v6460_v1 = vcombine.low %v5611_v46, %v5612_v0  ;;  %v6464_v47 = vcombine.low %v8682_v62, %v6140_v48  ;;  %v924_v34 = vrot.slane %v8691_v36, 5  ;;  %v8692_v48 = vld [vmem:[#allocation27_spill] sm:$0xff]  ;;  %v8693_v19 = vld [vmem:[#allocation9_spill] sm:$0xff]  ;;  %v6532_v42 = vld [vmem:[%s5866_s21 + $0xc4] sm:$0xf] }
  0x7f   : > { %4826 = vmatpush3.bf16.msra.mxu0 %v5093_v50  ;;  %5001 = vmatpush3.bf16.msra.mxu1 %v5093_v50  ;;  %v6435_v58 = vcombine.low %v929_v7, %v932_v57  ;;  %v939_v24 = vsel %vm6207_vm5, %v937_v4, %v938_v30  ;;  %v923_v12 = vrot.slane %v921_v6, 4  ;;  %v6480_v62 = vcombine.low %v8685_v18, %v6177_v13  ;;  %v5613_v13 = vld [vmem:[%s5866_s21 + $0x24] sm:$0xf]  ;;  %v5614_v18 = vld [vmem:[%s5866_s21 + $0x28] sm:$0xf] }
  0x80   : > { %v6441_v16 = vcombine.low %v936_v9, %v939_v24  ;;  %v4615_v53 = vcombine.low %v5613_v13, %v5614_v18  ;;  %v5615_v29 = vld [vmem:[%s5866_s21 + $0x3c] sm:$0xf]  ;;  %v4616_v24 = vcombine.low %v5959_v21, %v5964_v28  ;;  %v6556_v36 = vld [vmem:[%s5866_s21 + $0xc8] sm:$0x1]  ;;  %v6560_v21 = vcombine.low %v5980_v44, %v5987_v60  ;;  %v8694_v60 = vld [vmem:[#allocation12_spill] sm:$0xff] }
  0x81   : > { %1204 = vrot.lane.b32.xlu0 %v6407_v38, %s5752_s23  ;;  %v925_v63 = vsel %vm6207_vm5, %v923_v12, %v924_v34  ;;  %v6524_v50 = vcombine.low %v5615_v29, %v5616_v15  ;;  %v6569_v13 = vcombine.low %v5998_v8, %v6011_v27  ;;  %v387_v8 = vld [vmem:[%s5866_s21 + $0xcc] sm:$0xf]  ;;  %v388_v27 = vld [vmem:[%s5866_s21 + $0xd0] sm:$0xf] }
  0x82   : > { %1219 = vrot.lane.b32.xlu1 %v6402_v22, %s5753_s25 }
  0x85   : > { %1208 = vrot.lane.b32.xlu0 %v6433_v10, %s5752_s23 }
  0x86   : > { %1289 = vrot.lane.b32.xlu1 %v6247_v49, %s5754_s26  ;;  %v8690_v49 = vld [vmem:[#allocation16_spill] sm:$0xff] }
  0x87   : > { %v4607_v39 = vrot.slane %v8690_v49, 9  ;;  %v6474_v51 = vcombine.low %v8690_v49, %v8687_v23 }
  0x89   : > { %1254 = vrot.lane.b32.xlu0 %v8688_v25, %s5755_s10  ;;  %v922_v43 = vsel %vm6207_vm5, %v4607_v39, %v921_v6  ;;  %v954_v6 = vshrl.u32 %v6532_v42, 16  ;;  %v950_v25 = vshll.u32 %v6532_v42, 16 }
  0x8a   : > { %1359 = vrot.lane.b32.xlu1 %v8689_v52, %s5756_s12  ;;  %v6488_v32 = vcombine.low %v922_v43, %v925_v63  ;;  %v960_v43 = vshll.u32 %v6556_v36, 16 }
  0x8b   : > { %v952_v49 = vrot.slane %v950_v25, 5  ;;  %v956_v39 = vrot.slane %v954_v6, 4  ;;  %v978_v6 = vshll.u32 %v387_v8, 16  ;;  %v988_v25 = vshrl.u32 %v388_v27, 16 }
  0x8d   : > { %1324 = vrot.lane.b32.xlu0 %v6460_v1, %s5757_s13  ;;  %v957_v34 = vor.u32 %v956_v39, %v952_v49  ;;  %v4611_v39 = vrot.slane %v387_v8, 9 }
  0x8e   : > { %1278 = vrot.lane.b32.xlu1 %v8692_v48, %s5755_s10 }
  0x91   : > { %1243 = vrot.lane.b32.xlu0 %v6474_v51, %s5753_s25 }
  0x92   : > { %1348 = vrot.lane.b32.xlu1 %v6480_v62, %s5757_s13 }
  0x95   : > { %1313 = vrot.lane.b32.xlu0 %v6488_v32, %s5754_s26 }
  0x96   : > { %1221 = vrot.lane.b32.xlu1 %v6460_v1, %s5753_s25 }
  0x99   : > { %1383 = vrot.lane.b32.xlu0 %v6254_v37, %s5756_s12 }
  0x9a   : > { %1291 = vrot.lane.b32.xlu1 %v6288_v14, %s5754_s26 }
  0x9c   : > { %v6506_v59 = vpop.permute.xlu1 %1108 }
  0x9d   : > { %1256 = vrot.lane.b32.xlu0 %v8689_v52, %s5755_s10 }
  0x9e   : > { %1361 = vrot.lane.b32.xlu1 %v8693_v19, %s5756_s12 }
  0xa0   : > { %v6513_v45 = vpop.permute.xlu0 %1104 }
  0xa1   : > { %1326 = vrot.lane.b32.xlu0 %v4615_v53, %s5757_s13 }
  0xa2   : > { %1280 = vrot.lane.b32.xlu1 %v6254_v37, %s5755_s10  ;;  %v6529_v37 = vld [vmem:[%s5866_s21 + $0xc0] sm:$0xf] }
  0xa3   : > { %v941_v9 = vshrl.u32 %v6529_v37, 16  ;;  %v944_v23 = vshll.u32 %v6529_v37, 16  ;;  %v4660_v15 = vcombine.low %v6529_v37, %v6532_v42 }
  0xa4   : > { %v1111_v40 = vpop.permute.xlu1 %1110 }
  0xa5   : > { %1245 = vrot.lane.b32.xlu0 %v6480_v62, %s5753_s25  ;;  %v6516_v7 = vsel %vm1426_vm6, %v4615_v53, %v1111_v40  ;;  %v943_v46 = vrot.slane %v941_v9, 4  ;;  %v946_v52 = vrot.slane %v944_v23, 5  ;;  %v962_v40 = vrot.slane %v960_v43, 5 }
  0xa6   : > { %1350 = vrot.lane.b32.xlu1 %v6397_v2, %s5757_s13  ;;  %v975_v23 = vshrl.u32 %v387_v8, 16  ;;  %v980_v43 = vrot.slane %v978_v6, 5 }
  0xa7   : > { %v947_v28 = vor.u32 %v946_v52, %v943_v46  ;;  %v984_v46 = vshll.u32 %v388_v27, 16  ;;  %v389_v52 = vld [vmem:[%s5866_s21 + $0xd4] sm:$0x1] }
  0xa9   : > { %1315 = vrot.lane.b32.xlu0 %v6435_v58, %s5754_s26 }
  0xaa   : > { %1385 = vrot.lane.b32.xlu1 %v6230_v54, %s5756_s12  ;;  %v6534_v30 = vpop.permute.xlu0 %1106 }
  0xac   : > { %v1115_v57 = vpop.permute.xlu1 %1114 }
  0xad   : > { %1210 = vrot.lane.b32.xlu0 %v6488_v32, %s5752_s23  ;;  %v6541_v4 = vsel %vm1426_vm6, %v6524_v50, %v1115_v57 }
  0xae   : > { %1258 = vrot.lane.b32.xlu1 %v8693_v19, %s5755_s10  ;;  %v958_v19 = vrot.slane %v957_v34, 4  ;;  %v977_v34 = vrot.slane %v975_v23, 4  ;;  %v994_v23 = vshll.u32 %v389_v52, 16 }
  0xb0   : > { %v963_v9 = vsel %vm5904_vm2, %v958_v19, %v962_v40  ;;  %v969_v19 = vrot.slane %v6532_v42, 5  ;;  %v8695_v42 = vld [vmem:[#allocation11_spill] sm:$0xff] }
  0xb1   : > { %1223 = vrot.lane.b32.xlu0 %v4615_v53, %s5753_s25  ;;  %v1113_v0 = vpop.permute.xlu0 %1112  ;;  %v948_v53 = vrot.slane %v947_v28, 4  ;;  %v1006_v28 = vrot.slane %v389_v52, 5  ;;  %v6625_v52 = vld [vmem:[%s8593_s1 + $0x80] sm:$0xff]  }
  0xb2   : > { %1328 = vrot.lane.b32.xlu1 %v4616_v24, %s5757_s13  ;;  %v6553_v12 = vsel %vm1426_vm6, %v4616_v24, %v1113_v0  ;;  %v1003_v0 = vrot.slane %v388_v27, 5  ;;  %4944 = vmatprep.subr.bf16.mxu1 %v6625_v52 }
  0xb3   : > { %v953_v57 = vsel %vm5904_vm2, %v948_v53, %v952_v49  ;;  %v990_v49 = vrot.slane %v988_v25, 4 }
  0xb4   : > { %v6606_v40 = vsel %vm6207_vm5, %v4611_v39, %v1003_v0  ;;  %v972_v39 = vrot.slane %v6556_v36, 5 }
  0xb5   : > { %1293 = vrot.lane.b32.xlu0 %v6282_v3, %s5754_s26 }
  0xb6   : > { %1247 = vrot.lane.b32.xlu1 %v6397_v2, %s5753_s25  ;;  %v1119_v63 = vpop.permute.xlu1 %1118 }
  0xb7   : > { %v6573_v44 = vsel %vm1426_vm6, %v6560_v21, %v1119_v63  ;;  %v986_v63 = vrot.slane %v984_v46, 5  ;;  %v4610_v46 = vrot.slane %v6529_v37, 9  ;;  %v4663_v37 = vcombine.low %v387_v8, %v388_v27 }
  0xb9   : > { %1363 = vrot.lane.b32.xlu0 %v8694_v60, %s5756_s12  ;;  %v1117_v18 = vpop.permute.xlu0 %1116  ;;  %v970_v36 = vsel %vm6207_vm5, %v4610_v46, %v969_v19 }
  0xba   : > { %1317 = vrot.lane.b32.xlu1 %v6441_v16, %s5754_s26  ;;  %v6581_v29 = vsel %vm1426_vm6, %v6569_v13, %v1117_v18  ;;  %v1005_v18 = vrot.slane %v1003_v0, 4  ;;  %v971_v0 = vrot.slane %v969_v19, 4 }
  0xbd   : > { %1282 = vrot.lane.b32.xlu0 %v6230_v54, %s5755_s10  ;;  %v4661_v54 = vcombine.low %v953_v57, %v963_v9  ;;  %v981_v57 = vor.u32 %v980_v43, %v977_v34  ;;  %v991_v9 = vor.u32 %v990_v49, %v986_v63  ;;  %v996_v43 = vrot.slane %v994_v23, 5 }
  0xbe   : > { %1212 = vrot.lane.b32.xlu1 %v6435_v58, %s5752_s23  ;;  %v6601_v53 = vpop.permute.xlu1 %1122 }
  0xbf   : > { %v992_v34 = vrot.slane %v991_v9, 4 }
  0xc1   : > { %1352 = vrot.lane.b32.xlu0 %v4660_v15, %s5757_s13  ;;  %v6616_v25 = vpop.permute.xlu0 %1120  ;;  %v997_v9 = vsel %vm5904_vm2, %v992_v34, %v996_v43  ;;  %v8697_v34 = vld [vmem:[#allocation13_spill] sm:$0xff] }
  0xc2   : > { %1225 = vrot.lane.b32.xlu1 %v4616_v24, %s5753_s25  ;;  %v6610_v24 = vsel %vm6207_vm5, %v1005_v18, %v1006_v28  ;;  %v982_v28 = vrot.slane %v981_v57, 4 }
  0xc4   : > { %v987_v57 = vsel %vm5904_vm2, %v982_v28, %v986_v63 }
  0xc5   : > { %1387 = vrot.lane.b32.xlu0 %v4661_v54, %s5756_s12  ;;  %v4664_v27 = vcombine.low %v987_v57, %v997_v9  ;;  %v5618_v57 = vld [vmem:[%s5866_s21 + $0x64] sm:$0xf] }
  0xc6   : > { %1295 = vrot.lane.b32.xlu1 %v6316_v35, %s5754_s26  ;;  %v6627_v49 = vpop.permute.xlu1 %1126 }
  0xc9   : > { %1260 = vrot.lane.b32.xlu0 %v8694_v60, %s5755_s10  ;;  %v973_v60 = vsel %vm6207_vm5, %v971_v0, %v972_v39  ;;  %v8696_v0 = vld [vmem:[#allocation14_spill] sm:$0xff] }
  0xca   : > { %1365 = vrot.lane.b32.xlu1 %v8695_v42, %s5756_s12  ;;  %v6644_v23 = vcombine.low %v970_v36, %v973_v60  ;;  %v5617_v60 = vld [vmem:[%s5866_s21 + $0x60] sm:$0xf] }
  0xcb   : > { %v6637_v18 = vpop.permute.xlu0 %1124  ;;  %v6716_v9 = vcombine.low %v5617_v60, %v5618_v57 }
  0xcd   : > { %1330 = vrot.lane.b32.xlu0 %v6524_v50, %s5757_s13 }
  0xce   : > { %1284 = vrot.lane.b32.xlu1 %v4661_v54, %s5755_s10  ;;  %v6647_v8 = vpop.permute.xlu1 %1130 }
  0xd1   : > { %1249 = vrot.lane.b32.xlu0 %v4660_v15, %s5753_s25 }
  0xd2   : > { %1354 = vrot.lane.b32.xlu1 %v4663_v37, %s5757_s13 }
  0xd3   : > { %v6651_v33 = vpop.permute.xlu0 %1128 }
  0xd5   : > { %1319 = vrot.lane.b32.xlu0 %v6644_v23, %s5754_s26 }
  0xd6   : > { %1389 = vrot.lane.b32.xlu1 %v4664_v27, %s5756_s12 }
  0xd8   : > { %v1135_v54 = vpop.permute.xlu1 %1134 }
  0xd9   : > { %1214 = vrot.lane.b32.xlu0 %v6441_v16, %s5752_s23  ;;  %v6658_v26 = vsel %vm1426_vm6, %v6397_v2, %v1135_v54  ;;  %s5758_s23 = smov 32   ;;  %v5619_v54 = vld [vmem:[%s5866_s21] sm:$0xf] }
  0xda   : > { %1262 = vrot.lane.b32.xlu1 %v8695_v42, %s5755_s10 }
  0xdb   : > { %v6662_v15 = vpop.permute.xlu0 %1132 }
  0xdc   : > { %v6664_v63 = vpop.permute.xlu1 %1186 }
  0xdd   : > { %1227 = vrot.lane.b32.xlu0 %v6524_v50, %s5753_s25 }
  0xde   : > { %1332 = vrot.lane.b32.xlu1 %v6569_v13, %s5757_s13 }
  0xdf   : > { %v1185_v19 = vpop.permute.xlu0 %1184 }
  0xe0   : > { %v6670_v46 = vpop.permute.xlu1 %1190 }
  0xe1   : > { %1297 = vrot.lane.b32.xlu0 %v6304_v41, %s5754_s26 }
  0xe2   : > { %1394 = vrot.lane.b32.xlu1 %v6288_v14, %s5758_s23 }
  0xe3   : > { %v6676_v2 = vpop.permute.xlu0 %1188 }
  0xe4   : > { %v6678_v42 = vpop.permute.xlu1 %1194 }
  0xe5   : > { %1367 = vrot.lane.b32.xlu0 %v8696_v0, %s5756_s12 }
  0xe6   : > { %1264 = vrot.lane.b32.xlu1 %v8696_v0, %s5755_s10  ;;  %v5620_v0 = vld [vmem:[%s5866_s21 + $0x4] sm:$0xf] }
  0xe7   : > { %v6684_v50 = vpop.permute.xlu0 %1192 }
  0xe8   : > { %v6686_v39 = vpop.permute.xlu1 %1198 }
  0xe9   : > { %1229 = vrot.lane.b32.xlu0 %v6569_v13, %s5753_s25 }
  0xea   : > { %1299 = vrot.lane.b32.xlu1 %v6351_v31, %s5754_s26 }
  0xeb   : > { %v6692_v14 = vpop.permute.xlu0 %1196 }
  0xec   : > { %v6694_v28 = vpop.permute.xlu1 %1202 }
  0xed   : > { %1396 = vrot.lane.b32.xlu0 %v6282_v3, %s5758_s23 }
  0xee   : > { %1369 = vrot.lane.b32.xlu1 %v8697_v34, %s5756_s12 }
  0xef   : > { %v6700_v43 = vpop.permute.xlu0 %1200 }
  0xf0   : > { %v6702_v37 = vpop.permute.xlu1 %1206 }
  0xf1   : > { %8698 = vst [vmem:[#allocation20_spill] sm:$0xff] %v6702_v37  ;;  %1334 = vrot.lane.b32.xlu0 %v6560_v21, %s5757_s13  ;;  %v8699_v37 = vld [vmem:[#allocation17_spill] sm:$0xff] }
  0xf2   : > { %1231 = vrot.lane.b32.xlu1 %v6560_v21, %s5753_s25 }
  0xf3   : > { %v6708_v13 = vpop.permute.xlu0 %1204 }
  0xf4   : > { %v1220_v36 = vpop.permute.xlu1 %1219 }
  0xf5   : > { %1398 = vrot.lane.b32.xlu0 %v6316_v35, %s5758_s23  ;;  %v4612_v35 = vcombine.low %v5619_v54, %v5620_v0 }
  0xf6   : > { %1400 = vrot.lane.b32.xlu1 %v6304_v41, %s5758_s23 }
  0xf7   : > { %v1209_v3 = vpop.permute.xlu0 %1208  ;;  %v1429_v57 = vsel %vm1426_vm6, %v4612_v35, %v6513_v45 }
  0xf8   : > { %v1290_v27 = vpop.permute.xlu1 %1289  ;;  %v1477_v0 = vsel %vm1475_vm10, %v1429_v57, %v1185_v19  ;;  %v5622_v57 = vld [vmem:[%s5866_s21 + $0x70] sm:$0xf] }
  0xf9   : > { %1266 = vrot.lane.b32.xlu0 %v8697_v34, %s5755_s10 }
  0xfa   : > { %1336 = vrot.lane.b32.xlu1 %v6716_v9, %s5757_s13 }
  0xfb   : > { %v1255_v21 = vpop.permute.xlu0 %1254 }
  0xfc   : > { %v1559_v6 = vsel %vm1557_vm7, %v1220_v36, %v1255_v21  ;;  %v6725_v41 = vpop.permute.xlu1 %1359 }
  0xfd   : > { %1301 = vrot.lane.b32.xlu0 %v6332_v56, %s5754_s26  ;;  %v1592_v34 = vsel %vm1590_vm8, %v1559_v6, %v1290_v27  ;;  %v1510_v6 = vsel %vm1508_vm12, %v1477_v0, %v1220_v36  ;;  %v5621_v36 = vld [vmem:[%s5866_s21 + $0x6c] sm:$0xf]  ;;  %v1465_v0 = vsel %vm1426_vm6, %v6464_v47, %v6651_v33 }
  0xfe   : > { %1402 = vrot.lane.b32.xlu1 %v6351_v31, %s5758_s23 }
  0xff   : > { %v1325_v60 = vpop.permute.xlu0 %1324 }
 0x100   : > { %v1625_v21 = vsel %vm1623_vm9, %v1592_v34, %v1325_v60  ;;  %v1279_v54 = vpop.permute.xlu1 %1278 }
 0x101   : > { %1371 = vrot.lane.b32.xlu0 %v8699_v37, %s5756_s12  ;;  %v1658_v31 = vsel %vm1656_vm11, %v1625_v21, %v6725_v41  ;;  %v6755_v21 = vcombine.low %v5621_v36, %v5622_v57  ;;  %v5096_v36 = vld [vmem:[%s8593_s1 + $0x90] sm:$0xff]  }
 0x102   : > { %1978 = vmatprep.mubr.bf16.mxu0 %v1658_v31  ;;  %1268 = vrot.lane.b32.xlu1 %v8699_v37, %s5755_s10  ;;  %v8700_v37 = vld [vmem:[#allocation15_spill] sm:$0xff] }
 0x103   : > { %1979 = vmatmul.mubr.bf16.vlgmr.msra.gmra.mrb[0].mxu0 %v1510_v6  ;;  %v1244_v45 = vpop.permute.xlu0 %1243  ;;  %v1501_v6 = vsel %vm1475_vm10, %v1465_v0, %v1209_v3 }
 0x104   : > { %v1349_v27 = vpop.permute.xlu1 %1348  ;;  %v1583_v19 = vsel %vm1557_vm7, %v1244_v45, %v1279_v54  ;;  %v1546_v33 = vsel %vm1508_vm12, %v1501_v6, %v1244_v45  ;;  %v5097_v6 = vld [vmem:[%s8593_s1 + $0x98] sm:$0xff]  }
 0x105   : > { %1233 = vrot.lane.b32.xlu0 %v6716_v9, %s5753_s25 }
 0x106   : > { %1303 = vrot.lane.b32.xlu1 %v6377_v61, %s5754_s26 }
 0x107   : > { %v1314_v35 = vpop.permute.xlu0 %1313 }
 0x108   : > { %v1616_v34 = vsel %vm1590_vm8, %v1583_v19, %v1314_v35  ;;  %v1222_v60 = vpop.permute.xlu1 %1221  ;;  %v5095_v35 = vld [vmem:[%s8593_s1 + $0x88] sm:$0xff]  }
 0x109   : > { %1404 = vrot.lane.b32.xlu0 %v6332_v56, %s5758_s23  ;;  %v1649_v54 = vsel %vm1623_vm9, %v1616_v34, %v1349_v27 }
 0x10a   : > { %1373 = vrot.lane.b32.xlu1 %v8700_v37, %s5756_s12 }
 0x10b   : > { %v6760_v31 = vpop.permute.xlu0 %1383 }
 0x10c   : > { %v1694_v56 = vsel %vm1656_vm11, %v1649_v54, %v6760_v31  ;;  %v1292_v19 = vpop.permute.xlu1 %1291 }
 0x10d   : > { %1338 = vrot.lane.b32.xlu0 %v6755_v21, %s5757_s13  ;;  %2074 = vmatprep.mubr.bf16.mxu1 %v1694_v56 }
 0x10e   : > { %2075 = vmatmul.mubr.bf16.vlgmr.msra.gmra.mrb[0].mxu1 %v1546_v33  ;;  %1235 = vrot.lane.b32.xlu1 %v6755_v21, %s5753_s25 }
 0x10f   : > { %v1257_v27 = vpop.permute.xlu0 %1256  ;;  %4945 = vmatpush3.bf16.msra.mxu1 %v6625_v52  ;;  %v1432_v52 = vsel %vm1426_vm6, %v6402_v22, %v6534_v30 }
 0x110   : > { %v1561_v3 = vsel %vm1557_vm7, %v1222_v60, %v1257_v27  ;;  %v6776_v34 = vpop.permute.xlu1 %1361  ;;  %4946 = vmatprep.subr.bf16.mxu1 %v5095_v35 }
 0x111   : > { %1406 = vrot.lane.b32.xlu0 %v6377_v61, %s5758_s23  ;;  %v1594_v45 = vsel %vm1590_vm8, %v1561_v3, %v1292_v19  ;;  %v1479_v61 = vsel %vm1475_vm10, %v1432_v52, %v6664_v63  ;;  %v5098_v63 = vld [vmem:[%s8593_s1 + $0xa0] ss:$0 sps:$4 sm:$0x33]   ;;  %v8701_v3 = vld [vmem:[#allocation25_spill] sm:$0xff] }
 0x112   : > { %1408 = vrot.lane.b32.xlu1 %v6362_v20, %s5758_s23  ;;  %v1513_v22 = vsel %vm1508_vm12, %v1479_v61, %v1222_v60  ;;  %v1944_v27 = vsel %vm1942_vm13, %v5098_v63, 0 }
 0x113   : > { %v1327_v57 = vpop.permute.xlu0 %1326  ;;  %4947 = vmatpush3.bf16.msra.mxu1 %v5095_v35 }
 0x114   : > { %v1627_v0 = vsel %vm1623_vm9, %v1594_v45, %v1327_v57  ;;  %v1281_v54 = vpop.permute.xlu1 %1280  ;;  %4948 = vmatprep.subr.bf16.mxu1 %v5096_v36  ;;  %v1468_v45 = vsel %vm1426_vm6, %v6474_v51, %v6647_v8 }
 0x115   : > { %1270 = vrot.lane.b32.xlu0 %v8700_v37, %s5755_s10  ;;  %v1661_v56 = vsel %vm1656_vm11, %v1627_v0, %v6776_v34 }
 0x116   : > { %1986 = vmatprep.mubr.bf16.mxu0 %v1661_v56  ;;  %1340 = vrot.lane.b32.xlu1 %v6454_v17, %s5757_s13  ;;  %v8702_v56 = vld [vmem:[#allocation21_spill] sm:$0xff] }
 0x117   : > { %1987 = vmatmul.mubr.bf16.gmra.mrb[4].mxu0 %v1513_v22  ;;  %v1246_v30 = vpop.permute.xlu0 %1245  ;;  %4949 = vmatpush3.bf16.msra.mxu1 %v5096_v36 }
 0x118   : > { %v1351_v19 = vpop.permute.xlu1 %1350  ;;  %4950 = vmatprep.subr.bf16.mxu1 %v5097_v6  ;;  %v1585_v60 = vsel %vm1557_vm7, %v1246_v30, %v1281_v54 }
 0x119   : > { %1305 = vrot.lane.b32.xlu0 %v6362_v20, %s5754_s26 }
 0x11a   : > { %1410 = vrot.lane.b32.xlu1 %v6407_v38, %s5758_s23 }
 0x11b   : > { %v1316_v37 = vpop.permute.xlu0 %1315  ;;  %4951 = vmatpush3.bf16.msra.mxu1 %v5097_v6 }
 0x11c   : > { %v1618_v35 = vsel %vm1590_vm8, %v1585_v60, %v1316_v37  ;;  %v6811_v33 = vpop.permute.xlu1 %1385  ;;  %5002 = vmatprep.subr.msk.bf16.mxu1 %vm1942_vm13, %v5098_v63 }
 0x11d   : > { %1375 = vrot.lane.b32.xlu0 %v8701_v3, %s5756_s12  ;;  %v1651_v36 = vsel %vm1623_vm9, %v1618_v35, %v1351_v19 }
 0x11e   : > { %1272 = vrot.lane.b32.xlu1 %v8701_v3, %s5755_s10  ;;  %v1697_v20 = vsel %vm1656_vm11, %v1651_v36, %v6811_v33 }
 0x11f   : > { %v1211_v57 = vpop.permute.xlu0 %1210  ;;  %2082 = vmatprep.mubr.bf16.mxu1 %v1697_v20  ;;  %4953 = vmatpush3.bf16.msra.mxu1 %v1944_v27 }
 0x120   : > { %v1503_v52 = vsel %vm1475_vm10, %v1468_v45, %v1211_v57  ;;  %v1259_v0 = vpop.permute.xlu1 %1258  ;;  %v1471_v45 = vsel %vm1426_vm6, %v6480_v62, %v6662_v15 }
 0x121   : > { %1237 = vrot.lane.b32.xlu0 %v6454_v17, %s5753_s25  ;;  %v1549_v54 = vsel %vm1508_vm12, %v1503_v52, %v1246_v30  ;;  %v1435_v30 = vsel %vm1426_vm6, %v6460_v1, %v6506_v59 }
 0x122   : > { %2083 = vmatmul.mubr.bf16.gmra.mrb[4].mxu1 %v1549_v54  ;;  %1412 = vrot.lane.b32.xlu1 %v6387_v55, %s5758_s23  ;;  %v1481_v35 = vsel %vm1475_vm10, %v1435_v30, %v6676_v2  ;;  %v2588_v30 = vld [vmem:[%s8596_s4] sm:$0xff] }
 0x123   : > { %v1224_v6 = vpop.permute.xlu0 %1223 }
 0x124   : > { %v1329_v61 = vpop.permute.xlu1 %1328  ;;  %v1563_v8 = vsel %vm1557_vm7, %v1224_v6, %v1259_v0 }
 0x125   : > { %1377 = vrot.lane.b32.xlu0 %v8702_v56, %s5756_s12 }
 0x126   : > { %1342 = vrot.lane.b32.xlu1 %v6447_v5, %s5757_s13 }
 0x127   : > { %v1294_v22 = vpop.permute.xlu0 %1293 }
 0x128   : > { %v1596_v19 = vsel %vm1590_vm8, %v1563_v8, %v1294_v22  ;;  %v1248_v63 = vpop.permute.xlu1 %1247 }
 0x129   : > { %1307 = vrot.lane.b32.xlu0 %v6407_v38, %s5754_s26  ;;  %v1629_v37 = vsel %vm1623_vm9, %v1596_v19, %v1329_v61  ;;  %v1516_v38 = vsel %vm1508_vm12, %v1481_v35, %v1224_v6 }
 0x12a   : > { %1414 = vrot.lane.b32.xlu1 %v6433_v10, %s5758_s23 }
 0x12b   : > { %v6842_v60 = vpop.permute.xlu0 %1363 }
 0x12c   : > { %v1664_v27 = vsel %vm1656_vm11, %v1629_v37, %v6842_v60  ;;  %v1318_v3 = vpop.permute.xlu1 %1317 }
 0x12d   : > { %1379 = vrot.lane.b32.xlu0 %v6202_v11, %s5756_s12  ;;  %1994 = vmatprep.mubr.bf16.mxu0 %v1664_v27 }
 0x12e   : > { %1995 = vmatmul.mubr.bf16.gmra.mrb[8].mxu0 %v1516_v38  ;;  %1274 = vrot.lane.b32.xlu1 %v8702_v56, %s5755_s10 }
 0x12f   : > { %v1283_v1 = vpop.permute.xlu0 %1282 }
 0x130   : > { %v1213_v59 = vpop.permute.xlu1 %1212  ;;  %v1587_v2 = vsel %vm1557_vm7, %v1248_v63, %v1283_v1 }
 0x131   : > { %1239 = vrot.lane.b32.xlu0 %v6447_v5, %s5753_s25  ;;  %v1505_v57 = vsel %vm1475_vm10, %v1471_v45, %v1213_v59  ;;  %v1620_v52 = vsel %vm1590_vm8, %v1587_v2, %v1318_v3 }
 0x132   : > { %1416 = vrot.lane.b32.xlu1 %v6488_v32, %s5758_s23 }
 0x133   : > { %v1353_v36 = vpop.permute.xlu0 %1352 }
 0x134   : > { %v1226_v20 = vpop.permute.xlu1 %1225  ;;  %v1653_v32 = vsel %vm1623_vm9, %v1620_v52, %v1353_v36  ;;  %v2590_v36 = vld [vmem:[%s8596_s4 + $0x10] sm:$0xff] }
 0x135   : > { %1381 = vrot.lane.b32.xlu0 %v8692_v48, %s5756_s12  ;;  %v1552_v48 = vsel %vm1508_vm12, %v1505_v57, %v1248_v63  ;;  %s4808_s12 = sshll.u32 %s5860_s17, 8  ;;  %v2593_v57 = vld [vmem:[%s8596_s4 + $0x28] sm:$0xff] }
 0x136   : > { %1344 = vrot.lane.b32.xlu1 %v6464_v47, %s5757_s13  ;;  %s6901_s21 = scalar_lea.vmem %s8598_s6, %s4808_s12 }
 0x137   : > { %v6869_v0 = vpop.permute.xlu0 %1387  ;;  %v6916_v63 = vld [vmem:[%s6901_s21] sm:$0xff]  ;;  %v6924_v3 = vld [vmem:[%s6901_s21 + $0x18] sm:$0xff]  ;;  %v6940_v2 = vld [vmem:[%s6901_s21 + $0x10] sm:$0xff] }
 0x138   : > { %v1700_v54 = vsel %vm1656_vm11, %v1653_v32, %v6869_v0  ;;  %v1296_v6 = vpop.permute.xlu1 %1295  ;;  %v2620_v1 = vmul.f32 %v2588_v30, %v6916_v63  ;;  %v6947_v45 = vld [vmem:[%s6901_s21 + $0x28] sm:$0xff] }
 0x139   : > { %1309 = vrot.lane.b32.xlu0 %v6387_v55, %s5754_s26  ;;  %2090 = vmatprep.mubr.bf16.mxu1 %v1700_v54 }
 0x13a   : > { %2091 = vmatmul.mubr.bf16.gmra.mrb[8].mxu1 %v1552_v48  ;;  %1241 = vrot.lane.b32.xlu1 %v6464_v47, %s5753_s25  ;;  %v1483_v47 = vsel %vm1475_vm10, %v6516_v7, %v6670_v46  ;;  %v2589_v46 = vld [vmem:[%s8596_s4 + $0x8] sm:$0xff]  ;;  %v6959_v48 = vld [vmem:[%s6901_s21 + $0x20] sm:$0xff]  ;;  %s4479_s25 = sshll.u32 %s8090_s24, 4  ;;  %s8438_s25 = int_to_ptr.vmem [resolvable:$true] %s4479_s25 }
 0x13b   : > { %v1261_v62 = vpop.permute.xlu0 %1260  ;;  %s5655_s18 = scalar_lea.vmem %s8438_s25, 4096 }
 0x13c   : > { %v1565_v15 = vsel %vm1557_vm7, %v1226_v20, %v1261_v62  ;;  %v6879_v61 = vpop.permute.xlu1 %1365  ;;  %v2592_v62 = vld [vmem:[%s8596_s4 + $0x20] sm:$0xff]  ;;  %p5656_p11 = scmp.ne.s32.totalorder %s8438_s25, %s5655_s18 }
 0x13d   : > { %1418 = vrot.lane.b32.xlu0 %v6435_v58, %s5758_s23  ;;  %v1598_v55 = vsel %vm1590_vm8, %v1565_v15, %v1296_v6  ;;  %v2622_v6 = vmul.f32 %v2590_v36, %v6940_v2  ;;  %v2599_v36 = vld [vmem:[%s8596_s4 + $0x58] sm:$0xff] }
 0x13e   : > { %1420 = vrot.lane.b32.xlu1 %v6441_v16, %s5758_s23  ;;  %v1519_v16 = vsel %vm1508_vm12, %v1483_v47, %v1226_v20  ;;  %v6975_v47 = vld [vmem:[%s6901_s21 + $0x30] sm:$0xff]  ;;  %p5657_p12 = pnand %p5656_p11, %p5848_p5 }
 0x13f   : > { %v1331_v56 = vpop.permute.xlu0 %1330 }
 0x140   : > { %v1631_v8 = vsel %vm1623_vm9, %v1598_v55, %v1331_v56  ;;  %v1285_v22 = vpop.permute.xlu1 %1284  ;;  %v6966_v55 = vld [vmem:[%s6901_s21 + $0x38] sm:$0xff]  ;;  %p5658_p13 = pneg %p5657_p12 }
 0x141   : > { %1276 = vrot.lane.b32.xlu0 %v6202_v11, %s5755_s10  ;;  %v1667_v58 = vsel %vm1656_vm11, %v1631_v8, %v6879_v61  ;;  %v6904_v11 = vld [vmem:[%s6901_s21 + $0x8] sm:$0xff]  ;;  %v2595_v56 = vld [vmem:[%s8596_s4 + $0x38] sm:$0xff]  ;;  %s5759_s10 = smov 64  }
 0x142   : > { %2002 = vmatprep.mubr.bf16.mxu0 %v1667_v58  ;;  %1346 = vrot.lane.b32.xlu1 %v6474_v51, %s5757_s13  ;;  %v8703_v51 = vcombine.low %v6606_v40, %v6610_v24  ;;  %v2621_v37 = vmul.f32 %v2589_v46, %v6904_v11  ;;  %v2594_v58 = vld [vmem:[%s8596_s4 + $0x30] sm:$0xff]  ;;  %s4450_s13 = scalar_lea.sflag [#allocation5], %s8075_s19 }
 0x143   : > { %2003 = vmatmul.mubr.bf16.gmra.mrb[12].mxu0 %v1519_v16  ;;  %v1250_v7 = vpop.permute.xlu0 %1249  ;;  %v2627_v16 = vmul.f32 %v2595_v56, %v6966_v55 }
 0x144   : > { %v1355_v19 = vpop.permute.xlu1 %1354  ;;  %v1589_v35 = vsel %vm1557_vm7, %v1250_v7, %v1285_v22  ;;  %v2624_v22 = vmul.f32 %v2592_v62, %v6959_v48  ;;  %v7028_v62 = vld [vmem:[%s6901_s21 + $0x68] sm:$0xff] }
 0x145   : > { %1311 = vrot.lane.b32.xlu0 %v6433_v10, %s5754_s26  ;;  %v2591_v10 = vld [vmem:[%s8596_s4 + $0x18] sm:$0xff]  ;;  %s5761_s26 = smov [#allocation4]  }
 0x146   : > { %1424 = vrot.lane.b32.xlu1 %v8703_v51, %s5758_s23  ;;  %v2623_v20 = vmul.f32 %v2591_v10, %v6924_v3  ;;  %v2597_v51 = vld [vmem:[%s8596_s4 + $0x48] sm:$0xff]  ;;  %v6996_v10 = vld [vmem:[%s6901_s21 + $0x40] sm:$0xff]  ;;  %s5659_s22 = sshll.u32 %s5761_s26, 4  ;;  %s5660_s22 = int_to_ptr.vmem [resolvable:$false] %s5659_s22 }
 0x147   : > { %v1320_v27 = vpop.permute.xlu0 %1319  ;;  %p5662_p0 = scmp.lt.s32.totalorder %s8438_s25, %s5660_s22 }
 0x148   : > { %v1622_v40 = vsel %vm1590_vm8, %v1589_v35, %v1320_v27  ;;  %v6930_v24 = vpop.permute.xlu1 %1389  ;;  %v2626_v27 = vmul.f32 %v2594_v58, %v6975_v47 }
 0x149   : > { %1422 = vrot.lane.b32.xlu0 %v6644_v23, %s5758_s23  ;;  %v1655_v38 = vsel %vm1623_vm9, %v1622_v40, %v1355_v19  ;;  %v6983_v19 = vld [vmem:[%s6901_s21 + $0x48] sm:$0xff]  ;;  %v2596_v40 = vld [vmem:[%s8596_s4 + $0x40] sm:$0xff] }
 0x14a   : > { %v1703_v59 = vsel %vm1656_vm11, %v1655_v38, %v6930_v24  ;;  %2686 = vrot.lane.b32.xlu1 %v2621_v37, %s5758_s23  ;;  %v2629_v38 = vmul.f32 %v2597_v51, %v6983_v19 }
 0x14b   : > { %v1215_v23 = vpop.permute.xlu0 %1214  ;;  %2098 = vmatprep.mubr.bf16.mxu1 %v1703_v59  ;;  %v7006_v59 = vld [vmem:[%s6901_s21 + $0x58] sm:$0xff] }
 0x14c   : > { %v1507_v52 = vsel %vm1475_vm10, %v6658_v26, %v1215_v23  ;;  %v1263_v32 = vpop.permute.xlu1 %1262  ;;  %v2625_v26 = vmul.f32 %v2593_v57, %v6947_v45 }
 0x14d   : > { %v1555_v54 = vsel %vm1508_vm12, %v1507_v52, %v1250_v7  ;;  %2684 = vrot.lane.b32.xlu0 %v2620_v1, %s5758_s23 }
 0x14e   : > { %2099 = vmatmul.mubr.bf16.gmra.mrb[12].mxu1 %v1555_v54  ;;  %2690 = vrot.lane.b32.xlu1 %v2623_v20, %s5758_s23  ;;  %v1485_v20 = vsel %vm1475_vm10, %v6553_v12, %v6684_v50  ;;  %v7021_v54 = vld [vmem:[%s6901_s21 + $0x50] sm:$0xff]  ;;  %v2631_v50 = vmul.f32 %v2599_v36, %v7006_v59  ;;  %v7067_v36 = vld [vmem:[%s6901_s21 + $0x88] sm:$0xff] }
 0x14f   : > { %v1228_v15 = vpop.permute.xlu0 %1227  ;;  %v2598_v12 = vld [vmem:[%s8596_s4 + $0x50] sm:$0xff] }
 0x150   : > { %v1333_v8 = vpop.permute.xlu1 %1332  ;;  %v1567_v7 = vsel %vm1557_vm7, %v1228_v15, %v1263_v32  ;;  %v1522_v52 = vsel %vm1508_vm12, %v1485_v20, %v1228_v15  ;;  %v2628_v32 = vmul.f32 %v2596_v40, %v6996_v10  ;;  %v2630_v56 = vmul.f32 %v2598_v12, %v7021_v54  ;;  %v2602_v40 = vld [vmem:[%s8596_s4 + $0x70] sm:$0xff]  ;;  %v2605_v20 = vld [vmem:[%s8596_s4 + $0x88] sm:$0xff] }
 0x151   : > { %2688 = vrot.lane.b32.xlu0 %v2622_v6, %s5758_s23 }
 0x152   : > { %2694 = vrot.lane.b32.xlu1 %v2625_v26, %s5758_s23  ;;  %v2601_v26 = vld [vmem:[%s8596_s4 + $0x68] sm:$0xff] }
 0x153   : > { %v1298_v46 = vpop.permute.xlu0 %1297  ;;  %v2633_v58 = vmul.f32 %v2601_v26, %v7028_v62  ;;  %v7083_v26 = vld [vmem:[%s6901_s21 + $0x80] sm:$0xff] }
 0x154   : > { %v1600_v30 = vsel %vm1590_vm8, %v1567_v7, %v1298_v46  ;;  %v1395_v37 = vpop.permute.xlu1 %1394  ;;  %v7044_v7 = vld [vmem:[%s6901_s21 + $0x78] sm:$0xff] }
 0x155   : > { %v1707_v35 = vsel %vm1705_vm14, %v6725_v41, %v1395_v37  ;;  %2692 = vrot.lane.b32.xlu0 %v2624_v22, %s5758_s23  ;;  %v1633_v41 = vsel %vm1623_vm9, %v1600_v30, %v1333_v8  ;;  %v7037_v8 = vld [vmem:[%s6901_s21 + $0x60] sm:$0xff]  ;;  %v2603_v46 = vld [vmem:[%s8596_s4 + $0x78] sm:$0xff] }
 0x156   : > { %4954 = vmatprep.mubr.msk.bf16.mxu1 %vm1909_vm15, %v1707_v35  ;;  %2698 = vrot.lane.b32.xlu1 %v2627_v16, %s5758_s23  ;;  %v2600_v22 = vld [vmem:[%s8596_s4 + $0x60] sm:$0xff] }
 0x157   : > { %v7002_v1 = vpop.permute.xlu0 %1367  ;;  %v2632_v37 = vmul.f32 %v2600_v22, %v7037_v8 }
 0x158   : > { %v1670_v23 = vsel %vm1656_vm11, %v1633_v41, %v7002_v1  ;;  %v1265_v57 = vpop.permute.xlu1 %1264 }
 0x159   : > { %2010 = vmatprep.mubr.bf16.mxu0 %v1670_v23  ;;  %2696 = vrot.lane.b32.xlu0 %v2626_v27, %s5758_s23  ;;  %v7059_v27 = vld [vmem:[%s6901_s21 + $0x70] sm:$0xff] }
 0x15a   : > { %2011 = vmatmul.mubr.bf16.gmra.mrb[16].mxu0 %v1522_v52  ;;  %2702 = vrot.lane.b32.xlu1 %v2629_v38, %s5758_s23  ;;  %v1487_v52 = vsel %vm1475_vm10, %v6541_v4, %v6678_v42  ;;  %v2634_v12 = vmul.f32 %v2602_v40, %v7059_v27  ;;  %v2637_v4 = vmul.f32 %v2605_v20, %v7067_v36  ;;  %v7112_v40 = vld [vmem:[%s6901_s21 + $0xa8] sm:$0xff]  ;;  %v2608_v20 = vld [vmem:[%s8596_s4 + $0xa0] sm:$0xff] }
 0x15b   : > { %v1230_v6 = vpop.permute.xlu0 %1229 }
 0x15c   : > { %v1300_v15 = vpop.permute.xlu1 %1299  ;;  %v1569_v35 = vsel %vm1557_vm7, %v1230_v6, %v1265_v57 }
 0x15d   : > { %2700 = vrot.lane.b32.xlu0 %v2628_v32, %s5758_s23  ;;  %v1602_v38 = vsel %vm1590_vm8, %v1569_v35, %v1300_v15  ;;  %v2604_v15 = vld [vmem:[%s8596_s4 + $0x80] sm:$0xff] }
 0x15e   : > { %2706 = vrot.lane.b32.xlu1 %v2631_v50, %s5758_s23  ;;  %v1525_v50 = vsel %vm1508_vm12, %v1487_v52, %v1230_v6  ;;  %v2607_v6 = vld [vmem:[%s8596_s4 + $0x98] sm:$0xff] }
 0x15f   : > { %v1397_v16 = vpop.permute.xlu0 %1396 }
 0x160   : > { %v1709_v51 = vsel %vm1705_vm14, %v6776_v34, %v1397_v16  ;;  %v7051_v30 = vpop.permute.xlu1 %1369  ;;  %v2635_v34 = vmul.f32 %v2603_v46, %v7044_v7  ;;  %v2636_v46 = vmul.f32 %v2604_v15, %v7083_v26 }
 0x161   : > { %4955 = vmatmul.mubr.msk.bf16.vlgmr.msra.gmra.mrb[16].mxu1 %vm1909_vm15, %v1709_v51  ;;  %2704 = vrot.lane.b32.xlu0 %v2630_v56, %s5758_s23  ;;  %v7090_v56 = vld [vmem:[%s6901_s21 + $0x98] sm:$0xff]  ;;  %v7105_v51 = vld [vmem:[%s6901_s21 + $0x90] sm:$0xff] }
 0x162   : > { %2710 = vrot.lane.b32.xlu1 %v2633_v58, %s5758_s23 }
 0x163   : > { %v1335_v41 = vpop.permute.xlu0 %1334 }
 0x164   : > { %v1635_v23 = vsel %vm1623_vm9, %v1602_v38, %v1335_v41  ;;  %v1232_v57 = vpop.permute.xlu1 %1231  ;;  %v7121_v41 = vld [vmem:[%s6901_s21 + $0xa0] sm:$0xff] }
 0x165   : > { %v1673_v32 = vsel %vm1656_vm11, %v1635_v23, %v7051_v30  ;;  %2708 = vrot.lane.b32.xlu0 %v2632_v37, %s5758_s23  ;;  %v2639_v37 = vmul.f32 %v2607_v6, %v7090_v56  ;;  %v2640_v6 = vmul.f32 %v2608_v20, %v7121_v41 }
 0x166   : > { %2018 = vmatprep.mubr.bf16.mxu0 %v1673_v32  ;;  %2714 = vrot.lane.b32.xlu1 %v2635_v34, %s5758_s23 }
 0x167   : > { %2019 = vmatmul.mubr.bf16.gmra.mrb[20].mxu0 %v1525_v50  ;;  %v1399_v42 = vpop.permute.xlu0 %1398  ;;  %v2611_v50 = vld [vmem:[%s8596_s4 + $0xb8] sm:$0xff] }
 0x168   : > { %v1711_v22 = vsel %vm1705_vm14, %v6842_v60, %v1399_v42  ;;  %v1401_v58 = vpop.permute.xlu1 %1400  ;;  %v2606_v60 = vld [vmem:[%s8596_s4 + $0x90] sm:$0xff] }
 0x169   : > { %4958 = vmatprep.mubr.msk.bf16.mxu1 %vm1909_vm15, %v1711_v22  ;;  %v1713_v16 = vsel %vm1705_vm14, %v6879_v61, %v1401_v58  ;;  %2712 = vrot.lane.b32.xlu0 %v2634_v12, %s5758_s23  ;;  %v2609_v61 = vld [vmem:[%s8596_s4 + $0xa8] sm:$0xff]  ;;  %v2638_v38 = vmul.f32 %v2606_v60, %v7105_v51  ;;  %v7129_v12 = vld [vmem:[%s6901_s21 + $0xb8] sm:$0xff]  ;;  %v7142_v22 = vld [vmem:[%s6901_s21 + $0xb0] sm:$0xff] }
 0x16a   : > { %4959 = vmatmul.mubr.msk.bf16.gmra.mrb[20].mxu1 %vm1909_vm15, %v1713_v16  ;;  %2718 = vrot.lane.b32.xlu1 %v2637_v4, %s5758_s23  ;;  %v2641_v23 = vmul.f32 %v2609_v61, %v7112_v40  ;;  %v2610_v58 = vld [vmem:[%s8596_s4 + $0xb0] sm:$0xff]  ;;  %v2643_v16 = vmul.f32 %v2611_v50, %v7129_v12  ;;  %v7150_v60 = vld [vmem:[%s6901_s21 + $0xc8] sm:$0xff] }
 0x16b   : > { %v1267_v35 = vpop.permute.xlu0 %1266 }
 0x16c   : > { %v1337_v34 = vpop.permute.xlu1 %1336  ;;  %v1571_v52 = vsel %vm1557_vm7, %v1232_v57, %v1267_v35  ;;  %v1489_v35 = vsel %vm1475_vm10, %v6581_v29, %v6692_v14  ;;  %v2612_v29 = vld [vmem:[%s8596_s4 + $0xc0] sm:$0xff] }
 0x16d   : > { %2716 = vrot.lane.b32.xlu0 %v2636_v46, %s5758_s23  ;;  %v1528_v20 = vsel %vm1508_vm12, %v1489_v35, %v1232_v57  ;;  %v2615_v57 = vld [vmem:[%s8596_s4 + $0xd8] sm:$0xff] }
 0x16e   : > { %2722 = vrot.lane.b32.xlu1 %v2639_v37, %s5758_s23  ;;  %v2613_v37 = vld [vmem:[%s8596_s4 + $0xc8] sm:$0xff] }
 0x16f   : > { %v1302_v32 = vpop.permute.xlu0 %1301  ;;  %v2645_v14 = vmul.f32 %v2613_v37, %v7150_v60 }
 0x170   : > { %v1604_v15 = vsel %vm1590_vm8, %v1571_v52, %v1302_v32  ;;  %v1403_v4 = vpop.permute.xlu1 %1402  ;;  %v7171_v32 = vld [vmem:[%s6901_s21 + $0xd8] sm:$0xff] }
 0x171   : > { %v1715_v42 = vsel %vm1705_vm14, %v7002_v1, %v1403_v4  ;;  %2720 = vrot.lane.b32.xlu0 %v2638_v38, %s5758_s23  ;;  %v1637_v1 = vsel %vm1623_vm9, %v1604_v15, %v1337_v34  ;;  %v2642_v34 = vmul.f32 %v2610_v58, %v7142_v22  ;;  %v7180_v4 = vld [vmem:[%s6901_s21 + $0xd0] sm:$0xff] }
 0x172   : > { %4962 = vmatprep.mubr.msk.bf16.mxu1 %vm1909_vm15, %v1715_v42  ;;  %2726 = vrot.lane.b32.xlu1 %v2641_v23, %s5758_s23  ;;  %v7164_v23 = vld [vmem:[%s6901_s21 + $0xc0] sm:$0xff]  ;;  %v2614_v42 = vld [vmem:[%s8596_s4 + $0xd0] sm:$0xff] }
 0x173   : > { %v1372_v46 = vpop.permute.xlu0 %1371  ;;  %v2644_v15 = vmul.f32 %v2612_v29, %v7164_v23  ;;  %v2616_v29 = vld [vmem:[%s8596_s4 + $0xe0] sm:$0xff] }
 0x174   : > { %v1676_v61 = vsel %vm1656_vm11, %v1637_v1, %v1372_v46  ;;  %v1269_v38 = vpop.permute.xlu1 %1268  ;;  %v2617_v1 = vld [vmem:[%s8596_s4 + $0xe8] sm:$0xff] }
 0x175   : > { %2026 = vmatprep.mubr.bf16.mxu0 %v1676_v61  ;;  %2724 = vrot.lane.b32.xlu0 %v2640_v6, %s5758_s23  ;;  %v2647_v6 = vmul.f32 %v2615_v57, %v7171_v32  ;;  %v2646_v61 = vmul.f32 %v2614_v42, %v7180_v4 }
 0x176   : > { %2027 = vmatmul.mubr.bf16.gmra.mrb[24].mxu0 %v1528_v20  ;;  %2730 = vrot.lane.b32.xlu1 %v2643_v16, %s5758_s23  ;;  %v7187_v16 = vld [vmem:[%s6901_s21 + $0xe8] sm:$0xff] }
 0x177   : > { %v1234_v52 = vpop.permute.xlu0 %1233 }
 0x178   : > { %v1304_v50 = vpop.permute.xlu1 %1303  ;;  %v1573_v20 = vsel %vm1557_vm7, %v1234_v52, %v1269_v38  ;;  %v2619_v38 = vld [vmem:[%s8596_s4 + $0xf8] sm:$0xff] }
 0x179   : > { %2728 = vrot.lane.b32.xlu0 %v2642_v34, %s5758_s23  ;;  %v7200_v34 = vld [vmem:[%s6901_s21 + $0xe0] sm:$0xff] }
 0x17a   : > { %2734 = vrot.lane.b32.xlu1 %v2645_v14, %s5758_s23  ;;  %v1606_v14 = vsel %vm1590_vm8, %v1573_v20, %v1304_v50  ;;  %v2648_v50 = vmul.f32 %v2616_v29, %v7200_v34  ;;  %v7223_v20 = vld [vmem:[%s6901_s21 + $0xf0] sm:$0xff] }
 0x17b   : > { %v1405_v58 = vpop.permute.xlu0 %1404 }
 0x17c   : > { %v1717_v37 = vsel %vm1705_vm14, %v7051_v30, %v1405_v58  ;;  %v1374_v35 = vpop.permute.xlu1 %1373  ;;  %v2649_v30 = vmul.f32 %v2617_v1, %v7187_v16  ;;  %v7208_v58 = vld [vmem:[%s6901_s21 + $0xf8] sm:$0xff] }
 0x17d   : > { %4963 = vmatmul.mubr.msk.bf16.gmra.mrb[24].mxu1 %vm1909_vm15, %v1717_v37  ;;  %2732 = vrot.lane.b32.xlu0 %v2644_v15, %s5758_s23 }
 0x17e   : > { %2738 = vrot.lane.b32.xlu1 %v2647_v6, %s5758_s23  ;;  %v1491_v6 = vsel %vm1475_vm10, %v6573_v44, %v6686_v39 }
 0x17f   : > { %v1339_v57 = vpop.permute.xlu0 %1338  ;;  %v1531_v1 = vsel %vm1508_vm12, %v1491_v6, %v1234_v52 }
 0x180   : > { %v1639_v15 = vsel %vm1623_vm9, %v1606_v14, %v1339_v57  ;;  %v1236_v42 = vpop.permute.xlu1 %1235  ;;  %v2618_v14 = vld [vmem:[%s8596_s4 + $0xf0] sm:$0xff]  ;;  %v2651_v57 = vmul.f32 %v2619_v38, %v7208_v58 }
 0x181   : > { %v1679_v37 = vsel %vm1656_vm11, %v1639_v15, %v1374_v35  ;;  %2736 = vrot.lane.b32.xlu0 %v2646_v61, %s5758_s23  ;;  %v2650_v52 = vmul.f32 %v2618_v14, %v7223_v20 }
 0x182   : > { %2034 = vmatprep.mubr.bf16.mxu0 %v1679_v37  ;;  %2742 = vrot.lane.b32.xlu1 %v2649_v30, %s5758_s23  ;;  %v1453_v37 = vsel %vm1426_vm6, %v6716_v9, %v6616_v25 }
 0x183   : > { %2035 = vmatmul.mubr.bf16.gmra.mrb[28].mxu0 %v1531_v1  ;;  %v1407_v44 = vpop.permute.xlu0 %1406 }
 0x184   : > { %v1719_v39 = vsel %vm1705_vm14, %v1372_v46, %v1407_v44  ;;  %v1409_v61 = vpop.permute.xlu1 %1408 }
 0x185   : > { %4966 = vmatprep.mubr.msk.bf16.mxu1 %vm1909_vm15, %v1719_v39  ;;  %v1721_v29 = vsel %vm1705_vm14, %v1374_v35, %v1409_v61  ;;  %2740 = vrot.lane.b32.xlu0 %v2648_v50, %s5758_s23 }
 0x186   : > { %4967 = vmatmul.mubr.msk.bf16.gmra.mrb[28].mxu1 %vm1909_vm15, %v1721_v29  ;;  %2746 = vrot.lane.b32.xlu1 %v2651_v57, %s5758_s23 }
 0x187   : > { %v1271_v30 = vpop.permute.xlu0 %1270 }
 0x188   : > { %v1341_v15 = vpop.permute.xlu1 %1340  ;;  %v1575_v46 = vsel %vm1557_vm7, %v1236_v42, %v1271_v30 }
 0x189   : > { %2744 = vrot.lane.b32.xlu0 %v2650_v52, %s5758_s23 }
 0x18a   : > { %3038 = vrot.lane.b32.xlu1 %v6904_v11, %s5758_s23  ;;  %v1493_v11 = vsel %vm1475_vm10, %v1453_v37, %v6700_v43 }
 0x18b   : > { %v1306_v38 = vpop.permute.xlu0 %1305 }
 0x18c   : > { %v1608_v35 = vsel %vm1590_vm8, %v1575_v46, %v1306_v38  ;;  %v1411_v6 = vpop.permute.xlu1 %1410 }
 0x18d   : > { %3036 = vrot.lane.b32.xlu0 %v6916_v63, %s5758_s23  ;;  %v1641_v1 = vsel %vm1623_vm9, %v1608_v35, %v1341_v15  ;;  %v1534_v63 = vsel %vm1508_vm12, %v1493_v11, %v1236_v42 }
 0x18e   : > { %3042 = vrot.lane.b32.xlu1 %v6924_v3, %s5758_s23 }
 0x18f   : > { %v1376_v50 = vpop.permute.xlu0 %1375 }
 0x190   : > { %v1682_v14 = vsel %vm1656_vm11, %v1641_v1, %v1376_v50  ;;  %v1723_v57 = vsel %vm1705_vm14, %v1376_v50, %v1411_v6  ;;  %v1273_v44 = vpop.permute.xlu1 %1272 }
 0x191   : > { %2042 = vmatprep.mubr.bf16.mxu0 %v1682_v14  ;;  %4970 = vmatprep.mubr.msk.bf16.mxu1 %vm1909_vm15, %v1723_v57 }
 0x192   : > { %2043 = vmatmul.mubr.bf16.gmra.mrb[32].mxu0 %v1534_v63  ;;  %3040 = vrot.lane.b32.xlu0 %v6940_v2, %s5758_s23 }
 0x193   : > { %v1238_v25 = vpop.permute.xlu0 %1237  ;;  %3046 = vrot.lane.b32.xlu1 %v6947_v45, %s5758_s23 }
 0x194   : > { %v1413_v9 = vpop.permute.xlu1 %1412  ;;  %v1577_v2 = vsel %vm1557_vm7, %v1238_v25, %v1273_v44 }
 0x196   : > { %3044 = vrot.lane.b32.xlu0 %v6959_v48, %s5758_s23 }
 0x197   : > { %v1378_v43 = vpop.permute.xlu0 %1377  ;;  %3050 = vrot.lane.b32.xlu1 %v6966_v55, %s5758_s23  ;;  %v1456_v55 = vsel %vm1426_vm6, %v6755_v21, %v6601_v53 }
 0x198   : > { %v1725_v3 = vsel %vm1705_vm14, %v1378_v43, %v1413_v9  ;;  %v1343_v39 = vpop.permute.xlu1 %1342  ;;  %v1495_v29 = vsel %vm1475_vm10, %v1456_v55, %v6694_v28 }
 0x199   : > { %4971 = vmatmul.mubr.msk.bf16.gmra.mrb[32].mxu1 %vm1909_vm15, %v1725_v3 }
 0x19a   : > { %3048 = vrot.lane.b32.xlu0 %v6975_v47, %s5758_s23 }
 0x19b   : > { %v1308_v42 = vpop.permute.xlu0 %1307  ;;  %3054 = vrot.lane.b32.xlu1 %v6983_v19, %s5758_s23  ;;  %v1537_v19 = vsel %vm1508_vm12, %v1495_v29, %v1238_v25 }
 0x19c   : > { %v1610_v45 = vsel %vm1590_vm8, %v1577_v2, %v1308_v42  ;;  %v1415_v48 = vpop.permute.xlu1 %1414 }
 0x19d   : > { %v1643_v61 = vsel %vm1623_vm9, %v1610_v45, %v1343_v39 }
 0x19e   : > { %v1685_v47 = vsel %vm1656_vm11, %v1643_v61, %v1378_v43  ;;  %3052 = vrot.lane.b32.xlu0 %v6996_v10, %s5758_s23 }
 0x19f   : > { %2050 = vmatprep.mubr.bf16.mxu0 %v1685_v47  ;;  %v1380_v52 = vpop.permute.xlu0 %1379  ;;  %3058 = vrot.lane.b32.xlu1 %v7006_v59, %s5758_s23 }
 0x1a0   : > { %2051 = vmatmul.mubr.bf16.gmra.mrb[36].mxu0 %v1537_v19  ;;  %v1727_v53 = vsel %vm1705_vm14, %v1380_v52, %v1415_v48  ;;  %v1275_v21 = vpop.permute.xlu1 %1274 }
 0x1a1   : > { %4974 = vmatprep.mubr.msk.bf16.mxu1 %vm1909_vm15, %v1727_v53 }
 0x1a2   : > { %3056 = vrot.lane.b32.xlu0 %v7021_v54, %s5758_s23 }
 0x1a3   : > { %v1240_v28 = vpop.permute.xlu0 %1239  ;;  %3062 = vrot.lane.b32.xlu1 %v7028_v62, %s5758_s23 }
 0x1a4   : > { %v1417_v10 = vpop.permute.xlu1 %1416  ;;  %v1579_v54 = vsel %vm1557_vm7, %v1240_v28, %v1275_v21 }
 0x1a6   : > { %3060 = vrot.lane.b32.xlu0 %v7037_v8, %s5758_s23 }
 0x1a7   : > { %v1382_v30 = vpop.permute.xlu0 %1381  ;;  %3066 = vrot.lane.b32.xlu1 %v7044_v7, %s5758_s23  ;;  %v1459_v7 = vsel %vm1426_vm6, %v6454_v17, %v6637_v18 }
 0x1a8   : > { %v1729_v59 = vsel %vm1705_vm14, %v1382_v30, %v1417_v10  ;;  %v1345_v15 = vpop.permute.xlu1 %1344  ;;  %v1497_v35 = vsel %vm1475_vm10, %v1459_v7, %v6708_v13 }
 0x1a9   : > { %4975 = vmatmul.mubr.msk.bf16.gmra.mrb[36].mxu1 %vm1909_vm15, %v1729_v59 }
 0x1aa   : > { %3064 = vrot.lane.b32.xlu0 %v7059_v27, %s5758_s23 }
 0x1ab   : > { %v1310_v46 = vpop.permute.xlu0 %1309  ;;  %3070 = vrot.lane.b32.xlu1 %v7067_v36, %s5758_s23  ;;  %v1540_v36 = vsel %vm1508_vm12, %v1497_v35, %v1240_v28 }
 0x1ac   : > { %v1612_v62 = vsel %vm1590_vm8, %v1579_v54, %v1310_v46  ;;  %v1242_v8 = vpop.permute.xlu1 %1241 }
 0x1ad   : > { %v1645_v38 = vsel %vm1623_vm9, %v1612_v62, %v1345_v15 }
 0x1ae   : > { %v1688_v27 = vsel %vm1656_vm11, %v1645_v38, %v1380_v52  ;;  %3068 = vrot.lane.b32.xlu0 %v7083_v26, %s5758_s23 }
 0x1af   : > { %2058 = vmatprep.mubr.bf16.mxu0 %v1688_v27  ;;  %v1419_v6 = vpop.permute.xlu0 %1418  ;;  %3074 = vrot.lane.b32.xlu1 %v7090_v56, %s5758_s23 }
 0x1b0   : > { %v1731_v17 = vsel %vm1705_vm14, %v6760_v31, %v1419_v6  ;;  %2059 = vmatmul.mubr.bf16.gmra.mrb[40].mxu0 %v1540_v36  ;;  %v1421_v18 = vpop.permute.xlu1 %1420 }
 0x1b1   : > { %4978 = vmatprep.mubr.msk.bf16.mxu1 %vm1909_vm15, %v1731_v17  ;;  %v1733_v13 = vsel %vm1705_vm14, %v6811_v33, %v1421_v18 }
 0x1b2   : > { %4979 = vmatmul.mubr.msk.bf16.gmra.mrb[40].mxu1 %vm1909_vm15, %v1733_v13  ;;  %3072 = vrot.lane.b32.xlu0 %v7105_v51, %s5758_s23  ;;  %v1462_v51 = vsel %vm1426_vm6, %v6447_v5, %v6627_v49 }
 0x1b3   : > { %v1277_v26 = vpop.permute.xlu0 %1276  ;;  %3078 = vrot.lane.b32.xlu1 %v7112_v40, %s5758_s23  ;;  %v8704_v40 = vld [vmem:[#allocation20_spill] sm:$0xff] }
 0x1b4   : > { %v1347_v56 = vpop.permute.xlu1 %1346  ;;  %v1581_v31 = vsel %vm1557_vm7, %v1242_v8, %v1277_v26  ;;  %v1499_v11 = vsel %vm1475_vm10, %v1462_v51, %v8704_v40 }
 0x1b5   : > { %v1543_v57 = vsel %vm1508_vm12, %v1499_v11, %v1242_v8 }
 0x1b6   : > { %3076 = vrot.lane.b32.xlu0 %v7121_v41, %s5758_s23 }
 0x1b7   : > { %v1312_v37 = vpop.permute.xlu0 %1311  ;;  %3082 = vrot.lane.b32.xlu1 %v7129_v12, %s5758_s23 }
 0x1b8   : > { %v1614_v33 = vsel %vm1590_vm8, %v1581_v31, %v1312_v37  ;;  %v1425_v50 = vpop.permute.xlu1 %1424 }
 0x1b9   : > { %v1647_v1 = vsel %vm1623_vm9, %v1614_v33, %v1347_v56  ;;  %v1737_v12 = vsel %vm1705_vm14, %v6930_v24, %v1425_v50 }
 0x1ba   : > { %v1691_v41 = vsel %vm1656_vm11, %v1647_v1, %v1382_v30  ;;  %3080 = vrot.lane.b32.xlu0 %v7142_v22, %s5758_s23 }
 0x1bb   : > { %2066 = vmatprep.mubr.bf16.mxu0 %v1691_v41  ;;  %v1423_v14 = vpop.permute.xlu0 %1422  ;;  %3086 = vrot.lane.b32.xlu1 %v7150_v60, %s5758_s23 }
 0x1bc   : > { %v1735_v5 = vsel %vm1705_vm14, %v6869_v0, %v1423_v14  ;;  %2067 = vmatmul.mubr.bf16.gmra.mrb[44].mxu0 %v1543_v57  ;;  %v7377_v21 = vpop.permute.xlu1 %2686 }
 0x1bd   : > { %4982 = vmatprep.mubr.msk.bf16.mxu1 %vm1909_vm15, %v1735_v5 }
 0x1be   : > { %4983 = vmatmul.mubr.msk.bf16.gmra.mrb[44].mxu1 %vm1909_vm15, %v1737_v12  ;;  %3084 = vrot.lane.b32.xlu0 %v7164_v23, %s5758_s23 }
 0x1bf   : > { %3090 = vrot.lane.b32.xlu1 %v7171_v32, %s5758_s23  ;;  %v7379_v28 = vpop.permute.xlu0 %2684 }
 0x1c0   : > { %v7381_v10 = vpop.permute.xlu1 %2690 }
 0x1c2   : > { %3088 = vrot.lane.b32.xlu0 %v7180_v4, %s5758_s23 }
 0x1c3   : > { %3094 = vrot.lane.b32.xlu1 %v7187_v16, %s5758_s23  ;;  %v7383_v30 = vpop.permute.xlu0 %2688 }
 0x1c4   : > { %v7389_v7 = vpop.permute.xlu1 %2694 }
 0x1c6   : > { %3092 = vrot.lane.b32.xlu0 %v7200_v34, %s5758_s23 }
 0x1c7   : > { %3098 = vrot.lane.b32.xlu1 %v7208_v58, %s5758_s23  ;;  %v7391_v38 = vpop.permute.xlu0 %2692 }
 0x1c8   : > { %v7393_v6 = vpop.permute.xlu1 %2698 }
 0x1ca   : > { %3096 = vrot.lane.b32.xlu0 %v7223_v20, %s5758_s23 }
 0x1cb   : > { %v7395_v18 = vpop.permute.xlu0 %2696 }
 0x1cc   : > { %v7397_v56 = vpop.permute.xlu1 %2702 }
 0x1cd   : > { %8705 = vst [vmem:[#allocation23_spill] sm:$0xff] %v7397_v56 }
 0x1cf   : > { %v7399_v31 = vpop.permute.xlu0 %2700 }
 0x1d0   : > { %8706 = vst [vmem:[#allocation22_spill] sm:$0xff] %v7399_v31  ;;  %v7403_v1 = vpop.permute.xlu1 %2706  ;;  %v5638_v31 = vld [vmem:[%s6901_s21 + $0x78] sm:$0xff] }
 0x1d1   : > { %8707 = vst [vmem:[#allocation26_spill] sm:$0xff] %v7403_v1 }
 0x1d3   : > { %v7405_v40 = vpop.permute.xlu0 %2704 }
 0x1d4   : > { %v7409_v12 = vpop.permute.xlu1 %2710 }
 0x1d5   : > { %8708 = vst [vmem:[#allocation24_spill] sm:$0xff] %v7409_v12 }
 0x1d6   : > { %v4827_v49 = vpop.f32.mrb[0].mxu0 }
 0x1d7   : > { %v4828_v0 = vpop.f32.mrb[1].mxu0  ;;  %v7411_v14 = vpop.permute.xlu0 %2708 }
 0x1d8   : > { %v7361_v24 = vadd.f32 %v4828_v0, %v4827_v49  ;;  %v4830_v22 = vpop.f32.mrb[2].mxu0  ;;  %8709 = vst [vmem:[#allocation18_spill] sm:$0xff] %v7411_v14  ;;  %v7413_v49 = vpop.permute.xlu1 %2714 }
 0x1d9   : > { %v4831_v60 = vpop.f32.mrb[3].mxu0  ;;  %8710 = vst [vmem:[#allocation10_spill] sm:$0xff] %v7413_v49 }
 0x1da   : > { %v7363_v23 = vadd.f32 %v4831_v60, %v4830_v22 }
 0x1db   : > { %v7417_v60 = vpop.permute.xlu0 %2712 }
 0x1dc   : > { %8711 = vst [vmem:[#allocation8_spill] sm:$0xff] %v7417_v60 }
 0x1e1   : > { %v4899_v32 = vpop.f32.mrb[0].mxu1 }
 0x1e2   : > { %v4900_v4 = vpop.f32.mrb[1].mxu1 }
 0x1e3   : > { %v7365_v16 = vadd.f32 %v4900_v4, %v4899_v32  ;;  %v4902_v44 = vpop.f32.mrb[2].mxu1 }
 0x1e4   : > { %v4903_v34 = vpop.f32.mrb[3].mxu1 }
 0x1e5   : > { %v7367_v63 = vadd.f32 %v4903_v34, %v4902_v44  ;;  %v7424_v44 = vld [vmem:[%s8594_s2] ss:$0 sm:$0xff] }
 0x1ea   : > { %v4833_v58 = vpop.f32.mrb[4].mxu0 }
 0x1eb   : > { %v4834_v25 = vpop.f32.mrb[5].mxu0 }
 0x1ec   : > { %v4835_v9 = vadd.f32 %v4834_v25, %v4833_v58  ;;  %v4836_v20 = vpop.f32.mrb[6].mxu0  ;;  %v1981_v25 = vadd.f32 %v7361_v24, %v7424_v44 }
 0x1ed   : > { %v4837_v43 = vpop.f32.mrb[7].mxu0 }
 0x1ee   : > { %v4838_v3 = vadd.f32 %v4837_v43, %v4836_v20  ;;  %v1989_v34 = vadd.f32 %v4835_v9, %v7424_v44  ;;  %v7429_v20 = vpop.permute.xlu1 %2718 }
 0x1ef   : > { %8712 = vst [vmem:[#allocation16_spill] sm:$0xff] %v7429_v20 }
 0x1f5   : > { %v4905_v39 = vpop.f32.mrb[4].mxu1 }
 0x1f6   : > { %v4906_v2 = vpop.f32.mrb[5].mxu1 }
 0x1f7   : > { %v7369_v42 = vadd.f32 %v4906_v2, %v4905_v39  ;;  %v4908_v45 = vpop.f32.mrb[6].mxu1  ;;  %v1992_v2 = vadd.f32 %v4838_v3, %v7424_v44 }
 0x1f8   : > { %v4909_v48 = vpop.f32.mrb[7].mxu1 }
 0x1f9   : > { %v7371_v55 = vadd.f32 %v4909_v48, %v4908_v45  ;;  %v7434_v45 = vpop.permute.xlu0 %2716  ;;  %v2085_v49 = vadd.f32 %v7369_v42, %v7424_v44 }
 0x1fa   : > { %8713 = vst [vmem:[#allocation19_spill] sm:$0xff] %v7434_v45 }
 0x201   : > { %v4839_v61 = vpop.f32.mrb[8].mxu0 }
 0x202   : > { %v4840_v29 = vpop.f32.mrb[9].mxu0 }
 0x203   : > { %v7373_v47 = vadd.f32 %v4840_v29, %v4839_v61  ;;  %v4842_v52 = vpop.f32.mrb[10].mxu0  ;;  %v1984_v29 = vadd.f32 %v7363_v23, %v7424_v44 }
 0x204   : > { %v4843_v19 = vpop.f32.mrb[11].mxu0 }
 0x205   : > { %v7375_v53 = vadd.f32 %v4843_v19, %v4842_v52 }
 0x20d   : > { %v4911_v59 = vpop.f32.mrb[8].mxu1 }
 0x20e   : > { %v4912_v15 = vpop.f32.mrb[9].mxu1 }
 0x20f   : > { %v7385_v54 = vadd.f32 %v4912_v15, %v4911_v59  ;;  %v4914_v46 = vpop.f32.mrb[10].mxu1  ;;  %v7446_v59 = vpop.permute.xlu1 %2722 }
 0x210   : > { %v4915_v62 = vpop.f32.mrb[11].mxu1  ;;  %8714 = vst [vmem:[#allocation27_spill] sm:$0xff] %v7446_v59  ;;  %v7449_v15 = vpop.permute.xlu0 %2720 }
 0x211   : > { %v7387_v8 = vadd.f32 %v4915_v62, %v4914_v46  ;;  %8715 = vst [vmem:[#allocation9_spill] sm:$0xff] %v7449_v15 }
 0x216   : > { %v4845_v35 = vpop.f32.mrb[12].mxu0 }
 0x217   : > { %v4846_v27 = vpop.f32.mrb[13].mxu0 }
 0x218   : > { %v4847_v36 = vadd.f32 %v4846_v27, %v4845_v35  ;;  %v4848_v17 = vpop.f32.mrb[14].mxu0 }
 0x219   : > { %v4849_v13 = vpop.f32.mrb[15].mxu0 }
 0x21a   : > { %v4850_v26 = vadd.f32 %v4849_v13, %v4848_v17  ;;  %v2005_v23 = vadd.f32 %v4847_v36, %v7424_v44  ;;  %v1997_v17 = vadd.f32 %v7373_v47, %v7424_v44  ;;  %v7467_v47 = vpop.permute.xlu0 %2724 }
 0x21b   : > { %8717 = vst [vmem:[#allocation11_spill] sm:$0xff] %v7467_v47 }
 0x221   : > { %v4917_v37 = vpop.f32.mrb[12].mxu1 }
 0x222   : > { %v4918_v33 = vpop.f32.mrb[13].mxu1 }
 0x223   : > { %v7401_v50 = vadd.f32 %v4918_v33, %v4917_v37  ;;  %v4920_v51 = vpop.f32.mrb[14].mxu1 }
 0x224   : > { %v4921_v11 = vpop.f32.mrb[15].mxu1 }
 0x225   : > { %v7407_v41 = vadd.f32 %v4921_v11, %v4920_v51  ;;  %v2008_v51 = vadd.f32 %v4850_v26, %v7424_v44 }
 0x22d   : > { %v4851_v57 = vpop.f32.mrb[16].mxu0 }
 0x22e   : > { %v4852_v5 = vpop.f32.mrb[17].mxu0 }
 0x22f   : > { %v7415_v0 = vadd.f32 %v4852_v5, %v4851_v57  ;;  %v4854_v22 = vpop.f32.mrb[18].mxu0  ;;  %v2000_v5 = vadd.f32 %v7375_v53, %v7424_v44 }
 0x230   : > { %v4855_v32 = vpop.f32.mrb[19].mxu0 }
 0x231   : > { %v7419_v4 = vadd.f32 %v4855_v32, %v4854_v22 }
 0x234   : > { %v4956_v58 = vpop.f32.mrb[16].mxu1 }
 0x235   : > { %v7431_v43 = vadd.f32 %v4956_v58, %v1989_v34  ;;  %v2141_v39 = vpop.f32.mrb[17].mxu1  ;;  %v7463_v34 = vpop.permute.xlu1 %2726 }
 0x236   : > { %v7436_v48 = vadd.f32 %v2141_v39, %v1981_v25  ;;  %v4957_v61 = vpop.f32.mrb[18].mxu1  ;;  %8716 = vst [vmem:[#allocation12_spill] sm:$0xff] %v7463_v34  ;;  %v7476_v39 = vpop.permute.xlu0 %2728 }
 0x237   : > { %5099 = vtanh.f32 %v7431_v43  ;;  %v7441_v9 = vadd.f32 %v4957_v61, %v1992_v2  ;;  %v2144_v24 = vpop.f32.mrb[19].mxu1  ;;  %8719 = vst [vmem:[#allocation13_spill] sm:$0xff] %v7476_v39 }
 0x238   : > { %v7443_v52 = vadd.f32 %v2144_v24, %v1984_v29 }
 0x239   : > { %5101 = vtanh.f32 %v7441_v9  ;;  %v7474_v53 = vpop.permute.xlu1 %2730 }
 0x23a   : > { %v4857_v19 = vpop.f32.mrb[20].mxu0  ;;  %5103 = vtanh.f32 %v7436_v48  ;;  %8718 = vst [vmem:[#allocation14_spill] sm:$0xff] %v7474_v53 }
 0x23b   : > { %v4858_v3 = vpop.f32.mrb[21].mxu0  ;;  %5105 = vtanh.f32 %v7443_v52 }
 0x23c   : > { %v4859_v46 = vadd.f32 %v4858_v3, %v4857_v19  ;;  %v4860_v62 = vpop.f32.mrb[22].mxu0 }
 0x23d   : > { %v4861_v35 = vpop.f32.mrb[23].mxu0  ;;  %v4960_v27 = vpop.f32.mrb[20].mxu1 }
 0x23e   : > { %v4862_v13 = vadd.f32 %v4861_v35, %v4860_v62  ;;  %v7454_v37 = vadd.f32 %v4960_v27, %v2005_v23  ;;  %v2157_v33 = vpop.f32.mrb[21].mxu1  ;;  %v7480_v62 = vpop.permute.xlu1 %2734  ;;  %v2021_v27 = vadd.f32 %v4859_v46, %v7424_v44  ;;  %v2016_v46 = vadd.f32 %v7419_v4, %v7424_v44 }
 0x23f   : > { %v7457_v11 = vadd.f32 %v2157_v33, %v1997_v17  ;;  %v4961_v57 = vpop.f32.mrb[22].mxu1  ;;  %8720 = vst [vmem:[#allocation17_spill] sm:$0xff] %v7480_v62  ;;  %v7482_v35 = vpop.permute.xlu0 %2732 }
 0x240   : > { %v7461_v22 = vadd.f32 %v4961_v57, %v2008_v51  ;;  %v2160_v36 = vpop.f32.mrb[23].mxu1  ;;  %5107 = vtanh.f32 %v7454_v37  ;;  %8721 = vst [vmem:[#allocation15_spill] sm:$0xff] %v7482_v35  ;;  %v2013_v51 = vadd.f32 %v7415_v0, %v7424_v44 }
 0x241   : > { %v5100_v32 = vpop.eup %5099  ;;  %v7465_v58 = vadd.f32 %v2160_v36, %v2000_v5  ;;  %5109 = vtanh.f32 %v7457_v11 }
 0x242   : > { %3232 = vrot.lane.b32.xlu0 %v5100_v32, %s5759_s10  ;;  %5111 = vtanh.f32 %v7461_v22  ;;  %v2024_v32 = vadd.f32 %v4862_v13, %v7424_v44 }
 0x243   : > { %v5102_v26 = vpop.eup %5101  ;;  %5113 = vtanh.f32 %v7465_v58  ;;  %v7500_v0 = vpop.permute.xlu0 %2736 }
 0x244   : > { %v5104_v25 = vpop.eup %5103  ;;  %3234 = vrot.lane.b32.xlu1 %v5102_v26, %s5759_s10  ;;  %8724 = vst [vmem:[#allocation20_spill] sm:$0xff] %v7500_v0 }
 0x245   : > { %v5106_v3 = vpop.eup %5105 }
 0x246   : > { %3228 = vrot.lane.b32.xlu0 %v5104_v25, %s5759_s10  ;;  %v7495_v25 = vpop.permute.xlu1 %2738 }
 0x247   : > { %8723 = vst [vmem:[#allocation21_spill] sm:$0xff] %v7495_v25  ;;  %v7511_v53 = vpop.permute.xlu0 %2740 }
 0x248   : > { %3230 = vrot.lane.b32.xlu1 %v5106_v3, %s5759_s10  ;;  %8727 = vst [vmem:[#allocation30_spill] sm:$0xff] %v7511_v53 }
 0x249   : > { %v4863_v2 = vpop.f32.mrb[24].mxu0 }
 0x24a   : > { %v4864_v61 = vpop.f32.mrb[25].mxu0  ;;  %v5108_v17 = vpop.eup %5107 }
 0x24b   : > { %v4865_v29 = vadd.f32 %v4864_v61, %v4863_v2  ;;  %v4866_v24 = vpop.f32.mrb[26].mxu0  ;;  %3240 = vrot.lane.b32.xlu0 %v5108_v17, %s5759_s10  ;;  %v5110_v61 = vpop.eup %5109 }
 0x24c   : > { %v4867_v19 = vpop.f32.mrb[27].mxu0  ;;  %v5112_v3 = vpop.eup %5111 }
 0x24d   : > { %v4868_v23 = vadd.f32 %v4867_v19, %v4866_v24  ;;  %3242 = vrot.lane.b32.xlu1 %v5112_v3, %s5759_s10  ;;  %v7509_v4 = vpop.permute.xlu1 %2742 }
 0x24e   : > { %8726 = vst [vmem:[#allocation29_spill] sm:$0xff] %v7509_v4 }
 0x24f   : > { %3236 = vrot.lane.b32.xlu0 %v5110_v61, %s5759_s10 }
 0x250   : > { %v4964_v33 = vpop.f32.mrb[24].mxu1 }
 0x251   : > { %v7490_v57 = vadd.f32 %v4964_v33, %v2021_v27  ;;  %v2173_v5 = vpop.f32.mrb[25].mxu1 }
 0x252   : > { %v7492_v36 = vadd.f32 %v2173_v5, %v2013_v51  ;;  %v4965_v26 = vpop.f32.mrb[26].mxu1  ;;  %v5114_v5 = vpop.eup %5113 }
 0x253   : > { %5115 = vtanh.f32 %v7490_v57  ;;  %v2176_v2 = vpop.f32.mrb[27].mxu1  ;;  %v7502_v24 = vadd.f32 %v4965_v26, %v2024_v32  ;;  %3238 = vrot.lane.b32.xlu1 %v5114_v5, %s5759_s10 }
 0x254   : > { %8722 = vst [vmem:[#allocation25_spill] sm:$0xff] %v7492_v36  ;;  %v7505_v19 = vadd.f32 %v2176_v2, %v2016_v46  ;;  %5117 = vtanh.f32 %v7492_v36  ;;  %v2029_v2 = vadd.f32 %v4865_v29, %v7424_v44 }
 0x255   : > { %5119 = vtanh.f32 %v7502_v24 }
 0x256   : > { %8725 = vst [vmem:[#allocation28_spill] sm:$0xff] %v7505_v19  ;;  %v4869_v13 = vpop.f32.mrb[28].mxu0  ;;  %5121 = vtanh.f32 %v7505_v19 }
 0x257   : > { %v4870_v27 = vpop.f32.mrb[29].mxu0 }
 0x258   : > { %v4871_v17 = vadd.f32 %v4870_v27, %v4869_v13  ;;  %v4872_v33 = vpop.f32.mrb[30].mxu0 }
 0x259   : > { %v4873_v51 = vpop.f32.mrb[31].mxu0  ;;  %v4968_v46 = vpop.f32.mrb[28].mxu1 }
 0x25a   : > { %v4874_v32 = vadd.f32 %v4873_v51, %v4872_v33  ;;  %v2037_v26 = vadd.f32 %v4871_v17, %v7424_v44  ;;  %v2189_v61 = vpop.f32.mrb[29].mxu1  ;;  %v2032_v33 = vadd.f32 %v4868_v23, %v7424_v44  ;;  %v7524_v17 = vpop.permute.xlu1 %2746 }
 0x25b   : > { %v7518_v39 = vadd.f32 %v2189_v61, %v2029_v2  ;;  %v4969_v13 = vpop.f32.mrb[30].mxu1  ;;  %8730 = vst [vmem:[#allocation33_spill] sm:$0xff] %v7524_v17 }
 0x25c   : > { %v7516_v3 = vadd.f32 %v4968_v46, %v2037_v26  ;;  %v2040_v4 = vadd.f32 %v4874_v32, %v7424_v44  ;;  %v2192_v51 = vpop.f32.mrb[31].mxu1  ;;  %v7530_v26 = vpop.permute.xlu0 %2744 }
 0x25d   : > { %8729 = vst [vmem:[#allocation32_spill] sm:$0xff] %v7518_v39  ;;  %v5116_v27 = vpop.eup %5115  ;;  %v7528_v5 = vadd.f32 %v2192_v51, %v2032_v33  ;;  %8731 = vst [vmem:[#allocation34_spill] sm:$0xff] %v7530_v26  ;;  %5123 = vtanh.f32 %v7518_v39 }
 0x25e   : > { %8728 = vst [vmem:[#allocation31_spill] sm:$0xff] %v7516_v3  ;;  %3248 = vrot.lane.b32.xlu0 %v5116_v27, %s5759_s10  ;;  %v7526_v29 = vadd.f32 %v4969_v13, %v2040_v4  ;;  %v5118_v46 = vpop.eup %5117  ;;  %v7534_v2 = vpop.permute.xlu1 %3038  ;;  %5125 = vtanh.f32 %v7516_v3 }
 0x25f   : > { %8732 = vst [vmem:[#allocation35_spill] sm:$0xff] %v7534_v2  ;;  %v5120_v27 = vpop.eup %5119  ;;  %5127 = vtanh.f32 %v7528_v5 }
 0x260   : > { %v7536_v23 = vpop.permute.xlu0 %3036  ;;  %3250 = vrot.lane.b32.xlu1 %v5120_v27, %s5759_s10  ;;  %v5122_v33 = vpop.eup %5121  ;;  %5129 = vtanh.f32 %v7526_v29 }
 0x261   : > { %8733 = vst [vmem:[#allocation36_spill] sm:$0xff] %v7536_v23 }
 0x262   : > { %3244 = vrot.lane.b32.xlu0 %v5118_v46, %s5759_s10  ;;  %v7540_v51 = vpop.permute.xlu1 %3042 }
 0x263   : > { %8734 = vst [vmem:[#allocation37_spill] sm:$0xff] %v7540_v51 }
 0x264   : > { %v7542_v34 = vpop.permute.xlu0 %3040  ;;  %3246 = vrot.lane.b32.xlu1 %v5122_v33, %s5759_s10 }
 0x265   : > { %v4875_v32 = vpop.f32.mrb[32].mxu0  ;;  %8735 = vst [vmem:[#allocation38_spill] sm:$0xff] %v7542_v34 }
 0x266   : > { %v4876_v61 = vpop.f32.mrb[33].mxu0  ;;  %v7549_v62 = vpop.permute.xlu1 %3046 }
 0x267   : > { %v4877_v53 = vadd.f32 %v4876_v61, %v4875_v32  ;;  %v4878_v17 = vpop.f32.mrb[34].mxu0  ;;  %8736 = vst [vmem:[#allocation39_spill] sm:$0xff] %v7549_v62  ;;  %v5124_v33 = vpop.eup %5123 }
 0x268   : > { %v4879_v4 = vpop.f32.mrb[35].mxu0  ;;  %v7552_v47 = vpop.permute.xlu0 %3044  ;;  %3252 = vrot.lane.b32.xlu0 %v5124_v33, %s5759_s10 }
 0x269   : > { %v4880_v13 = vadd.f32 %v4879_v4, %v4878_v17  ;;  %v2045_v26 = vadd.f32 %v4877_v53, %v7424_v44  ;;  %8737 = vst [vmem:[#allocation40_spill] sm:$0xff] %v7552_v47  ;;  %v5126_v15 = vpop.eup %5125 }
 0x26a   : > { %v5128_v45 = vpop.eup %5127 }
 0x26b   : > { %v2048_v17 = vadd.f32 %v4880_v13, %v7424_v44  ;;  %3254 = vrot.lane.b32.xlu1 %v5128_v45, %s5759_s10 }
 0x26c   : > { %v4972_v46 = vpop.f32.mrb[32].mxu1  ;;  %v7561_v0 = vpop.permute.xlu0 %3048  ;;  %3256 = vrot.lane.b32.xlu0 %v5126_v15, %s5759_s10 }
 0x26d   : > { %v2205_v32 = vpop.f32.mrb[33].mxu1  ;;  %8739 = vst [vmem:[#allocation42_spill] sm:$0xff] %v7561_v0 }
 0x26e   : > { %v7547_v61 = vadd.f32 %v2205_v32, %v2045_v26  ;;  %v4973_v27 = vpop.f32.mrb[34].mxu1  ;;  %v7559_v26 = vpop.permute.xlu1 %3050 }
 0x26f   : > { %v2208_v4 = vpop.f32.mrb[35].mxu1  ;;  %8738 = vst [vmem:[#allocation41_spill] sm:$0xff] %v7559_v26 }
 0x270   : > { %v7555_v25 = vadd.f32 %v2208_v4, %v2048_v17  ;;  %5131 = vtanh.f32 %v7547_v61  ;;  %v7569_v62 = vpop.permute.xlu0 %3052 }
 0x271   : > { %8741 = vst [vmem:[#allocation44_spill] sm:$0xff] %v7569_v62 }
 0x272   : > { %v7566_v4 = vpop.permute.xlu1 %3054  ;;  %5133 = vtanh.f32 %v7555_v25 }
 0x273   : > { %v4881_v35 = vpop.f32.mrb[36].mxu0  ;;  %8740 = vst [vmem:[#allocation43_spill] sm:$0xff] %v7566_v4 }
 0x274   : > { %v4882_v53 = vpop.f32.mrb[37].mxu0 }
 0x275   : > { %v4884_v32 = vpop.f32.mrb[38].mxu0  ;;  %v4883_v13 = vadd.f32 %v4882_v53, %v4881_v35  ;;  %v5130_v53 = vpop.eup %5129 }
 0x276   : > { %v4885_v59 = vpop.f32.mrb[39].mxu0  ;;  %3258 = vrot.lane.b32.xlu1 %v5130_v53, %s5759_s10 }
 0x277   : > { %v4886_v20 = vadd.f32 %v4885_v59, %v4884_v32  ;;  %v2053_v17 = vadd.f32 %v4883_v13, %v7424_v44  ;;  %v7583_v32 = vpop.permute.xlu1 %3058 }
 0x278   : > { %8742 = vst [vmem:[#allocation45_spill] sm:$0xff] %v7583_v32 }
 0x279   : > { %v2056_v33 = vadd.f32 %v4886_v20, %v7424_v44  ;;  %v7572_v47 = vadd.f32 %v4972_v46, %v2053_v17  ;;  %v7586_v17 = vpop.permute.xlu0 %3056 }
 0x27a   : > { %v5132_v13 = vpop.eup %5131  ;;  %8743 = vst [vmem:[#allocation46_spill] sm:$0xff] %v7586_v17  ;;  %v2077_v17 = vadd.f32 %v7365_v16, %v7424_v44 }
 0x27b   : > { %v7575_v35 = vadd.f32 %v4973_v27, %v2056_v33  ;;  %5135 = vtanh.f32 %v7572_v47  ;;  %3260 = vrot.lane.b32.xlu0 %v5132_v13, %s5759_s10  ;;  %v7589_v45 = vpop.permute.xlu1 %3062 }
 0x27c   : > { %v7578_v59 = vpop.f32.mrb[36].mxu1  ;;  %8744 = vst [vmem:[#allocation47_spill] sm:$0xff] %v7589_v45  ;;  %v5134_v33 = vpop.eup %5133 }
 0x27d   : > { %5137 = vtanh.f32 %v7575_v35  ;;  %v2221_v15 = vpop.f32.mrb[37].mxu1  ;;  %v7591_v4 = vpop.permute.xlu0 %3060  ;;  %3262 = vrot.lane.b32.xlu1 %v5134_v33, %s5759_s10 }
 0x27e   : > { %v7581_v20 = vpop.f32.mrb[38].mxu1  ;;  %8745 = vst [vmem:[#allocation48_spill] sm:$0xff] %v7591_v4  ;;  %v2088_v4 = vadd.f32 %v7371_v55, %v7424_v44 }
 0x27f   : > { %v2224_v46 = vpop.f32.mrb[39].mxu1 }
 0x281   : > { %v7613_v55 = vpop.permute.xlu0 %3064 }
 0x282   : > { %8746 = vst [vmem:[#allocation49_spill] sm:$0xff] %v7613_v55 }
 0x283   : > { %v4887_v27 = vpop.f32.mrb[40].mxu0 }
 0x284   : > { %v4888_v62 = vpop.f32.mrb[41].mxu0 }
 0x285   : > { %v4889_v32 = vadd.f32 %v4888_v62, %v4887_v27  ;;  %v4890_v53 = vpop.f32.mrb[42].mxu0  ;;  %v4980_v60 = vpop.f32.mrb[40].mxu1 }
 0x286   : > { %v5136_v26 = vpop.eup %5135  ;;  %v4891_v13 = vpop.f32.mrb[43].mxu0  ;;  %v7598_v0 = vadd.f32 %v4980_v60, %v2085_v49 }
 0x287   : > { %v2237_v45 = vpop.f32.mrb[41].mxu1  ;;  %v5138_v2 = vpop.eup %5137  ;;  %v2061_v23 = vadd.f32 %v4889_v32, %v7424_v44  ;;  %3264 = vrot.lane.b32.xlu0 %v5136_v26, %s5759_s10  ;;  %v4892_v42 = vadd.f32 %v4891_v13, %v4890_v53 }
 0x288   : > { %v7604_v62 = vadd.f32 %v2237_v45, %v2077_v17  ;;  %v4981_v27 = vpop.f32.mrb[42].mxu1  ;;  %5139 = vtanh.f32 %v7598_v0  ;;  %3266 = vrot.lane.b32.xlu1 %v5138_v2, %s5759_s10  ;;  %v7617_v26 = vpop.permute.xlu1 %3066  ;;  %v2080_v17 = vadd.f32 %v7367_v63, %v7424_v44  ;;  %v2101_v2 = vadd.f32 %v7401_v50, %v7424_v44 }
 0x289   : > { %v7607_v16 = vadd.f32 %v4981_v27, %v2088_v4  ;;  %v2240_v33 = vpop.f32.mrb[43].mxu1  ;;  %v7609_v49 = vadd.f32 %v2221_v15, %v2061_v23  ;;  %v2064_v60 = vadd.f32 %v4892_v42, %v7424_v44  ;;  %8748 = vst [vmem:[#allocation51_spill] sm:$0xff] %v7617_v26  ;;  %v7623_v4 = vpop.permute.xlu0 %3068  ;;  %v2093_v63 = vadd.f32 %v7385_v54, %v7424_v44 }
 0x28a   : > { %v7621_v45 = vadd.f32 %v2240_v33, %v2080_v17  ;;  %8750 = vst [vmem:[#allocation53_spill] sm:$0xff] %v7623_v4  ;;  %5141 = vtanh.f32 %v7604_v62 }
 0x28b   : > { %v7615_v32 = vadd.f32 %v2224_v46, %v2064_v60  ;;  %5143 = vtanh.f32 %v7607_v16 }
 0x28c   : > { %8749 = vst [vmem:[#allocation52_spill] sm:$0xff] %v7621_v45  ;;  %v7625_v23 = vpop.permute.xlu1 %3070  ;;  %5145 = vtanh.f32 %v7609_v49 }
 0x28d   : > { %8747 = vst [vmem:[#allocation50_spill] sm:$0xff] %v7615_v32  ;;  %8751 = vst [vmem:[#allocation54_spill] sm:$0xff] %v7625_v23  ;;  %v2104_v23 = vadd.f32 %v7407_v41, %v7424_v44  ;;  %v7637_v50 = vpop.permute.xlu0 %3072  ;;  %5147 = vtanh.f32 %v7621_v45 }
 0x28e   : > { %8753 = vst [vmem:[#allocation56_spill] sm:$0xff] %v7637_v50  ;;  %5149 = vtanh.f32 %v7615_v32  ;;  %v5628_v50 = vld [vmem:[%s6901_s21 + $0x38] sm:$0xff] }
 0x28f   : > { %v4893_v53 = vpop.f32.mrb[44].mxu0 }
 0x290   : > { %v4894_v15 = vpop.f32.mrb[45].mxu0  ;;  %v7648_v41 = vpop.permute.xlu1 %3074 }
 0x291   : > { %v4895_v13 = vadd.f32 %v4894_v15, %v4893_v53  ;;  %v4896_v42 = vpop.f32.mrb[46].mxu0  ;;  %v4984_v46 = vpop.f32.mrb[44].mxu1  ;;  %8757 = vst [vmem:[#allocation60_spill] sm:$0xff] %v7648_v41 }
 0x292   : > { %v5140_v27 = vpop.eup %5139  ;;  %v7629_v60 = vadd.f32 %v4984_v46, %v2101_v2  ;;  %v4897_v26 = vpop.f32.mrb[47].mxu0 }
 0x293   : > { %v2253_v33 = vpop.f32.mrb[45].mxu1  ;;  %v2069_v17 = vadd.f32 %v4895_v13, %v7424_v44  ;;  %v4898_v4 = vadd.f32 %v4897_v26, %v4896_v42  ;;  %3280 = vrot.lane.b32.xlu0 %v5140_v27, %s5759_s10  ;;  %v2096_v42 = vadd.f32 %v7387_v8, %v7424_v44  ;;  %v7656_v46 = vpop.permute.xlu0 %3076 }
 0x294   : > { %8752 = vst [vmem:[#allocation55_spill] sm:$0xff] %v7629_v60  ;;  %v4985_v55 = vpop.f32.mrb[46].mxu1  ;;  %v7639_v53 = vadd.f32 %v2253_v33, %v2093_v63  ;;  %8759 = vst [vmem:[#allocation62_spill] sm:$0xff] %v7656_v46  ;;  %v2303_v63 = vld [vmem:[%s8595_s3 + $0x18] sm:$0xff]  ;;  %v2301_v33 = vld [vmem:[%s8595_s3 + $0x8] sm:$0xff]  ;;  %5151 = vtanh.f32 %v7629_v60 }
 0x295   : > { %v2256_v15 = vpop.f32.mrb[47].mxu1  ;;  %v7642_v2 = vadd.f32 %v7578_v59, %v2069_v17  ;;  %v2072_v54 = vadd.f32 %v4898_v4, %v7424_v44  ;;  %v7645_v13 = vadd.f32 %v4985_v55, %v2104_v23  ;;  %v2302_v59 = vld [vmem:[%s8595_s3 + $0x10] sm:$0xff]  ;;  %v2300_v55 = vld [vmem:[%s8595_s3] sm:$0xff]  ;;  %v7667_v4 = vpop.permute.xlu1 %3078 }
 0x296   : > { %8754 = vst [vmem:[#allocation57_spill] sm:$0xff] %v7639_v53  ;;  %8761 = vst [vmem:[#allocation64_spill] sm:$0xff] %v7667_v4  ;;  %v5623_v23 = vld [vmem:[%s6901_s21 + $0x10] sm:$0xff]  ;;  %v5624_v44 = vld [vmem:[%s6901_s21] sm:$0xff]  ;;  %5153 = vtanh.f32 %v7639_v53 }
 0x297   : > { %8755 = vst [vmem:[#allocation58_spill] sm:$0xff] %v7642_v2  ;;  %8756 = vst [vmem:[#allocation59_spill] sm:$0xff] %v7645_v13  ;;  %v7651_v26 = vadd.f32 %v7581_v20, %v2072_v54  ;;  %v7665_v20 = vadd.f32 %v2256_v15, %v2096_v42  ;;  %v2334_v8 = vmul.f32 %v5623_v23, %v2302_v59  ;;  %v7678_v17 = vpop.permute.xlu0 %3080  ;;  %v5142_v15 = vpop.eup %5141  ;;  %v5625_v42 = vld [vmem:[%s6901_s21 + $0x18] sm:$0xff]  ;;  %v5626_v23 = vld [vmem:[%s6901_s21 + $0x8] sm:$0xff] }
 0x298   : > { %v2332_v27 = vmul.f32 %v5624_v44, %v2300_v55  ;;  %8762 = vst [vmem:[#allocation65_spill] sm:$0xff] %v7678_v17  ;;  %v2335_v59 = vmul.f32 %v5625_v42, %v2303_v63  ;;  %3276 = vrot.lane.b32.xlu0 %v5142_v15, %s5759_s10  ;;  %v2333_v44 = vmul.f32 %v5626_v23, %v2301_v33  ;;  %v2306_v4 = vld [vmem:[%s8595_s3 + $0x30] sm:$0xff]  ;;  %v2307_v63 = vld [vmem:[%s8595_s3 + $0x38] sm:$0xff] }
 0x299   : > { %8758 = vst [vmem:[#allocation61_spill] sm:$0xff] %v7651_v26  ;;  %8760 = vst [vmem:[#allocation63_spill] sm:$0xff] %v7665_v20  ;;  %v2366_v54 = vadd.f32 %v2334_v8, %v7431_v43  ;;  %v7690_v17 = vpop.permute.xlu1 %3082  ;;  %v5144_v8 = vpop.eup %5143  ;;  %v5627_v15 = vld [vmem:[%s6901_s21 + $0x30] sm:$0xff]  ;;  %v2339_v51 = vmul.f32 %v5628_v50, %v2307_v63 }
 0x29a   : > { %v2364_v55 = vadd.f32 %v2332_v27, %v7436_v48  ;;  %8763 = vst [vmem:[#allocation66_spill] sm:$0xff] %v7690_v17  ;;  %v5146_v42 = vpop.eup %5145  ;;  %3282 = vrot.lane.b32.xlu1 %v5144_v8, %s5759_s10  ;;  %v2367_v33 = vadd.f32 %v2335_v59, %v7441_v9  ;;  %v2338_v23 = vmul.f32 %v5627_v15, %v2306_v4  ;;  %v2305_v4 = vld [vmem:[%s8595_s3 + $0x28] sm:$0xff]  ;;  %v5629_v8 = vld [vmem:[%s6901_s21 + $0x20] sm:$0xff] }
 0x29b   : > { %v4706_v27 = vmul.f32 -1.442695, %v2366_v54  ;;  %v7699_v46 = vpop.permute.xlu0 %3084  ;;  %v2365_v17 = vadd.f32 %v2333_v44, %v7443_v52  ;;  %v5148_v34 = vpop.eup %5147  ;;  %v2304_v54 = vld [vmem:[%s8595_s3 + $0x20] sm:$0xff] }
 0x29c   : > { %3268 = vrot.lane.b32.xlu0 %v5146_v42, %s5759_s10  ;;  %8764 = vst [vmem:[#allocation67_spill] sm:$0xff] %v7699_v46  ;;  %v4704_v41 = vmul.f32 -1.442695, %v2364_v55  ;;  %v4707_v55 = vmul.f32 -1.442695, %v2367_v33  ;;  %v2370_v50 = vadd.f32 %v2338_v23, %v7454_v37  ;;  %v2336_v63 = vmul.f32 %v5629_v8, %v2304_v54  ;;  %v5150_v15 = vpop.eup %5149  ;;  %v5630_v46 = vld [vmem:[%s6901_s21 + $0x28] sm:$0xff] }
 0x29d   : > { %v7711_v59 = vpop.permute.xlu1 %3086  ;;  %5155 = vpow2.f32 %v4706_v27  ;;  %v4705_v44 = vmul.f32 -1.442695, %v2365_v17  ;;  %v2371_v42 = vadd.f32 %v2339_v51, %v7461_v22  ;;  %v2337_v12 = vmul.f32 %v5630_v46, %v2305_v4  ;;  %v2311_v46 = vld [vmem:[%s8595_s3 + $0x58] sm:$0xff]  ;;  %v5631_v54 = vld [vmem:[%s6901_s21 + $0x50] sm:$0xff] }
 0x29e   : > { %3278 = vrot.lane.b32.xlu1 %v5148_v34, %s5759_s10  ;;  %8765 = vst [vmem:[#allocation68_spill] sm:$0xff] %v7711_v59  ;;  %5157 = vpow2.f32 %v4704_v41  ;;  %v2310_v34 = vld [vmem:[%s8595_s3 + $0x50] sm:$0xff]  ;;  %v5152_v33 = vpop.eup %5151  ;;  %v2308_v41 = vld [vmem:[%s8595_s3 + $0x40] sm:$0xff]  ;;  %v4710_v51 = vmul.f32 -1.442695, %v2370_v50  ;;  %v2368_v17 = vadd.f32 %v2336_v63, %v7457_v11 }
 0x29f   : > { %5159 = vtanh.f32 %v7645_v13  ;;  %v7721_v27 = vpop.permute.xlu0 %3088  ;;  %v4711_v23 = vmul.f32 -1.442695, %v2371_v42  ;;  %v2342_v4 = vmul.f32 %v5631_v54, %v2310_v34  ;;  %v2369_v59 = vadd.f32 %v2337_v12, %v7465_v58  ;;  %v2309_v12 = vld [vmem:[%s8595_s3 + $0x48] sm:$0xff] }
 0x2a0   : > { %8766 = vst [vmem:[#allocation69_spill] sm:$0xff] %v7721_v27  ;;  %5161 = vtanh.f32 %v7642_v2  ;;  %3288 = vrot.lane.b32.xlu0 %v5152_v33, %s5759_s10  ;;  %v5632_v27 = vld [vmem:[%s6901_s21 + $0x40] sm:$0xff]  ;;  %v5154_v33 = vpop.eup %5153 }
 0x2a1   : > { %5163 = vpow2.f32 %v4707_v55  ;;  %v7734_v8 = vpop.permute.xlu1 %3090  ;;  %v5633_v55 = vld [vmem:[%s6901_s21 + $0x58] sm:$0xff]  ;;  %v2374_v63 = vadd.f32 %v2342_v4, %v7490_v57  ;;  %v4709_v34 = vmul.f32 -1.442695, %v2369_v59  ;;  %v5634_v59 = vld [vmem:[%s6901_s21 + $0x48] sm:$0xff] }
 0x2a2   : > { %3270 = vrot.lane.b32.xlu1 %v5150_v15, %s5759_s10  ;;  %5165 = vpow2.f32 %v4705_v44  ;;  %8767 = vst [vmem:[#allocation70_spill] sm:$0xff] %v7734_v8  ;;  %v2340_v15 = vmul.f32 %v5632_v27, %v2308_v41  ;;  %v2343_v50 = vmul.f32 %v5633_v55, %v2311_v46  ;;  %v4708_v44 = vmul.f32 -1.442695, %v2368_v17 }
 0x2a3   : > { %5167 = vtanh.f32 %v7665_v20  ;;  %v7740_v14 = vpop.permute.xlu0 %3092  ;;  %v2341_v4 = vmul.f32 %v5634_v59, %v2309_v12  ;;  %v5635_v59 = vld [vmem:[%s6901_s21 + $0x60] sm:$0xff] }
 0x2a4   : > { %5169 = vpow2.f32 %v4710_v51  ;;  %8768 = vst [vmem:[#allocation71_spill] sm:$0xff] %v7740_v14  ;;  %v2372_v54 = vadd.f32 %v2340_v15, %v7492_v36  ;;  %3284 = vrot.lane.b32.xlu0 %v5154_v33, %s5759_s10  ;;  %v2375_v41 = vadd.f32 %v2343_v50, %v7502_v24 }
 0x2a5   : > { %5171 = vpow2.f32 %v4711_v23  ;;  %v7750_v51 = vpop.permute.xlu1 %3094  ;;  %v4714_v23 = vmul.f32 -1.442695, %v2374_v63 }
 0x2a6   : > { %5173 = vtanh.f32 %v7651_v26  ;;  %8769 = vst [vmem:[#allocation72_spill] sm:$0xff] %v7750_v51  ;;  %v4712_v55 = vmul.f32 -1.442695, %v2372_v54  ;;  %v4715_v8 = vmul.f32 -1.442695, %v2375_v41  ;;  %v2312_v54 = vld [vmem:[%s8595_s3 + $0x60] sm:$0xff] }
 0x2a7   : > { %v5156_v42 = vpop.eup %5155  ;;  %5175 = vpow2.f32 %v4708_v44  ;;  %v7755_v14 = vpop.permute.xlu0 %3096  ;;  %v2373_v44 = vadd.f32 %v2341_v4, %v7505_v19  ;;  %v2344_v4 = vmul.f32 %v5635_v59, %v2312_v54 }
 0x2a8   : > { %v5158_v27 = vpop.eup %5157  ;;  %5177 = vpow2.f32 %v4709_v34  ;;  %8770 = vst [vmem:[#allocation73_spill] sm:$0xff] %v7755_v14  ;;  %v2494_v56 = vadd.f32 1.0, %v5156_v42 }
 0x2a9   : > { %v5160_v46 = vpop.eup %5159  ;;  %5179 = vpow2.f32 %v4714_v23  ;;  %v7759_v63 = vpop.permute.xlu1 %3098  ;;  %v2492_v34 = vadd.f32 1.0, %v5158_v27  ;;  %v4713_v23 = vmul.f32 -1.442695, %v2373_v44  ;;  %v2314_v27 = vld [vmem:[%s8595_s3 + $0x70] sm:$0xff]  ;;  %v2376_v54 = vadd.f32 %v2344_v4, %v7518_v39  ;;  %v2315_v4 = vld [vmem:[%s8595_s3 + $0x78] sm:$0xff] }
 0x2aa   : > { %v5162_v17 = vpop.eup %5161  ;;  %3290 = vrot.lane.b32.xlu1 %v5160_v46, %s5759_s10  ;;  %8771 = vst [vmem:[#allocation74_spill] sm:$0xff] %v7759_v63  ;;  %5181 = vpow2.f32 %v4712_v55  ;;  %v2347_v36 = vmul.f32 %v5638_v31, %v2315_v4  ;;  %v5639_v4 = vld [vmem:[%s6901_s21 + $0x80] sm:$0xff] }
 0x2ab   : > { %v5164_v15 = vpop.eup %5163  ;;  %3272 = vrot.lane.b32.xlu0 %v5162_v17, %s5759_s10  ;;  %5183 = vpow2.f32 %v4715_v8  ;;  %v4716_v63 = vmul.f32 -1.442695, %v2376_v54 }
 0x2ac   : > { %v5166_v33 = vpop.eup %5165  ;;  %v2495_v51 = vadd.f32 1.0, %v5164_v15  ;;  %5185 = vrcp.f32 %v2494_v56  ;;  %v5636_v56 = vld [vmem:[%s6901_s21 + $0x70] sm:$0xff] }
 0x2ad   : > { %v5168_v50 = vpop.eup %5167  ;;  %v2493_v41 = vadd.f32 1.0, %v5166_v33  ;;  %v2346_v44 = vmul.f32 %v5636_v56, %v2314_v27  ;;  %v5637_v27 = vld [vmem:[%s6901_s21 + $0x68] sm:$0xff] }
 0x2ae   : > { %3286 = vrot.lane.b32.xlu1 %v5168_v50, %s5759_s10  ;;  %v5170_v12 = vpop.eup %5169  ;;  %5187 = vrcp.f32 %v2495_v51  ;;  %v2313_v51 = vld [vmem:[%s8595_s3 + $0x68] sm:$0xff] }
 0x2af   : > { %v5172_v46 = vpop.eup %5171  ;;  %v2498_v15 = vadd.f32 1.0, %v5170_v12  ;;  %5189 = vrcp.f32 %v2492_v34 }
 0x2b0   : > { %v5174_v42 = vpop.eup %5173  ;;  %v2499_v50 = vadd.f32 1.0, %v5172_v46  ;;  %5191 = vrcp.f32 %v2493_v41 }
 0x2b1   : > { %v5176_v55 = vpop.eup %5175  ;;  %5193 = vpow2.f32 %v4713_v23  ;;  %v2378_v23 = vadd.f32 %v2346_v44, %v7516_v3  ;;  %v2316_v44 = vld [vmem:[%s8595_s3 + $0x80] sm:$0xff] }
 0x2b2   : > { %3274 = vrot.lane.b32.xlu1 %v5174_v42, %s5759_s10  ;;  %v5178_v8 = vpop.eup %5177  ;;  %v2496_v59 = vadd.f32 1.0, %v5176_v55  ;;  %5195 = vrcp.f32 %v2498_v15  ;;  %v2345_v55 = vmul.f32 %v5637_v27, %v2313_v51  ;;  %v2348_v27 = vmul.f32 %v5639_v4, %v2316_v44 }
 0x2b3   : > { %v5180_v42 = vpop.eup %5179  ;;  %v2497_v34 = vadd.f32 1.0, %v5178_v8  ;;  %5197 = vrcp.f32 %v2499_v50  ;;  %v4718_v1 = vmul.f32 -1.442695, %v2378_v23 }
 0x2b4   : > { %v3233_v17 = vpop.permute.xlu0 %3232  ;;  %v5182_v46 = vpop.eup %5181  ;;  %v2502_v39 = vadd.f32 1.0, %v5180_v42  ;;  %5199 = vrcp.f32 %v2496_v59  ;;  %v2377_v51 = vadd.f32 %v2345_v55, %v7528_v5 }
 0x2b5   : > { %v5184_v41 = vpop.eup %5183  ;;  %5201 = vrcp.f32 %v2497_v34 }
 0x2b6   : > { %v3235_v33 = vpop.permute.xlu1 %3234  ;;  %v5186_v14 = vpop.eup %5185  ;;  %5203 = vpow2.f32 %v4716_v63  ;;  %v2503_v34 = vadd.f32 1.0, %v5184_v41  ;;  %v2317_v63 = vld [vmem:[%s8595_s3 + $0x88] sm:$0xff] }
 0x2b7   : > { %v3326_v8 = vmul.f32 %v5186_v14, %v3233_v17  ;;  %v2500_v14 = vadd.f32 1.0, %v5182_v46  ;;  %5205 = vrcp.f32 %v2502_v39  ;;  %v4717_v46 = vmul.f32 -1.442695, %v2377_v51  ;;  %v2318_v39 = vld [vmem:[%s8595_s3 + $0x90] sm:$0xff]  ;;  %v5640_v41 = vld [vmem:[%s6901_s21 + $0x88] sm:$0xff] }
 0x2b8   : > { %v3229_v12 = vpop.permute.xlu0 %3228  ;;  %v5188_v15 = vpop.eup %5187  ;;  %5207 = vpow2.f32 %v4718_v1  ;;  %v2319_v1 = vld [vmem:[%s8595_s3 + $0x98] sm:$0xff]  ;;  %v5641_v51 = vld [vmem:[%s6901_s21 + $0x90] sm:$0xff] }
 0x2b9   : > { %v5190_v50 = vpop.eup %5189  ;;  %v3327_v54 = vmul.f32 %v5188_v15, %v3235_v33  ;;  %3392 = vrot.lane.b32.xlu0 %v3326_v8, %s5758_s23  ;;  %5209 = vrcp.f32 %v2500_v14  ;;  %v2380_v8 = vadd.f32 %v2348_v27, %v7547_v61  ;;  %v5642_v14 = vld [vmem:[%s6901_s21 + $0x98] sm:$0xff] }
 0x2ba   : > { %v3231_v56 = vpop.permute.xlu1 %3230  ;;  %v5192_v3 = vpop.eup %5191  ;;  %v3324_v59 = vmul.f32 %v5190_v50, %v3229_v12  ;;  %v2379_v12 = vadd.f32 %v2347_v36, %v7526_v29  ;;  %5211 = vrcp.f32 %v2503_v34 }
 0x2bb   : > { %3394 = vrot.lane.b32.xlu1 %v3327_v54, %s5758_s23  ;;  %v3325_v17 = vmul.f32 %v5192_v3, %v3231_v56  ;;  %v5194_v31 = vpop.eup %5193  ;;  %v2349_v56 = vmul.f32 %v5640_v41, %v2317_v63  ;;  %5213 = vpow2.f32 %v4717_v46 }
 0x2bc   : > { %v5196_v33 = vpop.eup %5195  ;;  %v2501_v36 = vadd.f32 1.0, %v5194_v31  ;;  %v4719_v4 = vmul.f32 -1.442695, %v2379_v12 }
 0x2bd   : > { %v3241_v19 = vpop.permute.xlu0 %3240  ;;  %v5198_v55 = vpop.eup %5197  ;;  %3388 = vrot.lane.b32.xlu0 %v3324_v59, %s5758_s23  ;;  %v2350_v59 = vmul.f32 %v5641_v51, %v2318_v39  ;;  %v2381_v63 = vadd.f32 %v2349_v56, %v7555_v25 }
 0x2be   : > { %v3330_v3 = vmul.f32 %v5196_v33, %v3241_v19  ;;  %v5200_v19 = vpop.eup %5199  ;;  %v4720_v33 = vmul.f32 -1.442695, %v2380_v8  ;;  %5215 = vrcp.f32 %v2501_v36 }
 0x2bf   : > { %v3243_v42 = vpop.permute.xlu1 %3242  ;;  %3390 = vrot.lane.b32.xlu1 %v3325_v17, %s5758_s23  ;;  %v5202_v54 = vpop.eup %5201  ;;  %v2351_v17 = vmul.f32 %v5642_v14, %v2319_v1  ;;  %5217 = vpow2.f32 %v4719_v4  ;;  %v4721_v46 = vmul.f32 -1.442695, %v2381_v63  ;;  %v5643_v4 = vld [vmem:[%s6901_s21 + $0xd0] sm:$0xff] }
 0x2c0   : > { %v3331_v15 = vmul.f32 %v5198_v55, %v3243_v42  ;;  %v5204_v27 = vpop.eup %5203  ;;  %v2382_v55 = vadd.f32 %v2350_v59, %v7572_v47  ;;  %5219 = vpow2.f32 %v4720_v33 }
 0x2c1   : > { %v3237_v23 = vpop.permute.xlu0 %3236  ;;  %3400 = vrot.lane.b32.xlu0 %v3330_v3, %s5758_s23  ;;  %v5206_v34 = vpop.eup %5205  ;;  %v2504_v41 = vadd.f32 1.0, %v5204_v27  ;;  %5221 = vpow2.f32 %v4721_v46 }
 0x2c2   : > { %v3328_v42 = vmul.f32 %v5200_v19, %v3237_v23  ;;  %v2383_v23 = vadd.f32 %v2351_v17, %v7575_v35  ;;  %v5208_v39 = vpop.eup %5207  ;;  %v4722_v1 = vmul.f32 -1.442695, %v2382_v55  ;;  %v2326_v19 = vld [vmem:[%s8595_s3 + $0xd0] sm:$0xff] }
 0x2c3   : > { %3402 = vrot.lane.b32.xlu1 %v3331_v15, %s5758_s23  ;;  %v5210_v56 = vpop.eup %5209  ;;  %v2506_v51 = vadd.f32 1.0, %v5208_v39  ;;  %5223 = vrcp.f32 %v2504_v41 }
 0x2c4   : > { %v5212_v15 = vpop.eup %5211  ;;  %5225 = vpow2.f32 %v4722_v1  ;;  %v2324_v1 = vld [vmem:[%s8595_s3 + $0xc0] sm:$0xff] }
 0x2c5   : > { %v3239_v50 = vpop.permute.xlu1 %3238  ;;  %3396 = vrot.lane.b32.xlu0 %v3328_v42, %s5758_s23  ;;  %v2358_v42 = vmul.f32 %v5643_v4, %v2326_v19  ;;  %v2320_v4 = vld [vmem:[%s8595_s3 + $0xa0] sm:$0xff] }
 0x2c6   : > { %v3329_v31 = vmul.f32 %v5202_v54, %v3239_v50  ;;  %v4723_v50 = vmul.f32 -1.442695, %v2383_v23  ;;  %v5214_v54 = vpop.eup %5213 }
 0x2c7   : > { %v2505_v17 = vadd.f32 1.0, %v5214_v54  ;;  %v2390_v33 = vadd.f32 %v2358_v42, %v7598_v0  ;;  %v5644_v54 = vld [vmem:[%s6901_s21 + $0xc0] sm:$0xff] }
 0x2c8   : > { %3398 = vrot.lane.b32.xlu1 %v3329_v31, %s5758_s23  ;;  %v5216_v59 = vpop.eup %5215  ;;  %5227 = vpow2.f32 %v4723_v50  ;;  %v2327_v50 = vld [vmem:[%s8595_s3 + $0xd8] sm:$0xff] }
 0x2c9   : > { %v5218_v31 = vpop.eup %5217  ;;  %5229 = vrcp.f32 %v2506_v51  ;;  %v4730_v23 = vmul.f32 -1.442695, %v2390_v33  ;;  %v2356_v51 = vmul.f32 %v5644_v54, %v2324_v1 }
 0x2ca   : > { %v5220_v27 = vpop.eup %5219  ;;  %5231 = vrcp.f32 %v2505_v17  ;;  %v5645_v17 = vld [vmem:[%s6901_s21 + $0xd8] sm:$0xff] }
 0x2cb   : > { %v5222_v55 = vpop.eup %5221 }
 0x2cd   : > { %v5224_v46 = vpop.eup %5223 }
 0x2ce   : > { %v5226_v41 = vpop.eup %5225 }
 0x2d0   : > { %v3249_v44 = vpop.permute.xlu0 %3248 }
 0x2d1   : > { %v3334_v12 = vmul.f32 %v5206_v34, %v3249_v44  ;;  %v2507_v34 = vadd.f32 1.0, %v5218_v31 }
 0x2d2   : > { %v3251_v36 = vpop.permute.xlu1 %3250 }
 0x2d3   : > { %3408 = vrot.lane.b32.xlu0 %v3334_v12, %s5758_s23  ;;  %v3335_v44 = vmul.f32 %v5212_v15, %v3251_v36  ;;  %v2508_v12 = vadd.f32 1.0, %v5220_v27  ;;  %5233 = vrcp.f32 %v2507_v34  ;;  %v2509_v15 = vadd.f32 1.0, %v5222_v55  ;;  %v5646_v27 = vld [vmem:[%s6901_s21 + $0xa0] sm:$0xff]  ;;  %v2325_v55 = vld [vmem:[%s8595_s3 + $0xc8] sm:$0xff] }
 0x2d4   : > { %v3245_v3 = vpop.permute.xlu0 %3244  ;;  %v2352_v33 = vmul.f32 %v5646_v27, %v2320_v4  ;;  %v2388_v34 = vadd.f32 %v2356_v51, %v7604_v62 }
 0x2d5   : > { %v3332_v8 = vmul.f32 %v5210_v56, %v3245_v3  ;;  %3410 = vrot.lane.b32.xlu1 %v3335_v44, %s5758_s23  ;;  %v5228_v56 = vpop.eup %5227  ;;  %5235 = vrcp.f32 %v2508_v12  ;;  %v2510_v44 = vadd.f32 1.0, %v5226_v41  ;;  %v5647_v41 = vld [vmem:[%s6901_s21 + $0xc8] sm:$0xff] }
 0x2d6   : > { %v3247_v14 = vpop.permute.xlu1 %3246  ;;  %v5230_v36 = vpop.eup %5229  ;;  %5237 = vpow2.f32 %v4730_v23 }
 0x2d7   : > { %3404 = vrot.lane.b32.xlu0 %v3332_v8, %s5758_s23  ;;  %v3333_v63 = vmul.f32 %v5216_v59, %v3247_v14  ;;  %v5232_v59 = vpop.eup %5231  ;;  %5239 = vrcp.f32 %v2509_v15  ;;  %v2511_v14 = vadd.f32 1.0, %v5228_v56  ;;  %v2357_v56 = vmul.f32 %v5647_v41, %v2325_v55 }
 0x2d8   : > { %5241 = vrcp.f32 %v2510_v44  ;;  %v2330_v44 = vld [vmem:[%s8595_s3 + $0xf0] sm:$0xff] }
 0x2d9   : > { %3406 = vrot.lane.b32.xlu1 %v3333_v63, %s5758_s23  ;;  %v2359_v63 = vmul.f32 %v5645_v17, %v2327_v50  ;;  %5243 = vrcp.f32 %v2511_v14  ;;  %v4728_v50 = vmul.f32 -1.442695, %v2388_v34  ;;  %v2389_v14 = vadd.f32 %v2357_v56, %v7621_v45 }
 0x2da   : > { %v3253_v3 = vpop.permute.xlu0 %3252 }
 0x2db   : > { %v3336_v39 = vmul.f32 %v5224_v46, %v3253_v3  ;;  %v2391_v23 = vadd.f32 %v2359_v63, %v7607_v16  ;;  %5245 = vpow2.f32 %v4728_v50  ;;  %v2322_v50 = vld [vmem:[%s8595_s3 + $0xb0] sm:$0xff] }
 0x2dd   : > { %3412 = vrot.lane.b32.xlu0 %v3336_v39, %s5758_s23  ;;  %v3255_v42 = vpop.permute.xlu1 %3254  ;;  %v5234_v12 = vpop.eup %5233  ;;  %v4731_v54 = vmul.f32 -1.442695, %v2391_v23 }
 0x2de   : > { %v3257_v8 = vpop.permute.xlu0 %3256  ;;  %v3337_v31 = vmul.f32 %v5232_v59, %v3255_v42  ;;  %v5648_v59 = vld [vmem:[%s6901_s21 + $0xa8] sm:$0xff] }
 0x2df   : > { %v3338_v19 = vmul.f32 %v5230_v36, %v3257_v8  ;;  %v5236_v39 = vpop.eup %5235  ;;  %v2321_v36 = vld [vmem:[%s8595_s3 + $0xa8] sm:$0xff]  ;;  %v2384_v8 = vadd.f32 %v2352_v33, %v7609_v49  ;;  %5247 = vpow2.f32 %v4731_v54 }
 0x2e0   : > { %3414 = vrot.lane.b32.xlu1 %v3337_v31, %s5758_s23  ;;  %v5238_v1 = vpop.eup %5237  ;;  %v2353_v4 = vmul.f32 %v5648_v59, %v2321_v36  ;;  %v5649_v31 = vld [vmem:[%s6901_s21 + $0xf0] sm:$0xff]  ;;  %v5650_v36 = vld [vmem:[%s6901_s21 + $0xe0] sm:$0xff] }
 0x2e1   : > { %3416 = vrot.lane.b32.xlu0 %v3338_v19, %s5758_s23  ;;  %v5240_v51 = vpop.eup %5239  ;;  %v2518_v42 = vadd.f32 1.0, %v5238_v1  ;;  %v4724_v63 = vmul.f32 -1.442695, %v2384_v8  ;;  %v2362_v27 = vmul.f32 %v5649_v31, %v2330_v44  ;;  %v5651_v44 = vld [vmem:[%s6901_s21 + $0xf8] sm:$0xff] }
 0x2e2   : > { %v5242_v34 = vpop.eup %5241  ;;  %v2385_v23 = vadd.f32 %v2353_v4, %v7615_v32  ;;  %v5652_v4 = vld [vmem:[%s6901_s21 + $0xb0] sm:$0xff] }
 0x2e3   : > { %5249 = vrcp.f32 %v2518_v42  ;;  %v2394_v56 = vadd.f32 %v2362_v27, %v7629_v60  ;;  %v2354_v42 = vmul.f32 %v5652_v4, %v2322_v50  ;;  %v2323_v27 = vld [vmem:[%s8595_s3 + $0xb8] sm:$0xff] }
 0x2e4   : > { %5251 = vpow2.f32 %v4724_v63 }
 0x2e8   : > { %v3259_v46 = vpop.permute.xlu1 %3258 }
 0x2e9   : > { %v3339_v3 = vmul.f32 %v5234_v12, %v3259_v46  ;;  %v5244_v46 = vpop.eup %5243 }
 0x2ea   : > { %v5246_v59 = vpop.eup %5245 }
 0x2eb   : > { %3418 = vrot.lane.b32.xlu1 %v3339_v3, %s5758_s23  ;;  %v4729_v3 = vmul.f32 -1.442695, %v2389_v14  ;;  %v5248_v31 = vpop.eup %5247 }
 0x2ed   : > { %v3261_v15 = vpop.permute.xlu0 %3260  ;;  %5253 = vpow2.f32 %v4729_v3  ;;  %v2386_v3 = vadd.f32 %v2354_v42, %v7642_v2 }
 0x2ee   : > { %v3340_v19 = vmul.f32 %v5236_v39, %v3261_v15  ;;  %v2328_v39 = vld [vmem:[%s8595_s3 + $0xe0] sm:$0xff]  ;;  %v2331_v15 = vld [vmem:[%s8595_s3 + $0xf8] sm:$0xff] }
 0x2ef   : > { %v3263_v17 = vpop.permute.xlu1 %3262  ;;  %v2360_v8 = vmul.f32 %v5650_v36, %v2328_v39  ;;  %v2363_v54 = vmul.f32 %v5651_v44, %v2331_v15  ;;  %v2519_v36 = vadd.f32 1.0, %v5248_v31  ;;  %v4726_v44 = vmul.f32 -1.442695, %v2386_v3 }
 0x2f0   : > { %3420 = vrot.lane.b32.xlu0 %v3340_v19, %s5758_s23  ;;  %v3341_v33 = vmul.f32 %v5240_v51, %v3263_v17  ;;  %v4725_v19 = vmul.f32 -1.442695, %v2385_v23  ;;  %v4734_v51 = vmul.f32 -1.442695, %v2394_v56  ;;  %v2329_v17 = vld [vmem:[%s8595_s3 + $0xe8] sm:$0xff]  ;;  %v5654_v56 = vld [vmem:[%s6901_s21 + $0xb8] sm:$0xff]  ;;  %v2782_v31 = vadd.f32 %v7383_v30, %v7431_v43 }
 0x2f1   : > { %v2392_v14 = vadd.f32 %v2360_v8, %v7639_v53  ;;  %v2395_v63 = vadd.f32 %v2363_v54, %v7645_v13  ;;  %v2355_v15 = vmul.f32 %v5654_v56, %v2323_v27 }
 0x2f2   : > { %3422 = vrot.lane.b32.xlu1 %v3341_v33, %s5758_s23  ;;  %5255 = vpow2.f32 %v4725_v19  ;;  %v5250_v33 = vpop.eup %5249 }
 0x2f3   : > { %5257 = vpow2.f32 %v4734_v51  ;;  %v5252_v23 = vpop.eup %5251  ;;  %v4732_v39 = vmul.f32 -1.442695, %v2392_v14  ;;  %v2387_v54 = vadd.f32 %v2355_v15, %v7651_v26 }
 0x2f4   : > { %v2512_v19 = vadd.f32 1.0, %v5252_v23  ;;  %v2783_v23 = vadd.f32 %v7381_v10, %v7441_v9 }
 0x2f5   : > { %v4727_v14 = vmul.f32 -1.442695, %v2387_v54 }
 0x2f7   : > { %v5254_v8 = vpop.eup %5253 }
 0x2f8   : > { %v2517_v51 = vadd.f32 1.0, %v5254_v8 }
 0x2f9   : > { %v3265_v55 = vpop.permute.xlu0 %3264 }
 0x2fa   : > { %v3342_v12 = vmul.f32 %v5242_v34, %v3265_v55  ;;  %v3267_v41 = vpop.permute.xlu1 %3266  ;;  %v2516_v34 = vadd.f32 1.0, %v5246_v59  ;;  %v5653_v55 = vld [vmem:[%s6901_s21 + $0xe8] sm:$0xff]  ;;  %s5760_s21 = smov 96  }
 0x2fb   : > { %v3343_v1 = vmul.f32 %v5244_v46, %v3267_v41 }
 0x2fc   : > { %3424 = vrot.lane.b32.xlu0 %v3342_v12, %s5758_s23  ;;  %v2361_v12 = vmul.f32 %v5653_v55, %v2329_v17  ;;  %5259 = vrcp.f32 %v2516_v34  ;;  %v5256_v59 = vpop.eup %5255  ;;  %v2780_v55 = vadd.f32 %v7379_v28, %v7436_v48  ;;  %v4739_v28 = vmul.f32 -1.442695, %v2783_v23 }
 0x2fd   : > { %3426 = vrot.lane.b32.xlu1 %v3343_v1, %s5758_s23  ;;  %v4735_v1 = vmul.f32 -1.442695, %v2395_v63  ;;  %5261 = vpow2.f32 %v4732_v39  ;;  %v5258_v42 = vpop.eup %5257  ;;  %v2513_v17 = vadd.f32 1.0, %v5256_v59  ;;  %v4738_v39 = vmul.f32 -1.442695, %v2782_v31 }
 0x2fe   : > { %v2393_v50 = vadd.f32 %v2361_v12, %v7665_v20  ;;  %v2522_v63 = vadd.f32 1.0, %v5258_v42  ;;  %v4736_v8 = vmul.f32 -1.442695, %v2780_v55  ;;  %v2786_v42 = vadd.f32 %v7395_v18, %v7454_v37 }
 0x2ff   : > { %5263 = vpow2.f32 %v4735_v1  ;;  %v2784_v18 = vadd.f32 %v7391_v38, %v7457_v11 }
 0x300   : > { %5265 = vrcp.f32 %v2519_v36  ;;  %v4733_v4 = vmul.f32 -1.442695, %v2393_v50 }
 0x301   : > { %5267 = vrcp.f32 %v2512_v19  ;;  %v2781_v19 = vadd.f32 %v7377_v21, %v7443_v52  ;;  %v2787_v21 = vadd.f32 %v7393_v6, %v7461_v22  ;;  %v2785_v6 = vadd.f32 %v7389_v7, %v7465_v58 }
 0x302   : > { %5269 = vpow2.f32 %v4726_v44 }
 0x303   : > { %5271 = vrcp.f32 %v2517_v51  ;;  %v4743_v23 = vmul.f32 -1.442695, %v2787_v21  ;;  %v8773_v21 = vld [vmem:[#allocation25_spill] sm:$0xff] }
 0x304   : > { %5273 = vpow2.f32 %v4733_v4 }
 0x305   : > { %v3281_v46 = vpop.permute.xlu0 %3280  ;;  %5275 = vpow2.f32 %v4727_v14 }
 0x306   : > { %v3350_v41 = vmul.f32 %v5250_v33, %v3281_v46  ;;  %v5260_v27 = vpop.eup %5259  ;;  %5277 = vrcp.f32 %v2513_v17  ;;  %v4737_v17 = vmul.f32 -1.442695, %v2781_v19 }
 0x307   : > { %v5262_v34 = vpop.eup %5261  ;;  %5279 = vrcp.f32 %v2522_v63 }
 0x308   : > { %3440 = vrot.lane.b32.xlu0 %v3350_v41, %s5758_s23  ;;  %v2520_v56 = vadd.f32 1.0, %v5262_v34  ;;  %5281 = vpow2.f32 %v4738_v39 }
 0x309   : > { %v5264_v46 = vpop.eup %5263 }
 0x30a   : > { %v3277_v33 = vpop.permute.xlu0 %3276  ;;  %v5266_v3 = vpop.eup %5265  ;;  %v2523_v44 = vadd.f32 1.0, %v5264_v46  ;;  %5283 = vrcp.f32 %v2520_v56 }
 0x30b   : > { %v3348_v12 = vmul.f32 %v5260_v27, %v3277_v33  ;;  %v5268_v30 = vpop.eup %5267  ;;  %5285 = vpow2.f32 %v4736_v8 }
 0x30c   : > { %v3283_v41 = vpop.permute.xlu1 %3282  ;;  %v5270_v36 = vpop.eup %5269  ;;  %5287 = vpow2.f32 %v4739_v28  ;;  %v2790_v28 = vadd.f32 %v7405_v40, %v7490_v57 }
 0x30d   : > { %3436 = vrot.lane.b32.xlu0 %v3348_v12, %s5758_s23  ;;  %v3351_v15 = vmul.f32 %v5266_v3, %v3283_v41  ;;  %v5272_v10 = vpop.eup %5271  ;;  %v2514_v4 = vadd.f32 1.0, %v5270_v36  ;;  %5289 = vrcp.f32 %v2523_v44  ;;  %v4742_v12 = vmul.f32 -1.442695, %v2786_v42 }
 0x30e   : > { %v3269_v1 = vpop.permute.xlu0 %3268  ;;  %v5274_v51 = vpop.eup %5273  ;;  %v4746_v40 = vmul.f32 -1.442695, %v2790_v28  ;;  %v8777_v28 = vld [vmem:[#allocation32_spill] sm:$0xff] }
 0x30f   : > { %v3344_v50 = vmul.f32 %v5268_v30, %v3269_v1  ;;  %3442 = vrot.lane.b32.xlu1 %v3351_v15, %s5758_s23  ;;  %v5276_v14 = vpop.eup %5275  ;;  %v2521_v31 = vadd.f32 1.0, %v5274_v51  ;;  %5291 = vrcp.f32 %v2514_v4  ;;  %v4740_v30 = vmul.f32 -1.442695, %v2784_v18 }
 0x310   : > { %v3279_v54 = vpop.permute.xlu1 %3278  ;;  %v5278_v63 = vpop.eup %5277  ;;  %5293 = vpow2.f32 %v4737_v17  ;;  %v2515_v3 = vadd.f32 1.0, %v5276_v14  ;;  %v4741_v1 = vmul.f32 -1.442695, %v2785_v6 }
 0x311   : > { %3428 = vrot.lane.b32.xlu0 %v3344_v50, %s5758_s23  ;;  %v3349_v59 = vmul.f32 %v5272_v10, %v3279_v54  ;;  %v5280_v33 = vpop.eup %5279  ;;  %5295 = vrcp.f32 %v2521_v31  ;;  %v8772_v54 = vld [vmem:[#allocation26_spill] sm:$0xff] }
 0x312   : > { %v3289_v55 = vpop.permute.xlu0 %3288  ;;  %v5282_v39 = vpop.eup %5281  ;;  %5297 = vpow2.f32 %v4742_v12  ;;  %v2791_v51 = vadd.f32 %v8772_v54, %v7502_v24  ;;  %v8779_v54 = vld [vmem:[#allocation24_spill] sm:$0xff] }
 0x313   : > { %3438 = vrot.lane.b32.xlu1 %v3349_v59, %s5758_s23  ;;  %v3354_v46 = vmul.f32 %v5280_v33, %v3289_v55  ;;  %5299 = vpow2.f32 %v4743_v23  ;;  %v2910_v44 = vadd.f32 1.0, %v5282_v39  ;;  %v8775_v33 = vld [vmem:[#allocation28_spill] sm:$0xff] }
 0x314   : > { %v3271_v27 = vpop.permute.xlu1 %3270  ;;  %v5284_v41 = vpop.eup %5283  ;;  %5301 = vrcp.f32 %v2515_v3  ;;  %v4747_v18 = vmul.f32 -1.442695, %v2791_v51  ;;  %v2793_v51 = vadd.f32 %v8779_v54, %v7528_v5 }
 0x315   : > { %v3345_v34 = vmul.f32 %v5278_v63, %v3271_v27  ;;  %3448 = vrot.lane.b32.xlu0 %v3354_v46, %s5758_s23  ;;  %v5286_v15 = vpop.eup %5285  ;;  %5303 = vpow2.f32 %v4740_v30  ;;  %v8774_v63 = vld [vmem:[#allocation22_spill] sm:$0xff] }
 0x316   : > { %v3285_v56 = vpop.permute.xlu0 %3284  ;;  %v5288_v38 = vpop.eup %5287  ;;  %5305 = vpow2.f32 %v4741_v1  ;;  %v2908_v17 = vadd.f32 1.0, %v5286_v15  ;;  %v2788_v31 = vadd.f32 %v8774_v63, %v8773_v21  ;;  %v8781_v63 = vld [vmem:[#allocation37_spill] sm:$0xff] }
 0x317   : > { %3430 = vrot.lane.b32.xlu1 %v3345_v34, %s5758_s23  ;;  %v3352_v36 = vmul.f32 %v5284_v41, %v3285_v56  ;;  %v5290_v8 = vpop.eup %5289  ;;  %v2911_v42 = vadd.f32 1.0, %v5288_v38  ;;  %v8776_v34 = vld [vmem:[#allocation23_spill] sm:$0xff]  ;;  %5307 = vrcp.f32 %v2910_v44 }
 0x318   : > { %v2789_v55 = vadd.f32 %v8776_v34, %v8775_v33  ;;  %v4744_v39 = vmul.f32 -1.442695, %v2788_v31 }
 0x319   : > { %3444 = vrot.lane.b32.xlu0 %v3352_v36, %s5758_s23  ;;  %v5292_v7 = vpop.eup %5291  ;;  %5309 = vrcp.f32 %v2911_v42  ;;  %v8780_v42 = vld [vmem:[#allocation38_spill] sm:$0xff] }
 0x31a   : > { %v5294_v4 = vpop.eup %5293  ;;  %5311 = vrcp.f32 %v2908_v17  ;;  %v4745_v30 = vmul.f32 -1.442695, %v2789_v55  ;;  %v4749_v55 = vmul.f32 -1.442695, %v2793_v51 }
 0x31b   : > { %v5296_v14 = vpop.eup %5295  ;;  %v2909_v6 = vadd.f32 1.0, %v5294_v4  ;;  %5313 = vpow2.f32 %v4746_v40 }
 0x31c   : > { %v3291_v50 = vpop.permute.xlu1 %3290  ;;  %v5298_v46 = vpop.eup %5297  ;;  %5315 = vpow2.f32 %v4747_v18 }
 0x31d   : > { %v3355_v19 = vmul.f32 %v5290_v8, %v3291_v50  ;;  %v3273_v10 = vpop.permute.xlu0 %3272  ;;  %v5300_v23 = vpop.eup %5299  ;;  %v2914_v15 = vadd.f32 1.0, %v5298_v46  ;;  %5317 = vrcp.f32 %v2909_v6 }
 0x31e   : > { %v3346_v59 = vmul.f32 %v5292_v7, %v3273_v10  ;;  %v5302_v3 = vpop.eup %5301  ;;  %v2915_v36 = vadd.f32 1.0, %v5300_v23  ;;  %5319 = vpow2.f32 %v4744_v39  ;;  %v8782_v39 = vld [vmem:[#allocation36_spill] sm:$0xff] }
 0x31f   : > { %3450 = vrot.lane.b32.xlu1 %v3355_v19, %s5758_s23  ;;  %v5304_v1 = vpop.eup %5303  ;;  %5321 = vpow2.f32 %v4745_v30  ;;  %v8778_v19 = vld [vmem:[#allocation18_spill] sm:$0xff] }
 0x320   : > { %v3287_v27 = vpop.permute.xlu1 %3286  ;;  %3432 = vrot.lane.b32.xlu0 %v3346_v59, %s5758_s23  ;;  %v5306_v38 = vpop.eup %5305  ;;  %v2912_v8 = vadd.f32 1.0, %v5304_v1  ;;  %5323 = vrcp.f32 %v2914_v15  ;;  %v2792_v10 = vadd.f32 %v8778_v19, %v8777_v28  ;;  %v8783_v15 = vld [vmem:[#allocation35_spill] sm:$0xff] }
 0x321   : > { %v3353_v12 = vmul.f32 %v5296_v14, %v3287_v27  ;;  %v2913_v50 = vadd.f32 1.0, %v5306_v38  ;;  %5325 = vrcp.f32 %v2915_v36  ;;  %v5308_v7 = vpop.eup %5307 }
 0x322   : > { %5327 = vrcp.f32 %v2912_v8  ;;  %v3134_v14 = vmul.f32 %v5308_v7, %v8780_v42  ;;  %v4748_v27 = vmul.f32 -1.442695, %v2792_v10 }
 0x323   : > { %3446 = vrot.lane.b32.xlu1 %v3353_v12, %s5758_s23  ;;  %v5310_v44 = vpop.eup %5309  ;;  %5329 = vrcp.f32 %v2913_v50 }
 0x324   : > { %v3275_v41 = vpop.permute.xlu1 %3274  ;;  %v5312_v59 = vpop.eup %5311  ;;  %v3135_v31 = vmul.f32 %v5310_v44, %v8781_v63  ;;  %5331 = vpow2.f32 %v4748_v27  ;;  %v8784_v44 = vld [vmem:[#allocation42_spill] sm:$0xff]  ;;  %v8787_v63 = vld [vmem:[#allocation8_spill] sm:$0xff] }
 0x325   : > { %v3347_v56 = vmul.f32 %v5302_v3, %v3275_v41  ;;  %v5314_v4 = vpop.eup %5313  ;;  %v3132_v41 = vmul.f32 %v5312_v59, %v8782_v39  ;;  %5333 = vpow2.f32 %v4749_v55  ;;  %v8785_v59 = vld [vmem:[#allocation41_spill] sm:$0xff] }
 0x326   : > { %v5316_v17 = vpop.eup %5315  ;;  %v2918_v23 = vadd.f32 1.0, %v5314_v4 }
 0x327   : > { %3434 = vrot.lane.b32.xlu1 %v3347_v56, %s5758_s23  ;;  %v5318_v34 = vpop.eup %5317  ;;  %v2919_v30 = vadd.f32 1.0, %v5316_v17  ;;  %v8786_v17 = vld [vmem:[#allocation31_spill] sm:$0xff] }
 0x328   : > { %v5320_v18 = vpop.eup %5319  ;;  %v3133_v1 = vmul.f32 %v5318_v34, %v8783_v15  ;;  %5335 = vrcp.f32 %v2918_v23  ;;  %v8788_v34 = vld [vmem:[#allocation10_spill] sm:$0xff] }
 0x329   : > { %v5322_v3 = vpop.eup %5321  ;;  %v2916_v7 = vadd.f32 1.0, %v5320_v18  ;;  %5337 = vrcp.f32 %v2919_v30  ;;  %v2795_v55 = vadd.f32 %v8788_v34, %v7526_v29  ;;  %v8789_v18 = vld [vmem:[#allocation40_spill] sm:$0xff] }
 0x32a   : > { %v5324_v56 = vpop.eup %5323  ;;  %v2917_v10 = vadd.f32 1.0, %v5322_v3 }
 0x32b   : > { %v3393_v40 = vpop.permute.xlu0 %3392  ;;  %v5326_v38 = vpop.eup %5325  ;;  %v3138_v54 = vmul.f32 %v5324_v56, %v8784_v44  ;;  %v4751_v15 = vmul.f32 -1.442695, %v2795_v55 }
 0x32c   : > { %v3486_v12 = vadd.f32 %v3393_v40, %v3134_v14  ;;  %v5328_v51 = vpop.eup %5327  ;;  %v3139_v4 = vmul.f32 %v5326_v38, %v8785_v59 }
 0x32d   : > { %v3395_v46 = vpop.permute.xlu1 %3394  ;;  %v5330_v14 = vpop.eup %5329  ;;  %v3136_v23 = vmul.f32 %v5328_v51, %v8789_v18  ;;  %v8794_v18 = vld [vmem:[#allocation45_spill] sm:$0xff] }
 0x32e   : > { %v3487_v6 = vadd.f32 %v3395_v46, %v3135_v31  ;;  %3584 = vrot.lane.b32.xlu0 %v3486_v12, %s5760_s21  ;;  %5339 = vtanh.f32 %v3486_v12  ;;  %v2794_v31 = vadd.f32 %v8787_v63, %v8786_v17  ;;  %v8790_v12 = vld [vmem:[#allocation39_spill] sm:$0xff]  ;;  %v5332_v56 = vpop.eup %5331 }
 0x32f   : > { %v3389_v36 = vpop.permute.xlu0 %3388  ;;  %v3137_v3 = vmul.f32 %v5330_v14, %v8790_v12  ;;  %v2920_v55 = vadd.f32 1.0, %v5332_v56  ;;  %v8797_v56 = vld [vmem:[#allocation27_spill] sm:$0xff] }
 0x330   : > { %3586 = vrot.lane.b32.xlu1 %v3487_v6, %s5760_s21  ;;  %v3484_v8 = vadd.f32 %v3389_v36, %v3132_v41  ;;  %5341 = vtanh.f32 %v3487_v6  ;;  %v4750_v41 = vmul.f32 -1.442695, %v2794_v31  ;;  %v8793_v31 = vld [vmem:[#allocation46_spill] sm:$0xff] }
 0x331   : > { %v3391_v50 = vpop.permute.xlu1 %3390  ;;  %5343 = vrcp.f32 %v2916_v7  ;;  %v8792_v7 = vld [vmem:[#allocation16_spill] sm:$0xff] }
 0x332   : > { %v3485_v19 = vadd.f32 %v3391_v50, %v3133_v1  ;;  %3580 = vrot.lane.b32.xlu0 %v3484_v8, %s5760_s21  ;;  %5345 = vrcp.f32 %v2917_v10  ;;  %v8791_v1 = vld [vmem:[#allocation19_spill] sm:$0xff]  ;;  %v5334_v50 = vpop.eup %5333  ;;  %v2797_v10 = vadd.f32 %v8792_v7, %v7555_v25 }
 0x333   : > { %v3401_v42 = vpop.permute.xlu0 %3400  ;;  %5347 = vtanh.f32 %v3484_v8  ;;  %v2796_v36 = vadd.f32 %v8791_v1, %v7547_v61  ;;  %v5336_v8 = vpop.eup %5335 }
 0x334   : > { %3582 = vrot.lane.b32.xlu1 %v3485_v19, %s5760_s21  ;;  %v3490_v27 = vadd.f32 %v3401_v42, %v3138_v54  ;;  %5349 = vtanh.f32 %v3485_v19  ;;  %v5338_v44 = vpop.eup %5337 }
 0x335   : > { %v3403_v40 = vpop.permute.xlu1 %3402  ;;  %5351 = vpow2.f32 %v4750_v41  ;;  %v4752_v54 = vmul.f32 -1.442695, %v2796_v36  ;;  %v8795_v41 = vld [vmem:[#allocation9_spill] sm:$0xff]  ;;  %v8796_v36 = vld [vmem:[#allocation44_spill] sm:$0xff] }
 0x336   : > { %v3491_v46 = vadd.f32 %v3403_v40, %v3139_v4  ;;  %3592 = vrot.lane.b32.xlu0 %v3490_v27, %s5760_s21  ;;  %5353 = vpow2.f32 %v4751_v15  ;;  %v4753_v4 = vmul.f32 -1.442695, %v2797_v10  ;;  %v3142_v40 = vmul.f32 %v5336_v8, %v8793_v31 }
 0x337   : > { %v3397_v39 = vpop.permute.xlu0 %3396  ;;  %5355 = vpow2.f32 %v4752_v54  ;;  %v2799_v10 = vadd.f32 %v8797_v56, %v7575_v35 }
 0x338   : > { %3594 = vrot.lane.b32.xlu1 %v3491_v46, %s5760_s21  ;;  %v3488_v6 = vadd.f32 %v3397_v39, %v3136_v23  ;;  %v5340_v19 = vpop.eup %5339  ;;  %v3143_v23 = vmul.f32 %v5338_v44, %v8794_v18  ;;  %5357 = vpow2.f32 %v4753_v4 }
 0x339   : > { %5359 = vtanh.f32 %v3490_v27  ;;  %v4755_v4 = vmul.f32 -1.442695, %v2799_v10 }
 0x33a   : > { %v3399_v30 = vpop.permute.xlu1 %3398  ;;  %3588 = vrot.lane.b32.xlu0 %v3488_v6, %s5760_s21  ;;  %v5342_v59 = vpop.eup %5341  ;;  %5361 = vtanh.f32 %v3491_v46  ;;  %v8799_v46 = vld [vmem:[#allocation20_spill] sm:$0xff] }
 0x33b   : > { %v3489_v38 = vadd.f32 %v3399_v30, %v3137_v3  ;;  %v5344_v14 = vpop.eup %5343  ;;  %v2921_v3 = vadd.f32 1.0, %v5334_v50  ;;  %v2798_v30 = vadd.f32 %v8795_v41, %v7572_v47  ;;  %v8798_v50 = vld [vmem:[#allocation43_spill] sm:$0xff]  ;;  %5363 = vrcp.f32 %v2920_v55 }
 0x33c   : > { %v5346_v63 = vpop.eup %5345  ;;  %v3140_v7 = vmul.f32 %v5344_v14, %v8796_v36  ;;  %v2806_v14 = vadd.f32 %v8799_v46, %v7598_v0 }
 0x33d   : > { %3590 = vrot.lane.b32.xlu1 %v3489_v38, %s5760_s21  ;;  %v5348_v34 = vpop.eup %5347  ;;  %v3141_v44 = vmul.f32 %v5346_v63, %v8798_v50  ;;  %5365 = vrcp.f32 %v2921_v3 }
 0x33e   : > { %4128 = vrot.lane.b32.xlu0 %v5340_v19, %s5759_s10  ;;  %v5350_v12 = vpop.eup %5349  ;;  %5367 = vtanh.f32 %v3488_v6  ;;  %v4762_v6 = vmul.f32 -1.442695, %v2806_v14 }
 0x33f   : > { %v5352_v19 = vpop.eup %5351  ;;  %5369 = vtanh.f32 %v3489_v38 }
 0x340   : > { %v5354_v27 = vpop.eup %5353 }
 0x341   : > { %4130 = vrot.lane.b32.xlu1 %v5342_v59, %s5759_s10  ;;  %v2923_v31 = vadd.f32 1.0, %v5354_v27  ;;  %v5356_v63 = vpop.eup %5355  ;;  %v8804_v27 = vld [vmem:[#allocation11_spill] sm:$0xff] }
 0x342   : > { %4124 = vrot.lane.b32.xlu0 %v5348_v34, %s5759_s10 }
 0x345   : > { %v3409_v51 = vpop.permute.xlu0 %3408  ;;  %4126 = vrot.lane.b32.xlu1 %v5350_v12, %s5759_s10  ;;  %v8800_v12 = vld [vmem:[#allocation15_spill] sm:$0xff] }
 0x346   : > { %v3494_v39 = vadd.f32 %v3409_v51, %v3142_v40  ;;  %v4754_v51 = vmul.f32 -1.442695, %v2798_v30  ;;  %v5358_v40 = vpop.eup %5357  ;;  %v2804_v3 = vadd.f32 %v8800_v12, %v7604_v62 }
 0x347   : > { %v3411_v42 = vpop.permute.xlu1 %3410  ;;  %v5360_v34 = vpop.eup %5359 }
 0x348   : > { %v3495_v15 = vadd.f32 %v3411_v42, %v3143_v23  ;;  %3600 = vrot.lane.b32.xlu0 %v3494_v39, %s5760_s21  ;;  %v2922_v42 = vadd.f32 1.0, %v5352_v19  ;;  %5371 = vpow2.f32 %v4754_v51  ;;  %v5362_v55 = vpop.eup %5361  ;;  %v2800_v51 = vadd.f32 %v8804_v27, %v7609_v49 }
 0x349   : > { %v3405_v1 = vpop.permute.xlu0 %3404  ;;  %5373 = vpow2.f32 %v4755_v4  ;;  %v5364_v38 = vpop.eup %5363  ;;  %v4760_v4 = vmul.f32 -1.442695, %v2804_v3 }
 0x34a   : > { %v3492_v54 = vadd.f32 %v3405_v1, %v3140_v7  ;;  %3602 = vrot.lane.b32.xlu1 %v3495_v15, %s5760_s21  ;;  %5375 = vrcp.f32 %v2922_v42  ;;  %v5366_v18 = vpop.eup %5365  ;;  %v8801_v1 = vld [vmem:[#allocation48_spill] sm:$0xff]  ;;  %v8802_v7 = vld [vmem:[#allocation21_spill] sm:$0xff] }
 0x34b   : > { %v3407_v8 = vpop.permute.xlu1 %3406  ;;  %5377 = vrcp.f32 %v2923_v31  ;;  %v5368_v23 = vpop.eup %5367  ;;  %v3144_v36 = vmul.f32 %v5364_v38, %v8801_v1  ;;  %v2807_v56 = vadd.f32 %v8802_v7, %v7607_v16  ;;  %v8805_v31 = vld [vmem:[#allocation17_spill] sm:$0xff] }
 0x34c   : > { %v3493_v59 = vadd.f32 %v3407_v8, %v3141_v44  ;;  %3596 = vrot.lane.b32.xlu0 %v3492_v54, %s5760_s21  ;;  %5379 = vtanh.f32 %v3494_v39  ;;  %v5370_v30 = vpop.eup %5369  ;;  %v2924_v39 = vadd.f32 1.0, %v5356_v63  ;;  %v8803_v8 = vld [vmem:[#allocation47_spill] sm:$0xff]  ;;  %v8807_v1 = vld [vmem:[#allocation49_spill] sm:$0xff] }
 0x34d   : > { %5381 = vtanh.f32 %v3495_v15  ;;  %v3145_v50 = vmul.f32 %v5366_v18, %v8803_v8  ;;  %v2925_v15 = vadd.f32 1.0, %v5358_v40  ;;  %v4763_v14 = vmul.f32 -1.442695, %v2807_v56 }
 0x34e   : > { %3598 = vrot.lane.b32.xlu1 %v3493_v59, %s5760_s21  ;;  %5383 = vpow2.f32 %v4762_v6 }
 0x34f   : > { %v3413_v41 = vpop.permute.xlu0 %3412  ;;  %5385 = vtanh.f32 %v3492_v54  ;;  %v8806_v54 = vld [vmem:[#allocation34_spill] sm:$0xff] }
 0x350   : > { %4136 = vrot.lane.b32.xlu0 %v5360_v34, %s5759_s10  ;;  %5387 = vtanh.f32 %v3493_v59  ;;  %v3496_v44 = vadd.f32 %v3413_v41, %v3144_v36  ;;  %v2805_v34 = vadd.f32 %v8805_v31, %v7621_v45  ;;  %v2810_v40 = vadd.f32 %v8806_v54, %v7629_v60 }
 0x351   : > { %5389 = vrcp.f32 %v2924_v39  ;;  %v8808_v39 = vld [vmem:[#allocation51_spill] sm:$0xff] }
 0x352   : > { %4138 = vrot.lane.b32.xlu1 %v5362_v55, %s5759_s10  ;;  %v3415_v10 = vpop.permute.xlu1 %3414  ;;  %v5372_v19 = vpop.eup %5371  ;;  %5391 = vrcp.f32 %v2925_v15  ;;  %v4756_v55 = vmul.f32 -1.442695, %v2800_v51  ;;  %v4761_v18 = vmul.f32 -1.442695, %v2805_v34  ;;  %v4766_v12 = vmul.f32 -1.442695, %v2810_v40 }
 0x353   : > { %v3497_v42 = vadd.f32 %v3415_v10, %v3145_v50  ;;  %v5374_v46 = vpop.eup %5373  ;;  %5393 = vpow2.f32 %v4760_v4  ;;  %v2926_v3 = vadd.f32 1.0, %v5372_v19  ;;  %v3417_v41 = vpop.permute.xlu0 %3416  ;;  %v8809_v15 = vld [vmem:[#allocation12_spill] sm:$0xff]  ;;  %v8811_v34 = vld [vmem:[#allocation33_spill] sm:$0xff] }
 0x354   : > { %4132 = vrot.lane.b32.xlu0 %v5368_v23, %s5759_s10  ;;  %v5376_v63 = vpop.eup %5375  ;;  %5395 = vpow2.f32 %v4763_v14  ;;  %v2927_v7 = vadd.f32 1.0, %v5374_v46 }
 0x355   : > { %v5378_v59 = vpop.eup %5377  ;;  %5397 = vtanh.f32 %v3496_v44  ;;  %v3146_v36 = vmul.f32 %v5376_v63, %v8807_v1  ;;  %v2811_v63 = vadd.f32 %v8811_v34, %v7645_v13  ;;  %v8816_v34 = vld [vmem:[#allocation56_spill] sm:$0xff] }
 0x356   : > { %4134 = vrot.lane.b32.xlu1 %v5370_v30, %s5759_s10  ;;  %v5380_v6 = vpop.eup %5379  ;;  %5399 = vtanh.f32 %v3497_v42  ;;  %v3147_v8 = vmul.f32 %v5378_v59, %v8808_v39 }
 0x357   : > { %v5382_v38 = vpop.eup %5381  ;;  %5401 = vpow2.f32 %v4756_v55  ;;  %v3498_v19 = vadd.f32 %v3417_v41, %v3146_v36  ;;  %v8812_v55 = vld [vmem:[#allocation53_spill] sm:$0xff] }
 0x358   : > { %3604 = vrot.lane.b32.xlu0 %v3496_v44, %s5760_s21  ;;  %v5384_v23 = vpop.eup %5383  ;;  %5403 = vpow2.f32 %v4761_v18  ;;  %v2801_v44 = vadd.f32 %v8809_v15, %v7615_v32  ;;  %v3537_v32 = vld [vmem:[%s8597_s5 + $0xa8] sm:$0xff] }
 0x359   : > { %v5386_v30 = vpop.eup %5385  ;;  %v2934_v50 = vadd.f32 1.0, %v5384_v23  ;;  %5405 = vpow2.f32 %v4766_v12 }
 0x35a   : > { %3606 = vrot.lane.b32.xlu1 %v3497_v42, %s5760_s21  ;;  %v5388_v10 = vpop.eup %5387  ;;  %5407 = vrcp.f32 %v2926_v3  ;;  %v8810_v42 = vld [vmem:[#allocation30_spill] sm:$0xff]  ;;  %v4757_v31 = vmul.f32 -1.442695, %v2801_v44 }
 0x35b   : > { %v5390_v51 = vpop.eup %5389  ;;  %5409 = vrcp.f32 %v2927_v7  ;;  %v2808_v46 = vadd.f32 %v8810_v42, %v7639_v53  ;;  %v8813_v3 = vld [vmem:[#allocation54_spill] sm:$0xff]  ;;  %v8814_v7 = vld [vmem:[#allocation13_spill] sm:$0xff] }
 0x35c   : > { %4144 = vrot.lane.b32.xlu0 %v5380_v6, %s5759_s10  ;;  %v5392_v4 = vpop.eup %5391  ;;  %5411 = vrcp.f32 %v2934_v50 }
 0x35d   : > { %v3419_v56 = vpop.permute.xlu1 %3418  ;;  %v5394_v14 = vpop.eup %5393  ;;  %5413 = vtanh.f32 %v3498_v19  ;;  %v4764_v18 = vmul.f32 -1.442695, %v2808_v46  ;;  %v3149_v41 = vmul.f32 %v5392_v4, %v8813_v3 }
 0x35e   : > { %4146 = vrot.lane.b32.xlu1 %v5382_v38, %s5759_s10  ;;  %v3499_v27 = vadd.f32 %v3419_v56, %v3147_v8  ;;  %v5396_v54 = vpop.eup %5395  ;;  %v3148_v38 = vmul.f32 %v5390_v51, %v8812_v55  ;;  %v2802_v56 = vadd.f32 %v8814_v7, %v7642_v2  ;;  %v2932_v8 = vadd.f32 1.0, %v5394_v14 }
 0x35f   : > { %v5398_v40 = vpop.eup %5397  ;;  %v2935_v36 = vadd.f32 1.0, %v5396_v54 }
 0x360   : > { %4140 = vrot.lane.b32.xlu0 %v5386_v30, %s5759_s10  ;;  %5415 = vtanh.f32 %v3499_v27  ;;  %v5400_v6 = vpop.eup %5399  ;;  %v4767_v30 = vmul.f32 -1.442695, %v2811_v63  ;;  %v4758_v42 = vmul.f32 -1.442695, %v2802_v56 }
 0x361   : > { %v5402_v12 = vpop.eup %5401  ;;  %5417 = vpow2.f32 %v4757_v31 }
 0x362   : > { %4142 = vrot.lane.b32.xlu1 %v5388_v10, %s5759_s10  ;;  %v3421_v59 = vpop.permute.xlu0 %3420  ;;  %v5404_v1 = vpop.eup %5403  ;;  %5419 = vpow2.f32 %v4764_v18  ;;  %v2928_v31 = vadd.f32 1.0, %v5402_v12  ;;  %v8818_v18 = vld [vmem:[#allocation69_spill] sm:$0xff] }
 0x363   : > { %v3500_v10 = vadd.f32 %v3421_v59, %v3148_v38  ;;  %v5406_v39 = vpop.eup %5405  ;;  %5421 = vpow2.f32 %v4767_v30  ;;  %v8817_v59 = vld [vmem:[#allocation60_spill] sm:$0xff]  ;;  %v2933_v38 = vadd.f32 1.0, %v5404_v1  ;;  %v8819_v30 = vld [vmem:[#allocation14_spill] sm:$0xff] }
 0x364   : > { %3608 = vrot.lane.b32.xlu0 %v3498_v19, %s5760_s21  ;;  %v3423_v23 = vpop.permute.xlu1 %3422  ;;  %v5408_v15 = vpop.eup %5407  ;;  %v8815_v19 = vld [vmem:[#allocation29_spill] sm:$0xff]  ;;  %5423 = vrcp.f32 %v2935_v36  ;;  %v2803_v36 = vadd.f32 %v8819_v30, %v7651_v26  ;;  %v3532_v26 = vld [vmem:[%s8597_s5 + $0x80] sm:$0xff] }
 0x365   : > { %v3501_v50 = vadd.f32 %v3423_v23, %v3149_v41  ;;  %v5410_v44 = vpop.eup %5409  ;;  %5425 = vrcp.f32 %v2932_v8  ;;  %v3150_v63 = vmul.f32 %v5408_v15, %v8816_v34  ;;  %v2938_v41 = vadd.f32 1.0, %v5406_v39 }
 0x366   : > { %3610 = vrot.lane.b32.xlu1 %v3499_v27, %s5760_s21  ;;  %v2809_v27 = vadd.f32 %v8815_v19, %v7665_v20  ;;  %v5412_v4 = vpop.eup %5411  ;;  %5427 = vtanh.f32 %v3500_v10  ;;  %v4759_v15 = vmul.f32 -1.442695, %v2803_v36 }
 0x367   : > { %v5414_v46 = vpop.eup %5413  ;;  %5429 = vpow2.f32 %v4758_v42  ;;  %v3158_v23 = vmul.f32 %v5412_v4, %v8818_v18  ;;  %v8820_v4 = vld [vmem:[#allocation70_spill] sm:$0xff] }
 0x368   : > { %4148 = vrot.lane.b32.xlu0 %v5398_v40, %s5759_s10  ;;  %v4765_v40 = vmul.f32 -1.442695, %v2809_v27  ;;  %5431 = vrcp.f32 %v2928_v31  ;;  %v8822_v18 = vld [vmem:[#allocation62_spill] sm:$0xff] }
 0x36a   : > { %4150 = vrot.lane.b32.xlu1 %v5400_v6, %s5759_s10  ;;  %v5416_v14 = vpop.eup %5415  ;;  %v3151_v6 = vmul.f32 %v5410_v44, %v8817_v59  ;;  %5433 = vpow2.f32 %v4765_v40 }
 0x36b   : > { %v5418_v12 = vpop.eup %5417  ;;  %5435 = vrcp.f32 %v2933_v38 }
 0x36c   : > { %3612 = vrot.lane.b32.xlu0 %v3500_v10, %s5760_s21  ;;  %v5420_v10 = vpop.eup %5419  ;;  %v2929_v1 = vadd.f32 1.0, %v5418_v12  ;;  %5437 = vrcp.f32 %v2938_v41 }
 0x36d   : > { %v5422_v8 = vpop.eup %5421  ;;  %5439 = vtanh.f32 %v3501_v50 }
 0x36e   : > { %v3425_v51 = vpop.permute.xlu0 %3424  ;;  %3614 = vrot.lane.b32.xlu1 %v3501_v50, %s5760_s21  ;;  %v5424_v44 = vpop.eup %5423  ;;  %5441 = vrcp.f32 %v2929_v1  ;;  %v2939_v31 = vadd.f32 1.0, %v5422_v8 }
 0x36f   : > { %v3427_v54 = vpop.permute.xlu1 %3426  ;;  %v3502_v3 = vadd.f32 %v3425_v51, %v3150_v63  ;;  %v5426_v39 = vpop.eup %5425  ;;  %5443 = vpow2.f32 %v4759_v15  ;;  %v2936_v51 = vadd.f32 1.0, %v5420_v10  ;;  %v3159_v42 = vmul.f32 %v5424_v44, %v8820_v4  ;;  %v8823_v10 = vld [vmem:[#allocation68_spill] sm:$0xff]  ;;  %v8824_v44 = vld [vmem:[#allocation73_spill] sm:$0xff] }
 0x370   : > { %4152 = vrot.lane.b32.xlu0 %v5414_v46, %s5759_s10  ;;  %v3503_v7 = vadd.f32 %v3427_v54, %v3151_v6  ;;  %v5428_v27 = vpop.eup %5427 }
 0x371   : > { %v5430_v46 = vpop.eup %5429  ;;  %5445 = vrcp.f32 %v2936_v51 }
 0x372   : > { %4154 = vrot.lane.b32.xlu1 %v5416_v14, %s5759_s10  ;;  %v8821_v14 = vld [vmem:[#allocation67_spill] sm:$0xff]  ;;  %v5432_v54 = vpop.eup %5431  ;;  %v2930_v6 = vadd.f32 1.0, %v5430_v46  ;;  %5447 = vrcp.f32 %v2939_v31 }
 0x373   : > { %v3156_v34 = vmul.f32 %v5426_v39, %v8821_v14  ;;  %5449 = vtanh.f32 %v3502_v3 }
 0x374   : > { %3616 = vrot.lane.b32.xlu0 %v3502_v3, %s5760_s21  ;;  %v5434_v59 = vpop.eup %5433  ;;  %5451 = vrcp.f32 %v2930_v6  ;;  %v8826_v6 = vld [vmem:[#allocation71_spill] sm:$0xff] }
 0x375   : > { %v5436_v38 = vpop.eup %5435  ;;  %v2937_v15 = vadd.f32 1.0, %v5434_v59 }
 0x376   : > { %3618 = vrot.lane.b32.xlu1 %v3503_v7, %s5760_s21  ;;  %v5438_v41 = vpop.eup %5437  ;;  %v3157_v1 = vmul.f32 %v5436_v38, %v8823_v10 }
 0x377   : > { %v5440_v30 = vpop.eup %5439  ;;  %v3162_v39 = vmul.f32 %v5438_v41, %v8824_v44  ;;  %5453 = vrcp.f32 %v2937_v15 }
 0x378   : > { %v5442_v8 = vpop.eup %5441  ;;  %5455 = vtanh.f32 %v3503_v7  ;;  %v8828_v7 = vld [vmem:[#allocation65_spill] sm:$0xff] }
 0x37a   : > { %v3441_v55 = vpop.permute.xlu0 %3440 }
 0x37b   : > { %v8014_v56 = vadd.f32 %v3441_v55, %v3158_v23  ;;  %v3152_v23 = vmul.f32 %v5432_v54, %v8822_v18  ;;  %v8827_v18 = vld [vmem:[#allocation74_spill] sm:$0xff] }
 0x37d   : > { %3632 = vrot.lane.b32.xlu0 %v8014_v56, %s5760_s21 }
 0x37f   : > { %v3437_v19 = vpop.permute.xlu0 %3436 }
 0x380   : > { %v8024_v40 = vadd.f32 %v3437_v19, %v3156_v34  ;;  %v5444_v19 = vpop.eup %5443 }
 0x381   : > { %v3443_v63 = vpop.permute.xlu1 %3442  ;;  %4156 = vrot.lane.b32.xlu0 %v5428_v27, %s5759_s10  ;;  %v2931_v31 = vadd.f32 1.0, %v5444_v19  ;;  %v5446_v14 = vpop.eup %5445  ;;  %v8829_v19 = vld [vmem:[#allocation72_spill] sm:$0xff] }
 0x382   : > { %v8022_v50 = vadd.f32 %v3443_v63, %v3159_v42  ;;  %v8825_v42 = vld [vmem:[#allocation64_spill] sm:$0xff]  ;;  %v5448_v63 = vpop.eup %5447 }
 0x383   : > { %v3429_v55 = vpop.permute.xlu0 %3428  ;;  %v3153_v46 = vmul.f32 %v5442_v8, %v8825_v42  ;;  %v5450_v54 = vpop.eup %5449  ;;  %5457 = vrcp.f32 %v2931_v31  ;;  %v8830_v31 = vld [vmem:[#allocation66_spill] sm:$0xff] }
 0x384   : > { %3634 = vrot.lane.b32.xlu1 %v8022_v50, %s5760_s21  ;;  %v8031_v36 = vadd.f32 %v3429_v55, %v3152_v23  ;;  %v3160_v55 = vmul.f32 %v5446_v14, %v8826_v6  ;;  %v5452_v38 = vpop.eup %5451  ;;  %v3163_v23 = vmul.f32 %v5448_v63, %v8827_v18 }
 0x385   : > { %v3439_v12 = vpop.permute.xlu1 %3438  ;;  %3628 = vrot.lane.b32.xlu0 %v8024_v40, %s5760_s21  ;;  %v5454_v8 = vpop.eup %5453 }
 0x386   : > { %v8038_v27 = vadd.f32 %v3439_v12, %v3157_v1  ;;  %v3154_v1 = vmul.f32 %v5452_v38, %v8828_v7  ;;  %5459 = vtanh.f32 %v8031_v36 }
 0x387   : > { %v3449_v51 = vpop.permute.xlu0 %3448 }
 0x388   : > { %4158 = vrot.lane.b32.xlu1 %v5440_v30, %s5759_s10  ;;  %v8040_v4 = vadd.f32 %v3449_v51, %v3162_v39  ;;  %v5456_v39 = vpop.eup %5455  ;;  %v3161_v51 = vmul.f32 %v5454_v8, %v8829_v19 }
 0x389   : > { %3620 = vrot.lane.b32.xlu0 %v8031_v36, %s5760_s21  ;;  %v3431_v3 = vpop.permute.xlu1 %3430 }
 0x38a   : > { %v8047_v34 = vadd.f32 %v3431_v3, %v3153_v46 }
 0x38b   : > { %v3445_v59 = vpop.permute.xlu0 %3444 }
 0x38c   : > { %3630 = vrot.lane.b32.xlu1 %v8038_v27, %s5760_s21  ;;  %v8054_v41 = vadd.f32 %v3445_v59, %v3160_v55  ;;  %v3519_v59 = vld [vmem:[%s8597_s5 + $0x18] sm:$0xff] }
 0x38d   : > { %3640 = vrot.lane.b32.xlu0 %v8040_v4, %s5760_s21  ;;  %v5458_v3 = vpop.eup %5457 }
 0x38e   : > { %v3155_v14 = vmul.f32 %v5458_v3, %v8830_v31  ;;  %v3520_v31 = vld [vmem:[%s8597_s5 + $0x20] sm:$0xff] }
 0x390   : > { %3622 = vrot.lane.b32.xlu1 %v8047_v34, %s5760_s21 }
 0x391   : > { %4160 = vrot.lane.b32.xlu0 %v5450_v54, %s5759_s10  ;;  %v3451_v12 = vpop.permute.xlu1 %3450  ;;  %v3518_v54 = vld [vmem:[%s8597_s5 + $0x10] sm:$0xff] }
 0x392   : > { %v8056_v30 = vadd.f32 %v3451_v12, %v3163_v23  ;;  %v3433_v10 = vpop.permute.xlu0 %3432  ;;  %v3516_v23 = vld [vmem:[%s8597_s5] sm:$0xff]  ;;  %v3517_v12 = vld [vmem:[%s8597_s5 + $0x8] sm:$0xff] }
 0x393   : > { %v8063_v44 = vadd.f32 %v3433_v10, %v3154_v1 }
 0x394   : > { %3642 = vrot.lane.b32.xlu1 %v8056_v30, %s5760_s21 }
 0x395   : > { %3636 = vrot.lane.b32.xlu0 %v8054_v41, %s5760_s21  ;;  %v3447_v15 = vpop.permute.xlu1 %3446  ;;  %5461 = vtanh.f32 %v8063_v44 }
 0x396   : > { %v8069_v42 = vadd.f32 %v3447_v15, %v3161_v51  ;;  %v3522_v15 = vld [vmem:[%s8597_s5 + $0x30] sm:$0xff]  ;;  %5463 = vtanh.f32 %v8024_v40 }
 0x397   : > { %5465 = vtanh.f32 %v8047_v34 }
 0x398   : > { %4162 = vrot.lane.b32.xlu1 %v5456_v39, %s5759_s10  ;;  %v3523_v39 = vld [vmem:[%s8597_s5 + $0x38] sm:$0xff]  ;;  %5467 = vtanh.f32 %v8014_v56 }
 0x399   : > { %3624 = vrot.lane.b32.xlu0 %v8063_v44, %s5760_s21  ;;  %v3435_v46 = vpop.permute.xlu1 %3434 }
 0x39a   : > { %v8077_v63 = vadd.f32 %v3435_v46, %v3155_v14  ;;  %v3521_v14 = vld [vmem:[%s8597_s5 + $0x28] sm:$0xff] }
 0x39c   : > { %3638 = vrot.lane.b32.xlu1 %v8069_v42, %s5760_s21  ;;  %5469 = vtanh.f32 %v8077_v63 }
 0x39d   : > { %5471 = vtanh.f32 %v8054_v41 }
 0x39e   : > { %5473 = vtanh.f32 %v8038_v27 }
 0x39f   : > { %5475 = vtanh.f32 %v8040_v4 }
 0x3a0   : > { %3626 = vrot.lane.b32.xlu1 %v8077_v63, %s5760_s21  ;;  %v3585_v6 = vpop.permute.xlu0 %3584  ;;  %5477 = vtanh.f32 %v8022_v50 }
 0x3a1   : > { %v3678_v55 = vmul.f32 %v3585_v6, %v3518_v54  ;;  %4414 = vst.msk [vmem:[%s8090_s24 + $0x10] sm:$0xff] %vm1705_vm14, %v3585_v6  ;;  %5479 = vtanh.f32 %v8069_v42 }
 0x3a2   : > { %v3587_v38 = vpop.permute.xlu1 %3586 }
 0x3a3   : > { %v3679_v18 = vmul.f32 %v3587_v38, %v3519_v59  ;;  %4415 = vst.msk [vmem:[%s8090_s24 + $0x18] sm:$0xff] %vm1705_vm14, %v3587_v38  ;;  %3744 = vrot.lane.b32.xlu0 %v3678_v55, %s5760_s21 }
 0x3a4   : > { %v3581_v10 = vpop.permute.xlu0 %3580 }
 0x3a5   : > { %3746 = vrot.lane.b32.xlu1 %v3679_v18, %s5760_s21  ;;  %v3676_v7 = vmul.f32 %v3581_v10, %v3516_v23  ;;  %4412 = vst.msk [vmem:[%s8090_s24] sm:$0xff] %vm1705_vm14, %v3581_v10  ;;  %v3526_v10 = vld [vmem:[%s8597_s5 + $0x50] sm:$0xff] }
 0x3a6   : > { %v3583_v1 = vpop.permute.xlu1 %3582 }
 0x3a7   : > { %v3677_v8 = vmul.f32 %v3583_v1, %v3517_v12  ;;  %4413 = vst.msk [vmem:[%s8090_s24 + $0x8] sm:$0xff] %vm1705_vm14, %v3583_v1  ;;  %3740 = vrot.lane.b32.xlu0 %v3676_v7, %s5760_s21  ;;  %v3527_v7 = vld [vmem:[%s8597_s5 + $0x58] sm:$0xff] }
 0x3a8   : > { %v3593_v19 = vpop.permute.xlu0 %3592 }
 0x3a9   : > { %3742 = vrot.lane.b32.xlu1 %v3677_v8, %s5760_s21  ;;  %v3682_v51 = vmul.f32 %v3593_v19, %v3522_v15  ;;  %4418 = vst.msk [vmem:[%s8090_s24 + $0x30] sm:$0xff] %vm1705_vm14, %v3593_v19  ;;  %v3524_v19 = vld [vmem:[%s8597_s5 + $0x40] sm:$0xff] }
 0x3aa   : > { %v3595_v3 = vpop.permute.xlu1 %3594 }
 0x3ab   : > { %v3683_v46 = vmul.f32 %v3595_v3, %v3523_v39  ;;  %4419 = vst.msk [vmem:[%s8090_s24 + $0x38] sm:$0xff] %vm1705_vm14, %v3595_v3  ;;  %3752 = vrot.lane.b32.xlu0 %v3682_v51, %s5760_s21  ;;  %v3525_v51 = vld [vmem:[%s8597_s5 + $0x48] sm:$0xff] }
 0x3ac   : > { %v3589_v54 = vpop.permute.xlu0 %3588 }
 0x3ad   : > { %3754 = vrot.lane.b32.xlu1 %v3683_v46, %s5760_s21  ;;  %v3680_v59 = vmul.f32 %v3589_v54, %v3520_v31  ;;  %4416 = vst.msk [vmem:[%s8090_s24 + $0x20] sm:$0xff] %vm1705_vm14, %v3589_v54 }
 0x3af   : > { %v3591_v6 = vpop.permute.xlu1 %3590  ;;  %3748 = vrot.lane.b32.xlu0 %v3680_v59, %s5760_s21 }
 0x3b0   : > { %v3681_v55 = vmul.f32 %v3591_v6, %v3521_v14  ;;  %4417 = vst.msk [vmem:[%s8090_s24 + $0x28] sm:$0xff] %vm1705_vm14, %v3591_v6  ;;  %v8133_v38 = vpop.permute.xlu0 %4128 }
 0x3b2   : > { %3750 = vrot.lane.b32.xlu1 %v3681_v55, %s5760_s21 }
 0x3b3   : > { %v8136_v18 = vpop.permute.xlu1 %4130 }
 0x3b4   : > { %v8138_v23 = vpop.permute.xlu0 %4124 }
 0x3b7   : > { %v8140_v12 = vpop.permute.xlu1 %4126 }
 0x3ba   : > { %v3601_v1 = vpop.permute.xlu0 %3600 }
 0x3bb   : > { %v3686_v8 = vmul.f32 %v3601_v1, %v3526_v10  ;;  %4422 = vst.msk [vmem:[%s8090_s24 + $0x50] sm:$0xff] %vm1705_vm14, %v3601_v1  ;;  %v3528_v10 = vld [vmem:[%s8597_s5 + $0x60] sm:$0xff] }
 0x3bc   : > { %v3603_v15 = vpop.permute.xlu1 %3602 }
 0x3bd   : > { %v3687_v39 = vmul.f32 %v3603_v15, %v3527_v7  ;;  %4423 = vst.msk [vmem:[%s8090_s24 + $0x58] sm:$0xff] %vm1705_vm14, %v3603_v15  ;;  %3760 = vrot.lane.b32.xlu0 %v3686_v8, %s5760_s21  ;;  %v3529_v7 = vld [vmem:[%s8597_s5 + $0x68] sm:$0xff] }
 0x3be   : > { %v3597_v3 = vpop.permute.xlu0 %3596 }
 0x3bf   : > { %3762 = vrot.lane.b32.xlu1 %v3687_v39, %s5760_s21  ;;  %v3684_v46 = vmul.f32 %v3597_v3, %v3524_v19  ;;  %4420 = vst.msk [vmem:[%s8090_s24 + $0x40] sm:$0xff] %vm1705_vm14, %v3597_v3 }
 0x3c0   : > { %v3599_v31 = vpop.permute.xlu1 %3598 }
 0x3c1   : > { %v3685_v14 = vmul.f32 %v3599_v31, %v3525_v51  ;;  %4421 = vst.msk [vmem:[%s8090_s24 + $0x48] sm:$0xff] %vm1705_vm14, %v3599_v31  ;;  %3756 = vrot.lane.b32.xlu0 %v3684_v46, %s5760_s21  ;;  %v3530_v31 = vld [vmem:[%s8597_s5 + $0x70] sm:$0xff] }
 0x3c2   : > { %v8165_v54 = vpop.permute.xlu0 %4136 }
 0x3c3   : > { %3758 = vrot.lane.b32.xlu1 %v3685_v14, %s5760_s21  ;;  %v3531_v14 = vld [vmem:[%s8597_s5 + $0x78] sm:$0xff] }
 0x3c4   : > { %v8168_v59 = vpop.permute.xlu1 %4138 }
 0x3c6   : > { %v8170_v6 = vpop.permute.xlu0 %4132 }
 0x3c8   : > { %v8172_v55 = vpop.permute.xlu1 %4134 }
 0x3ca   : > { %v3605_v1 = vpop.permute.xlu0 %3604 }
 0x3cb   : > { %v3688_v8 = vmul.f32 %v3605_v1, %v3528_v10  ;;  %4424 = vst.msk [vmem:[%s8090_s24 + $0x60] sm:$0xff] %vm1705_vm14, %v3605_v1 }
 0x3cc   : > { %v3607_v15 = vpop.permute.xlu1 %3606 }
 0x3cd   : > { %v3689_v39 = vmul.f32 %v3607_v15, %v3529_v7  ;;  %4425 = vst.msk [vmem:[%s8090_s24 + $0x68] sm:$0xff] %vm1705_vm14, %v3607_v15  ;;  %3764 = vrot.lane.b32.xlu0 %v3688_v8, %s5760_s21 }
 0x3ce   : > { %v8185_v19 = vpop.permute.xlu0 %4144 }
 0x3cf   : > { %3766 = vrot.lane.b32.xlu1 %v3689_v39, %s5760_s21 }
 0x3d0   : > { %v8188_v51 = vpop.permute.xlu1 %4146 }
 0x3d2   : > { %v8190_v3 = vpop.permute.xlu0 %4140 }
 0x3d4   : > { %v8192_v46 = vpop.permute.xlu1 %4142 }
 0x3d6   : > { %v3609_v10 = vpop.permute.xlu0 %3608 }
 0x3d7   : > { %v3690_v7 = vmul.f32 %v3609_v10, %v3530_v31  ;;  %4426 = vst.msk [vmem:[%s8090_s24 + $0x70] sm:$0xff] %vm1705_vm14, %v3609_v10  ;;  %v3533_v31 = vld [vmem:[%s8597_s5 + $0x88] sm:$0xff] }
 0x3d8   : > { %v3611_v1 = vpop.permute.xlu1 %3610 }
 0x3d9   : > { %v3691_v8 = vmul.f32 %v3611_v1, %v3531_v14  ;;  %4427 = vst.msk [vmem:[%s8090_s24 + $0x78] sm:$0xff] %vm1705_vm14, %v3611_v1  ;;  %3768 = vrot.lane.b32.xlu0 %v3690_v7, %s5760_s21 }
 0x3da   : > { %v8205_v15 = vpop.permute.xlu0 %4148 }
 0x3db   : > { %3770 = vrot.lane.b32.xlu1 %v3691_v8, %s5760_s21 }
 0x3dc   : > { %v8208_v39 = vpop.permute.xlu1 %4150 }
 0x3de   : > { %v3613_v14 = vpop.permute.xlu0 %3612 }
 0x3df   : > { %v3692_v10 = vmul.f32 %v3613_v14, %v3532_v26  ;;  %4428 = vst.msk [vmem:[%s8090_s24 + $0x80] sm:$0xff] %vm1705_vm14, %v3613_v14  ;;  %v3534_v26 = vld [vmem:[%s8597_s5 + $0x90] sm:$0xff]  ;;  %v3535_v14 = vld [vmem:[%s8597_s5 + $0x98] sm:$0xff] }
 0x3e0   : > { %v3615_v7 = vpop.permute.xlu1 %3614 }
 0x3e1   : > { %v3693_v1 = vmul.f32 %v3615_v7, %v3533_v31  ;;  %4429 = vst.msk [vmem:[%s8090_s24 + $0x88] sm:$0xff] %vm1705_vm14, %v3615_v7  ;;  %3772 = vrot.lane.b32.xlu0 %v3692_v10, %s5760_s21 }
 0x3e2   : > { %v8221_v8 = vpop.permute.xlu0 %4152 }
 0x3e3   : > { %3774 = vrot.lane.b32.xlu1 %v3693_v1, %s5760_s21  ;;  %v3542_v1 = vld [vmem:[%s8597_s5 + $0xd0] sm:$0xff] }
 0x3e4   : > { %v8224_v13 = vpop.permute.xlu1 %4154 }
 0x3e6   : > { %v3617_v31 = vpop.permute.xlu0 %3616 }
 0x3e7   : > { %v3694_v20 = vmul.f32 %v3617_v31, %v3534_v26  ;;  %4430 = vst.msk [vmem:[%s8090_s24 + $0x90] sm:$0xff] %vm1705_vm14, %v3617_v31  ;;  %v3540_v31 = vld [vmem:[%s8597_s5 + $0xc0] sm:$0xff] }
 0x3e8   : > { %v3619_v10 = vpop.permute.xlu1 %3618 }
 0x3e9   : > { %v3695_v7 = vmul.f32 %v3619_v10, %v3535_v14  ;;  %4431 = vst.msk [vmem:[%s8090_s24 + $0x98] sm:$0xff] %vm1705_vm14, %v3619_v10  ;;  %3776 = vrot.lane.b32.xlu0 %v3694_v20, %s5760_s21  ;;  %v3543_v14 = vld [vmem:[%s8597_s5 + $0xd8] sm:$0xff] }
 0x3eb   : > { %3778 = vrot.lane.b32.xlu1 %v3695_v7, %s5760_s21 }
 0x3ef   : > { %v3633_v2 = vpop.permute.xlu0 %3632 }
 0x3f0   : > { %v3702_v60 = vmul.f32 %v3633_v2, %v3542_v1  ;;  %4438 = vst.msk [vmem:[%s8090_s24 + $0xd0] sm:$0xff] %vm1705_vm14, %v3633_v2 }
 0x3f2   : > { %3792 = vrot.lane.b32.xlu0 %v3702_v60, %s5760_s21  ;;  %v3536_v60 = vld [vmem:[%s8597_s5 + $0xa0] sm:$0xff] }
 0x3f3   : > { %v8244_v26 = vpop.permute.xlu0 %4156 }
 0x3f6   : > { %v3635_v20 = vpop.permute.xlu1 %3634 }
 0x3f7   : > { %v3703_v10 = vmul.f32 %v3635_v20, %v3543_v14  ;;  %4439 = vst.msk [vmem:[%s8090_s24 + $0xd8] sm:$0xff] %vm1705_vm14, %v3635_v20  ;;  %v3629_v7 = vpop.permute.xlu0 %3628  ;;  %v3541_v14 = vld [vmem:[%s8597_s5 + $0xc8] sm:$0xff]  ;;  %v3546_v20 = vld [vmem:[%s8597_s5 + $0xf0] sm:$0xff] }
 0x3f8   : > { %v3700_v2 = vmul.f32 %v3629_v7, %v3540_v31  ;;  %4436 = vst.msk [vmem:[%s8090_s24 + $0xc0] sm:$0xff] %vm1705_vm14, %v3629_v7 }
 0x3f9   : > { %3794 = vrot.lane.b32.xlu1 %v3703_v10, %s5760_s21 }
 0x3fa   : > { %v8260_v1 = vpop.permute.xlu1 %4158  ;;  %3788 = vrot.lane.b32.xlu0 %v3700_v2, %s5760_s21 }
 0x3fb   : > { %v3621_v53 = vpop.permute.xlu0 %3620 }
 0x3fc   : > { %v3696_v31 = vmul.f32 %v3621_v53, %v3536_v60  ;;  %4432 = vst.msk [vmem:[%s8090_s24 + $0xa0] sm:$0xff] %vm1705_vm14, %v3621_v53 }
 0x3fe   : > { %v3631_v10 = vpop.permute.xlu1 %3630  ;;  %3780 = vrot.lane.b32.xlu0 %v3696_v31, %s5760_s21  ;;  %v3544_v31 = vld [vmem:[%s8597_s5 + $0xe0] sm:$0xff] }
 0x3ff   : > { %v3701_v7 = vmul.f32 %v3631_v10, %v3541_v14  ;;  %4437 = vst.msk [vmem:[%s8090_s24 + $0xc8] sm:$0xff] %vm1705_vm14, %v3631_v10  ;;  %v3641_v2 = vpop.permute.xlu0 %3640 }
 0x400   : > { %v3706_v45 = vmul.f32 %v3641_v2, %v3546_v20  ;;  %4442 = vst.msk [vmem:[%s8090_s24 + $0xf0] sm:$0xff] %vm1705_vm14, %v3641_v2  ;;  %v3547_v20 = vld [vmem:[%s8597_s5 + $0xf8] sm:$0xff]  ;;  %v3538_v2 = vld [vmem:[%s8597_s5 + $0xb0] sm:$0xff] }
 0x401   : > { %3790 = vrot.lane.b32.xlu1 %v3701_v7, %s5760_s21 }
 0x402   : > { %v3623_v53 = vpop.permute.xlu1 %3622  ;;  %3800 = vrot.lane.b32.xlu0 %v3706_v45, %s5760_s21 }
 0x403   : > { %v3697_v60 = vmul.f32 %v3623_v53, %v3537_v32  ;;  %4433 = vst.msk [vmem:[%s8090_s24 + $0xa8] sm:$0xff] %vm1705_vm14, %v3623_v53  ;;  %v8283_v14 = vpop.permute.xlu0 %4160 }
 0x405   : > { %3782 = vrot.lane.b32.xlu1 %v3697_v60, %s5760_s21 }
 0x406   : > { %v3643_v45 = vpop.permute.xlu1 %3642 }
 0x407   : > { %v3637_v10 = vpop.permute.xlu0 %3636  ;;  %v3707_v7 = vmul.f32 %v3643_v45, %v3547_v20  ;;  %4443 = vst.msk [vmem:[%s8090_s24 + $0xf8] sm:$0xff] %vm1705_vm14, %v3643_v45  ;;  %v5460_v20 = vpop.eup %5459  ;;  %v3539_v45 = vld [vmem:[%s8597_s5 + $0xb8] sm:$0xff] }
 0x408   : > { %v3704_v32 = vmul.f32 %v3637_v10, %v3544_v31  ;;  %4440 = vst.msk [vmem:[%s8090_s24 + $0xe0] sm:$0xff] %vm1705_vm14, %v3637_v10  ;;  %v3545_v31 = vld [vmem:[%s8597_s5 + $0xe8] sm:$0xff] }
 0x409   : > { %3802 = vrot.lane.b32.xlu1 %v3707_v7, %s5760_s21 }
 0x40a   : > { %3796 = vrot.lane.b32.xlu0 %v3704_v32, %s5760_s21  ;;  %v8303_v53 = vpop.permute.xlu1 %4162  ;;  %v5462_v32 = vpop.eup %5461 }
 0x40b   : > { %v3625_v36 = vpop.permute.xlu0 %3624  ;;  %v5464_v7 = vpop.eup %5463 }
 0x40c   : > { %v3698_v60 = vmul.f32 %v3625_v36, %v3538_v2  ;;  %4434 = vst.msk [vmem:[%s8090_s24 + $0xb0] sm:$0xff] %vm1705_vm14, %v3625_v36  ;;  %v5466_v2 = vpop.eup %5465 }
 0x40d   : > { %v5468_v63 = vpop.eup %5467 }
 0x40e   : > { %3784 = vrot.lane.b32.xlu0 %v3698_v60, %s5760_s21  ;;  %v3639_v44 = vpop.permute.xlu1 %3638  ;;  %v5470_v41 = vpop.eup %5469 }
 0x40f   : > { %v3705_v10 = vmul.f32 %v3639_v44, %v3545_v31  ;;  %4441 = vst.msk [vmem:[%s8090_s24 + $0xe8] sm:$0xff] %vm1705_vm14, %v3639_v44 }
 0x411   : > { %3798 = vrot.lane.b32.xlu1 %v3705_v10, %s5760_s21 }
 0x412   : > { %4164 = vrot.lane.b32.xlu0 %v5460_v20, %s5759_s10  ;;  %v3627_v40 = vpop.permute.xlu1 %3626  ;;  %v5472_v20 = vpop.eup %5471 }
 0x413   : > { %v3699_v34 = vmul.f32 %v3627_v40, %v3539_v45  ;;  %4435 = vst.msk [vmem:[%s8090_s24 + $0xb8] sm:$0xff] %vm1705_vm14, %v3627_v40  ;;  %v5474_v45 = vpop.eup %5473 }
 0x415   : > { %3786 = vrot.lane.b32.xlu1 %v3699_v34, %s5760_s21  ;;  %v3745_v56 = vpop.permute.xlu0 %3744  ;;  %s5661_s21 = scalar_lea.vmem %s5660_s22, 8192 }
 0x416   : > { %4168 = vrot.lane.b32.xlu0 %v5462_v32, %s5759_s10  ;;  %v3838_v36 = vadd.f32 %v3745_v56, %v7431_v43  ;;  %v5476_v32 = vpop.eup %5475  ;;  %p5663_p1 = scmp.lt.s32.totalorder %s5661_s21, %s5655_s18 }
 0x417   : > { %v3747_v60 = vpop.permute.xlu1 %3746 }
 0x418   : > { %v3839_v31 = vadd.f32 %v3747_v60, %v7441_v9  ;;  %v4770_v27 = vmul.f32 -1.442695, %v3838_v36  ;;  %p5664_p2 = por %p5663_p1, %p5662_p0 }
 0x419   : > { %4166 = vrot.lane.b32.xlu1 %v5466_v2, %s5759_s10  ;;  %v3741_v44 = vpop.permute.xlu0 %3740 }
 0x41a   : > { %4172 = vrot.lane.b32.xlu0 %v5464_v7, %s5759_s10  ;;  %v4771_v4 = vmul.f32 -1.442695, %v3839_v31  ;;  %5481 = vpow2.f32 %v4770_v27  ;;  %v3836_v50 = vadd.f32 %v3741_v44, %v7436_v48  ;;  %v5478_v48 = vpop.eup %5477  ;;  %p5665_p3 = pnand %p5664_p2, %p5658_p13 }
 0x41b   : > { %v3743_v10 = vpop.permute.xlu1 %3742  ;;  %v5480_v60 = vpop.eup %5479 }
 0x41c   : > { %5483 = vpow2.f32 %v4771_v4  ;;  %v3837_v43 = vadd.f32 %v3743_v10, %v7443_v52  ;;  %v4768_v9 = vmul.f32 -1.442695, %v3836_v50 }
 0x41d   : > { %4170 = vrot.lane.b32.xlu1 %v5470_v41, %s5759_s10  ;;  %5485 = vtanh.f32 %v8056_v30  ;;  %v3753_v42 = vpop.permute.xlu0 %3752 }
 0x41e   : > { %4176 = vrot.lane.b32.xlu0 %v5468_v63, %s5759_s10  ;;  %v4769_v40 = vmul.f32 -1.442695, %v3837_v43  ;;  %5487 = vpow2.f32 %v4768_v9  ;;  %v3842_v34 = vadd.f32 %v3753_v42, %v7454_v37 }
 0x41f   : > { %v3755_v7 = vpop.permute.xlu1 %3754 }
 0x420   : > { %5489 = vpow2.f32 %v4769_v40  ;;  %v3843_v2 = vadd.f32 %v3755_v7, %v7461_v22  ;;  %v4774_v52 = vmul.f32 -1.442695, %v3842_v34 }
 0x421   : > { %4174 = vrot.lane.b32.xlu1 %v5474_v45, %s5759_s10  ;;  %v3749_v63 = vpop.permute.xlu0 %3748 }
 0x422   : > { %4180 = vrot.lane.b32.xlu0 %v5472_v20, %s5759_s10  ;;  %v4775_v56 = vmul.f32 -1.442695, %v3843_v2  ;;  %5491 = vpow2.f32 %v4774_v52  ;;  %v3840_v30 = vadd.f32 %v3749_v63, %v7457_v11 }
 0x424   : > { %v3751_v36 = vpop.permute.xlu1 %3750  ;;  %5493 = vpow2.f32 %v4775_v56  ;;  %v5482_v41 = vpop.eup %5481  ;;  %v4772_v31 = vmul.f32 -1.442695, %v3840_v30 }
 0x425   : > { %4178 = vrot.lane.b32.xlu1 %v5478_v48, %s5759_s10  ;;  %v3841_v37 = vadd.f32 %v3751_v36, %v7465_v58  ;;  %v3966_v27 = vadd.f32 1.0, %v5482_v41 }
 0x426   : > { %4184 = vrot.lane.b32.xlu0 %v5476_v32, %s5759_s10  ;;  %v5484_v22 = vpop.eup %5483  ;;  %5495 = vpow2.f32 %v4772_v31 }
 0x427   : > { %v4773_v4 = vmul.f32 -1.442695, %v3841_v37  ;;  %v3967_v44 = vadd.f32 1.0, %v5484_v22  ;;  %v5486_v20 = vpop.eup %5485  ;;  %5497 = vrcp.f32 %v3966_v27 }
 0x428   : > { %v5488_v50 = vpop.eup %5487 }
 0x429   : > { %4182 = vrot.lane.b32.xlu1 %v5480_v60, %s5759_s10  ;;  %5499 = vrcp.f32 %v3967_v44  ;;  %v3964_v10 = vadd.f32 1.0, %v5488_v50 }
 0x42a   : > { %v5490_v11 = vpop.eup %5489  ;;  %5501 = vpow2.f32 %v4773_v4 }
 0x42b   : > { %v3965_v45 = vadd.f32 1.0, %v5490_v11  ;;  %5503 = vrcp.f32 %v3964_v10 }
 0x42c   : > { %v5492_v58 = vpop.eup %5491 }
 0x42d   : > { %4186 = vrot.lane.b32.xlu1 %v5486_v20, %s5759_s10  ;;  %5505 = vrcp.f32 %v3965_v45  ;;  %v3970_v9 = vadd.f32 1.0, %v5492_v58  ;;  %s8654_s10 = sshll.u32 %s5831_s9, 12 }
 0x42e   : > { %v5494_v43 = vpop.eup %5493  ;;  %s8434_s17 = scalar_lea.hbm %s8600_s8, %s8654_s10 }
 0x42f   : > { %v3761_v40 = vpop.permute.xlu0 %3760  ;;  %v3971_v42 = vadd.f32 1.0, %v5494_v43  ;;  %5507 = vrcp.f32 %v3970_v9 }
 0x430   : > { %v3846_v32 = vadd.f32 %v3761_v40, %v7490_v57  ;;  %v5496_v48 = vpop.eup %5495 }
 0x431   : > { %v3763_v34 = vpop.permute.xlu1 %3762  ;;  %5509 = vrcp.f32 %v3971_v42  ;;  %v5498_v52 = vpop.eup %5497  ;;  %v3968_v56 = vadd.f32 1.0, %v5496_v48 }
 0x432   : > { %v3847_v7 = vadd.f32 %v3763_v34, %v7502_v24  ;;  %v4778_v2 = vmul.f32 -1.442695, %v3846_v32  ;;  %v4222_v60 = vmul.f32 %v5498_v52, %v8133_v38 }
 0x433   : > { %v3757_v30 = vpop.permute.xlu0 %3756  ;;  %v5500_v36 = vpop.eup %5499 }
 0x434   : > { %v4779_v63 = vmul.f32 -1.442695, %v3847_v7  ;;  %5511 = vpow2.f32 %v4778_v2  ;;  %v3844_v37 = vadd.f32 %v3757_v30, %v8773_v21  ;;  %v5502_v31 = vpop.eup %5501  ;;  %v4223_v57 = vmul.f32 %v5500_v36, %v8136_v18  ;;  %4288 = vrot.lane.b32.xlu0 %v4222_v60, %s5758_s23 }
 0x435   : > { %v3759_v41 = vpop.permute.xlu1 %3758  ;;  %5513 = vrcp.f32 %v3968_v56  ;;  %v3969_v22 = vadd.f32 1.0, %v5502_v31  ;;  %v5504_v4 = vpop.eup %5503 }
 0x436   : > { %v3845_v24 = vadd.f32 %v3759_v41, %v8775_v33  ;;  %5515 = vpow2.f32 %v4779_v63  ;;  %v4776_v27 = vmul.f32 -1.442695, %v3844_v37  ;;  %4290 = vrot.lane.b32.xlu1 %v4223_v57, %s5758_s23  ;;  %v4220_v21 = vmul.f32 %v5504_v4, %v8138_v23 }
 0x437   : > { %v5506_v20 = vpop.eup %5505  ;;  %5517 = vrcp.f32 %v3969_v22 }
 0x438   : > { %v4777_v44 = vmul.f32 -1.442695, %v3845_v24  ;;  %5519 = vpow2.f32 %v4776_v27  ;;  %v4221_v38 = vmul.f32 %v5506_v20, %v8140_v12  ;;  %4284 = vrot.lane.b32.xlu0 %v4220_v21, %s5758_s23 }
 0x439   : > { %v5508_v33 = vpop.eup %5507 }
 0x43a   : > { %5521 = vpow2.f32 %v4777_v44  ;;  %4286 = vrot.lane.b32.xlu1 %v4221_v38, %s5758_s23  ;;  %v4226_v50 = vmul.f32 %v5508_v33, %v8165_v54 }
 0x43b   : > { %v5510_v18 = vpop.eup %5509 }
 0x43c   : > { %v4227_v11 = vmul.f32 %v5510_v18, %v8168_v59  ;;  %4296 = vrot.lane.b32.xlu0 %v4226_v50, %s5758_s23 }
 0x43e   : > { %v5512_v10 = vpop.eup %5511  ;;  %4298 = vrot.lane.b32.xlu1 %v4227_v11, %s5758_s23 }
 0x43f   : > { %v5514_v45 = vpop.eup %5513  ;;  %v3974_v58 = vadd.f32 1.0, %v5512_v10  ;;  %v3765_v23 = vpop.permute.xlu0 %3764 }
 0x440   : > { %v5516_v12 = vpop.eup %5515  ;;  %v3848_v43 = vadd.f32 %v3765_v23, %v8777_v28  ;;  %v4224_v40 = vmul.f32 %v5514_v45, %v8170_v6 }
 0x441   : > { %v3767_v9 = vpop.permute.xlu1 %3766  ;;  %5523 = vrcp.f32 %v3974_v58  ;;  %v3975_v42 = vadd.f32 1.0, %v5516_v12  ;;  %v5518_v32 = vpop.eup %5517 }
 0x442   : > { %v3849_v54 = vadd.f32 %v3767_v9, %v7528_v5  ;;  %v4780_v59 = vmul.f32 -1.442695, %v3848_v43  ;;  %4292 = vrot.lane.b32.xlu0 %v4224_v40, %s5758_s23  ;;  %v5520_v34 = vpop.eup %5519  ;;  %v4225_v48 = vmul.f32 %v5518_v32, %v8172_v55 }
 0x443   : > { %5525 = vrcp.f32 %v3975_v42  ;;  %v3972_v52 = vadd.f32 1.0, %v5520_v34 }
 0x444   : > { %v4781_v7 = vmul.f32 -1.442695, %v3849_v54  ;;  %v5522_v2 = vpop.eup %5521  ;;  %5527 = vpow2.f32 %v4780_v59  ;;  %4294 = vrot.lane.b32.xlu1 %v4225_v48, %s5758_s23 }
 0x445   : > { %v3973_v28 = vadd.f32 1.0, %v5522_v2 }
 0x446   : > { %5529 = vpow2.f32 %v4781_v7 }
 0x447   : > { %5531 = vrcp.f32 %v3972_v52 }
 0x448   : > { %5533 = vrcp.f32 %v3973_v28 }
 0x44b   : > { %v5524_v6 = vpop.eup %5523  ;;  %v3769_v5 = vpop.permute.xlu0 %3768 }
 0x44c   : > { %v3850_v56 = vadd.f32 %v3769_v5, %v8786_v17  ;;  %v4230_v30 = vmul.f32 %v5524_v6, %v8185_v19 }
 0x44d   : > { %v3771_v63 = vpop.permute.xlu1 %3770  ;;  %v5526_v36 = vpop.eup %5525 }
 0x44e   : > { %v3851_v60 = vadd.f32 %v3771_v63, %v7526_v29  ;;  %v5528_v55 = vpop.eup %5527  ;;  %v4782_v37 = vmul.f32 -1.442695, %v3850_v56  ;;  %4304 = vrot.lane.b32.xlu0 %v4230_v30, %s5758_s23  ;;  %v4231_v41 = vmul.f32 %v5526_v36, %v8188_v51 }
 0x44f   : > { %v3976_v57 = vadd.f32 1.0, %v5528_v55 }
 0x450   : > { %v5530_v31 = vpop.eup %5529  ;;  %v4783_v24 = vmul.f32 -1.442695, %v3851_v60  ;;  %5535 = vpow2.f32 %v4782_v37  ;;  %4306 = vrot.lane.b32.xlu1 %v4231_v41, %s5758_s23 }
 0x451   : > { %v5532_v22 = vpop.eup %5531  ;;  %v3977_v27 = vadd.f32 1.0, %v5530_v31  ;;  %5537 = vrcp.f32 %v3976_v57  ;;  %v8831_v31 = vld [vmem:[#allocation52_spill] sm:$0xff] }
 0x452   : > { %v5534_v17 = vpop.eup %5533  ;;  %v4228_v19 = vmul.f32 %v5532_v22, %v8190_v3 }
 0x453   : > { %5539 = vrcp.f32 %v3977_v27  ;;  %v4229_v29 = vmul.f32 %v5534_v17, %v8192_v46  ;;  %v3773_v4 = vpop.permute.xlu0 %3772 }
 0x454   : > { %5541 = vpow2.f32 %v4783_v24  ;;  %4300 = vrot.lane.b32.xlu0 %v4228_v19, %s5758_s23  ;;  %v3852_v51 = vadd.f32 %v3773_v4, %v7547_v61  ;;  %v8832_v24 = vld [vmem:[#allocation50_spill] sm:$0xff] }
 0x455   : > { %4302 = vrot.lane.b32.xlu1 %v4229_v29, %s5758_s23  ;;  %v3775_v44 = vpop.permute.xlu1 %3774 }
 0x456   : > { %v3853_v20 = vadd.f32 %v3775_v44, %v7555_v25  ;;  %v4784_v21 = vmul.f32 -1.442695, %v3852_v51 }
 0x458   : > { %v4785_v38 = vmul.f32 -1.442695, %v3853_v20  ;;  %5543 = vpow2.f32 %v4784_v21  ;;  %v8834_v21 = vld [vmem:[#allocation55_spill] sm:$0xff] }
 0x45a   : > { %5545 = vpow2.f32 %v4785_v38  ;;  %v5536_v33 = vpop.eup %5535 }
 0x45b   : > { %v5538_v3 = vpop.eup %5537  ;;  %v3978_v18 = vadd.f32 1.0, %v5536_v33  ;;  %v3777_v50 = vpop.permute.xlu0 %3776 }
 0x45c   : > { %v3854_v11 = vadd.f32 %v3777_v50, %v7572_v47  ;;  %v4232_v45 = vmul.f32 %v5538_v3, %v8205_v15 }
 0x45d   : > { %v5540_v46 = vpop.eup %5539  ;;  %v3779_v10 = vpop.permute.xlu1 %3778  ;;  %5547 = vrcp.f32 %v3978_v18  ;;  %v8835_v18 = vld [vmem:[#allocation58_spill] sm:$0xff] }
 0x45e   : > { %v5542_v61 = vpop.eup %5541  ;;  %v3855_v58 = vadd.f32 %v3779_v10, %v7575_v35  ;;  %v4233_v25 = vmul.f32 %v5540_v46, %v8208_v39  ;;  %v4786_v12 = vmul.f32 -1.442695, %v3854_v11  ;;  %4308 = vrot.lane.b32.xlu0 %v4232_v45, %s5758_s23 }
 0x45f   : > { %v3979_v23 = vadd.f32 1.0, %v5542_v61 }
 0x460   : > { %v4787_v43 = vmul.f32 -1.442695, %v3855_v58  ;;  %4310 = vrot.lane.b32.xlu1 %v4233_v25, %s5758_s23  ;;  %v8836_v25 = vld [vmem:[#allocation63_spill] sm:$0xff] }
 0x461   : > { %5549 = vrcp.f32 %v3979_v23 }
 0x462   : > { %5551 = vpow2.f32 %v4786_v12  ;;  %v5544_v9 = vpop.eup %5543 }
 0x463   : > { %5553 = vpow2.f32 %v4787_v43  ;;  %v3980_v40 = vadd.f32 1.0, %v5544_v9 }
 0x464   : > { %v5546_v47 = vpop.eup %5545  ;;  %v3793_v15 = vpop.permute.xlu0 %3792 }
 0x465   : > { %v3981_v42 = vadd.f32 1.0, %v5546_v47  ;;  %5555 = vrcp.f32 %v3980_v40  ;;  %v3862_v39 = vadd.f32 %v3793_v15, %v7598_v0 }
 0x467   : > { %5557 = vrcp.f32 %v3981_v42  ;;  %v5548_v35 = vpop.eup %5547  ;;  %v4794_v5 = vmul.f32 -1.442695, %v3862_v39  ;;  %v8837_v42 = vld [vmem:[#allocation59_spill] sm:$0xff] }
 0x468   : > { %v4234_v32 = vmul.f32 %v5548_v35, %v8221_v8 }
 0x46a   : > { %4312 = vrot.lane.b32.xlu0 %v4234_v32, %s5758_s23 }
 0x46b   : > { %v5550_v59 = vpop.eup %5549  ;;  %v3795_v34 = vpop.permute.xlu1 %3794 }
 0x46c   : > { %v3789_v54 = vpop.permute.xlu0 %3788  ;;  %v5552_v7 = vpop.eup %5551  ;;  %v4235_v48 = vmul.f32 %v5550_v59, %v8224_v13  ;;  %v3863_v13 = vadd.f32 %v3795_v34, %v7607_v16 }
 0x46d   : > { %v3860_v2 = vadd.f32 %v3789_v54, %v7604_v62  ;;  %v5554_v28 = vpop.eup %5553  ;;  %v3982_v6 = vadd.f32 1.0, %v5552_v7  ;;  %v8838_v54 = vld [vmem:[#allocation61_spill] sm:$0xff] }
 0x46e   : > { %v3983_v56 = vadd.f32 1.0, %v5554_v28  ;;  %4314 = vrot.lane.b32.xlu1 %v4235_v48, %s5758_s23  ;;  %v4795_v41 = vmul.f32 -1.442695, %v3863_v13 }
 0x46f   : > { %5559 = vrcp.f32 %v3982_v6  ;;  %v5556_v63 = vpop.eup %5555  ;;  %v4792_v30 = vmul.f32 -1.442695, %v3860_v2 }
 0x470   : > { %v3781_v52 = vpop.permute.xlu0 %3780  ;;  %5561 = vrcp.f32 %v3983_v56  ;;  %v4236_v62 = vmul.f32 %v5556_v63, %v8244_v26  ;;  %v8833_v26 = vld [vmem:[#allocation57_spill] sm:$0xff] }
 0x471   : > { %v3856_v8 = vadd.f32 %v3781_v52, %v7609_v49  ;;  %v5558_v36 = vpop.eup %5557  ;;  %5563 = vpow2.f32 %v4794_v5 }
 0x472   : > { %v4237_v60 = vmul.f32 %v5558_v36, %v8260_v1  ;;  %4316 = vrot.lane.b32.xlu0 %v4236_v62, %s5758_s23  ;;  %5565 = vpow2.f32 %v4792_v30 }
 0x473   : > { %v3791_v0 = vpop.permute.xlu1 %3790  ;;  %v4788_v55 = vmul.f32 -1.442695, %v3856_v8 }
 0x474   : > { %4318 = vrot.lane.b32.xlu1 %v4237_v60, %s5758_s23  ;;  %v3801_v37 = vpop.permute.xlu0 %3800  ;;  %v3861_v57 = vadd.f32 %v3791_v0, %v8831_v31 }
 0x475   : > { %5567 = vpow2.f32 %v4788_v55  ;;  %v3866_v38 = vadd.f32 %v3801_v37, %v8834_v21 }
 0x476   : > { %5569 = vpow2.f32 %v4795_v41  ;;  %v4793_v19 = vmul.f32 -1.442695, %v3861_v57 }
 0x477   : > { %v3783_v49 = vpop.permute.xlu1 %3782  ;;  %v4798_v10 = vmul.f32 -1.442695, %v3866_v38 }
 0x478   : > { %v3857_v22 = vadd.f32 %v3783_v49, %v8832_v24 }
 0x479   : > { %v5560_v16 = vpop.eup %5559 }
 0x47a   : > { %v5562_v1 = vpop.eup %5561  ;;  %v4238_v29 = vmul.f32 %v5560_v16, %v8283_v14  ;;  %v4789_v20 = vmul.f32 -1.442695, %v3857_v22 }
 0x47b   : > { %v5564_v4 = vpop.eup %5563  ;;  %v4239_v51 = vmul.f32 %v5562_v1, %v8303_v53  ;;  %v3803_v3 = vpop.permute.xlu1 %3802 }
 0x47c   : > { %v3797_v27 = vpop.permute.xlu0 %3796  ;;  %4320 = vrot.lane.b32.xlu0 %v4238_v29, %s5758_s23  ;;  %v5566_v46 = vpop.eup %5565  ;;  %v3990_v11 = vadd.f32 1.0, %v5564_v4  ;;  %v3867_v35 = vadd.f32 %v3803_v3, %v8837_v42 }
 0x47d   : > { %v3864_v17 = vadd.f32 %v3797_v27, %v8833_v26  ;;  %4322 = vrot.lane.b32.xlu1 %v4239_v51, %s5758_s23  ;;  %v3988_v61 = vadd.f32 1.0, %v5566_v46 }
 0x47e   : > { %v4799_v28 = vmul.f32 -1.442695, %v3867_v35 }
 0x47f   : > { %v4796_v44 = vmul.f32 -1.442695, %v3864_v17  ;;  %v5568_v45 = vpop.eup %5567 }
 0x480   : > { %v3785_v33 = vpop.permute.xlu0 %3784  ;;  %v5570_v12 = vpop.eup %5569  ;;  %v3984_v43 = vadd.f32 1.0, %v5568_v45 }
 0x481   : > { %5571 = vpow2.f32 %v4796_v44  ;;  %v3858_v50 = vadd.f32 %v3785_v33, %v8835_v18  ;;  %v3991_v15 = vadd.f32 1.0, %v5570_v12 }
 0x482   : > { %5573 = vpow2.f32 %v4793_v19 }
 0x483   : > { %v4790_v14 = vmul.f32 -1.442695, %v3858_v50  ;;  %5575 = vpow2.f32 %v4789_v20  ;;  %v3799_v58 = vpop.permute.xlu1 %3798 }
 0x484   : > { %v4165_v53 = vpop.permute.xlu0 %4164  ;;  %5577 = vrcp.f32 %v3990_v11  ;;  %v3865_v23 = vadd.f32 %v3799_v58, %v8836_v25 }
 0x485   : > { %5579 = vpow2.f32 %v4790_v14 }
 0x486   : > { %5581 = vpow2.f32 %v4798_v10  ;;  %v4797_v9 = vmul.f32 -1.442695, %v3865_v23 }
 0x487   : > { %5583 = vrcp.f32 %v3988_v61  ;;  %v3787_v40 = vpop.permute.xlu1 %3786 }
 0x488   : > { %v8412_v47 = vpop.permute.xlu0 %4168  ;;  %5585 = vpow2.f32 %v4797_v9  ;;  %v3859_v39 = vadd.f32 %v3787_v40, %v8838_v54 }
 0x489   : > { %5587 = vrcp.f32 %v3984_v43 }
 0x48a   : > { %v4791_v7 = vmul.f32 -1.442695, %v3859_v39  ;;  %5589 = vrcp.f32 %v3991_v15 }
 0x48b   : > { %v5572_v32 = vpop.eup %5571  ;;  %v4167_v2 = vpop.permute.xlu1 %4166 }
 0x48c   : > { %v5574_v59 = vpop.eup %5573  ;;  %v3992_v34 = vadd.f32 1.0, %v5572_v32  ;;  %v4173_v48 = vpop.permute.xlu0 %4172  ;;  %5591 = vpow2.f32 %v4791_v7 }
 0x48d   : > { %v5576_v52 = vpop.eup %5575  ;;  %v3989_v6 = vadd.f32 1.0, %v5574_v59 }
 0x48e   : > { %v5578_v5 = vpop.eup %5577  ;;  %5593 = vrcp.f32 %v3992_v34  ;;  %v3985_v8 = vadd.f32 1.0, %v5576_v52 }
 0x48f   : > { %v5580_v0 = vpop.eup %5579  ;;  %v8416_v63 = vpop.permute.xlu1 %4170  ;;  %5595 = vpow2.f32 %v4799_v28 }
 0x490   : > { %v4177_v56 = vpop.permute.xlu0 %4176  ;;  %v5582_v36 = vpop.eup %5581  ;;  %v3986_v13 = vadd.f32 1.0, %v5580_v0  ;;  %5597 = vrcp.f32 %v3989_v6 }
 0x491   : > { %v4246_v30 = vmul.f32 %v5578_v5, %v4177_v56  ;;  %v5584_v62 = vpop.eup %5583  ;;  %v3994_v31 = vadd.f32 1.0, %v5582_v36 }
 0x492   : > { %v5586_v60 = vpop.eup %5585  ;;  %5599 = vrcp.f32 %v3986_v13  ;;  %v4244_v37 = vmul.f32 %v5584_v62, %v4173_v48 }
 0x493   : > { %4336 = vrot.lane.b32.xlu0 %v4246_v30, %s5758_s23  ;;  %5601 = vrcp.f32 %v3985_v8  ;;  %v3993_v55 = vadd.f32 1.0, %v5586_v60  ;;  %v4175_v41 = vpop.permute.xlu1 %4174  ;;  %v5588_v49 = vpop.eup %5587 }
 0x494   : > { %v5590_v57 = vpop.eup %5589  ;;  %v4240_v22 = vmul.f32 %v5588_v49, %v4165_v53  ;;  %v4181_v19 = vpop.permute.xlu0 %4180 }
 0x495   : > { %5603 = vrcp.f32 %v3993_v55 }
 0x496   : > { %v5592_v24 = vpop.eup %5591  ;;  %5605 = vrcp.f32 %v3994_v31 }
 0x497   : > { %4332 = vrot.lane.b32.xlu0 %v4244_v37, %s5758_s23  ;;  %v4179_v27 = vpop.permute.xlu1 %4178  ;;  %v3987_v26 = vadd.f32 1.0, %v5592_v24 }
 0x498   : > { %v5594_v16 = vpop.eup %5593  ;;  %v4247_v17 = vmul.f32 %v5590_v57, %v4179_v27  ;;  %v4185_v3 = vpop.permute.xlu0 %4184 }
 0x499   : > { %v5596_v1 = vpop.eup %5595  ;;  %5607 = vrcp.f32 %v3987_v26  ;;  %v4248_v4 = vmul.f32 %v5594_v16, %v4181_v19 }
 0x49a   : > { %4338 = vrot.lane.b32.xlu1 %v4247_v17, %s5758_s23  ;;  %v5598_v29 = vpop.eup %5597  ;;  %v3995_v21 = vadd.f32 1.0, %v5596_v1 }
 0x49b   : > { %4324 = vrot.lane.b32.xlu0 %v4240_v22, %s5758_s23  ;;  %v4245_v44 = vmul.f32 %v5598_v29, %v4175_v41  ;;  %v4183_v46 = vpop.permute.xlu1 %4182 }
 0x49c   : > { %v5600_v51 = vpop.eup %5599  ;;  %5609 = vrcp.f32 %v3995_v21 }
 0x49d   : > { %v5602_v20 = vpop.eup %5601  ;;  %v4242_v38 = vmul.f32 %v5600_v51, %v8412_v47 }
 0x49e   : > { %4334 = vrot.lane.b32.xlu1 %v4245_v44, %s5758_s23  ;;  %v4241_v33 = vmul.f32 %v5602_v20, %v4167_v2 }
 0x49f   : > { %4340 = vrot.lane.b32.xlu0 %v4248_v4, %s5758_s23  ;;  %v5604_v18 = vpop.eup %5603 }
 0x4a0   : > { %v5606_v50 = vpop.eup %5605  ;;  %v4249_v14 = vmul.f32 %v5604_v18, %v4183_v46 }
 0x4a1   : > { %v4250_v11 = vmul.f32 %v5606_v50, %v4185_v3 }
 0x4a2   : > { %4326 = vrot.lane.b32.xlu1 %v4241_v33, %s5758_s23 }
 0x4a3   : > { %4328 = vrot.lane.b32.xlu0 %v4242_v38, %s5758_s23  ;;  %v5608_v10 = vpop.eup %5607 }
 0x4a6   : > { %4342 = vrot.lane.b32.xlu1 %v4249_v14, %s5758_s23 }
 0x4a7   : > { %4344 = vrot.lane.b32.xlu0 %v4250_v11, %s5758_s23 }
 0x4a8   : > { %5668 = shalt.err (!%p5665_p3)
}
 0x4a9   : > { %s5669_s24 = scalar_lea.hbm %s8434_s17, 4096  ;;  %s5673_s26 = scalar_lea.hbm %s8600_s8, 8192 }
 0x4aa   : > { %p5670_p4 = scmp.ne.s32.totalorder %s8434_s17, %s5669_s24  ;;  %p5674_p9 = scmp.lt.u32.totalorder %s8434_s17, %s8600_s8 }
 0x4ab   : > { %p5675_p10 = scmp.lt.u32.totalorder %s5673_s26, %s5669_s24  ;;  %p5677_p12 = scmp.lt.u32.totalorder %s5669_s24, %s8434_s17 }
 0x4ac   : > { %p5671_p7 = pnand %p5670_p4, %p5848_p5 }
 0x4ad   : > { %p5676_p11 = por %p5675_p10, %p5674_p9 }
 0x4ae   : > { %p5672_p8 = pneg %p5671_p7 }
 0x4af   : > { %p5678_p13 = por %p5677_p12, %p5676_p11 }
 0x4b1   : > { %p5679_p0 = pnand %p5678_p13, %p5672_p8 }
 0x4b3   : > { %5682 = shalt.err (!%p5679_p0)
}
 0x4b4   : > { %s5762_s18 = smov 128   ;;  %s5763_s21 = smov 8   ;;  %v4243_v53 = vmul.f32 %v5608_v10, %v8416_v63  ;;  %v4187_v45 = vpop.permute.xlu1 %4186  ;;  %v5610_v61 = vpop.eup %5609 }
 0x4b5   : > { %5005 = dma.vmem_to_hbm [thread:$0]  (%p5848_p5), %s8438_s25, 4096, %s8434_s17, %s4450_s13, %s5762_s18, %s5762_s18, %s5763_s21   ;;  %v4289_v58 = vpop.permute.xlu0 %4288  ;;  %v4251_v25 = vmul.f32 %v5610_v61, %v4187_v45 }
 0x4b6   : > { %4330 = vrot.lane.b32.xlu1 %v4243_v53, %s5758_s23  ;;  %s8839_s20 = sshll.u32 %s8075_s19, 8  ;;  %s8840_s17 = sshll.u32 %s5831_s9, 12 }
 0x4b7   : > { %s8471_s10 = scalar_lea.vmem [#allocation2], %s8839_s20  ;;  %s8542_s24 = scalar_lea.hbm %s8599_s7, %s8840_s17 }
 0x4b8   : > { %4382 = vst.msk [vmem:[%s8471_s10 + $0x10] sm:$0xff] %vm1705_vm14, %v4289_v58  ;;  %v4291_v23 = vpop.permute.xlu1 %4290  ;;  %s4445_s12 = scalar_lea.sflag [#allocation3], %s8075_s19  ;;  %s5764_s9 = smov [#allocation2]  }
 0x4b9   : > { %4383 = vst.msk [vmem:[%s8471_s10 + $0x18] sm:$0xff] %vm1705_vm14, %v4291_v23  ;;  %v4285_v12 = vpop.permute.xlu0 %4284  ;;  %s5687_s22 = sshll.u32 %s5764_s9, 4  ;;  %s5688_s22 = int_to_ptr.vmem [resolvable:$false] %s5687_s22 }
 0x4ba   : > { %4346 = vrot.lane.b32.xlu1 %v4251_v25, %s5758_s23  ;;  %4380 = vst.msk [vmem:[%s8471_s10] sm:$0xff] %vm1705_vm14, %v4285_v12  ;;  %s4463_s23 = sshll.u32 %s8471_s10, 4  ;;  %s5689_s20 = scalar_lea.vmem %s5688_s22, 8192  ;;  %s8544_s23 = int_to_ptr.vmem [resolvable:$true] %s4463_s23 }
 0x4bb   : > { %s5683_s26 = scalar_lea.vmem %s8544_s23, 4096  ;;  %p5690_p4 = scmp.lt.s32.totalorder %s8544_s23, %s5688_s22 }
 0x4bc   : > { %v4287_v43 = vpop.permute.xlu1 %4286  ;;  %p5684_p1 = scmp.ne.s32.totalorder %s8544_s23, %s5683_s26  ;;  %p5691_p7 = scmp.lt.s32.totalorder %s5689_s20, %s5683_s26 }
 0x4bd   : > { %4381 = vst.msk [vmem:[%s8471_s10 + $0x8] sm:$0xff] %vm1705_vm14, %v4287_v43  ;;  %v4297_v9 = vpop.permute.xlu0 %4296 }
 0x4be   : > { %4386 = vst.msk [vmem:[%s8471_s10 + $0x30] sm:$0xff] %vm1705_vm14, %v4297_v9  ;;  %p5685_p2 = pnand %p5684_p1, %p5848_p5  ;;  %p5692_p8 = por %p5691_p7, %p5690_p4 }
 0x4c0   : > { %v4299_v47 = vpop.permute.xlu1 %4298  ;;  %p5686_p3 = pneg %p5685_p2 }
 0x4c1   : > { %4387 = vst.msk [vmem:[%s8471_s10 + $0x38] sm:$0xff] %vm1705_vm14, %v4299_v47  ;;  %v4293_v40 = vpop.permute.xlu0 %4292 }
 0x4c2   : > { %4384 = vst.msk [vmem:[%s8471_s10 + $0x20] sm:$0xff] %vm1705_vm14, %v4293_v40  ;;  %p5693_p9 = pnand %p5692_p8, %p5686_p3 }
 0x4c4   : > { %v4295_v15 = vpop.permute.xlu1 %4294 }
 0x4c5   : > { %4385 = vst.msk [vmem:[%s8471_s10 + $0x28] sm:$0xff] %vm1705_vm14, %v4295_v15  ;;  %v4305_v42 = vpop.permute.xlu0 %4304 }
 0x4c6   : > { %4390 = vst.msk [vmem:[%s8471_s10 + $0x50] sm:$0xff] %vm1705_vm14, %v4305_v42 }
 0x4c8   : > { %v4307_v35 = vpop.permute.xlu1 %4306 }
 0x4c9   : > { %4391 = vst.msk [vmem:[%s8471_s10 + $0x58] sm:$0xff] %vm1705_vm14, %v4307_v35  ;;  %v4301_v54 = vpop.permute.xlu0 %4300 }
 0x4ca   : > { %4388 = vst.msk [vmem:[%s8471_s10 + $0x40] sm:$0xff] %vm1705_vm14, %v4301_v54 }
 0x4cc   : > { %v4303_v39 = vpop.permute.xlu1 %4302 }
 0x4cd   : > { %4389 = vst.msk [vmem:[%s8471_s10 + $0x48] sm:$0xff] %vm1705_vm14, %v4303_v39 }
 0x4d0   : > { %v4309_v32 = vpop.permute.xlu0 %4308 }
 0x4d1   : > { %4392 = vst.msk [vmem:[%s8471_s10 + $0x60] sm:$0xff] %vm1705_vm14, %v4309_v32 }
 0x4d2   : > { %v4311_v59 = vpop.permute.xlu1 %4310 }
 0x4d3   : > { %4393 = vst.msk [vmem:[%s8471_s10 + $0x68] sm:$0xff] %vm1705_vm14, %v4311_v59 }
 0x4dc   : > { %v4313_v34 = vpop.permute.xlu0 %4312 }
 0x4dd   : > { %4394 = vst.msk [vmem:[%s8471_s10 + $0x70] sm:$0xff] %vm1705_vm14, %v4313_v34 }
 0x4e0   : > { %v4315_v7 = vpop.permute.xlu1 %4314 }
 0x4e1   : > { %4395 = vst.msk [vmem:[%s8471_s10 + $0x78] sm:$0xff] %vm1705_vm14, %v4315_v7 }
 0x4e4   : > { %v4317_v48 = vpop.permute.xlu0 %4316 }
 0x4e5   : > { %4396 = vst.msk [vmem:[%s8471_s10 + $0x80] sm:$0xff] %vm1705_vm14, %v4317_v48 }
 0x4e6   : > { %v4319_v2 = vpop.permute.xlu1 %4318 }
 0x4e7   : > { %4397 = vst.msk [vmem:[%s8471_s10 + $0x88] sm:$0xff] %vm1705_vm14, %v4319_v2 }
 0x4ee   : > { %v4321_v52 = vpop.permute.xlu0 %4320 }
 0x4ef   : > { %4398 = vst.msk [vmem:[%s8471_s10 + $0x90] sm:$0xff] %vm1705_vm14, %v4321_v52  ;;  %v4323_v28 = vpop.permute.xlu1 %4322 }
 0x4f0   : > { %4399 = vst.msk [vmem:[%s8471_s10 + $0x98] sm:$0xff] %vm1705_vm14, %v4323_v28 }
 0x505   : > { %v4337_v6 = vpop.permute.xlu0 %4336 }
 0x506   : > { %4406 = vst.msk [vmem:[%s8471_s10 + $0xd0] sm:$0xff] %vm1705_vm14, %v4337_v6 }
 0x509   : > { %v4333_v5 = vpop.permute.xlu0 %4332 }
 0x50a   : > { %4404 = vst.msk [vmem:[%s8471_s10 + $0xc0] sm:$0xff] %vm1705_vm14, %v4333_v5 }
 0x50c   : > { %v4339_v0 = vpop.permute.xlu1 %4338 }
 0x50d   : > { %v4325_v56 = vpop.permute.xlu0 %4324  ;;  %4407 = vst.msk [vmem:[%s8471_s10 + $0xd8] sm:$0xff] %vm1705_vm14, %v4339_v0 }
 0x50e   : > { %4400 = vst.msk [vmem:[%s8471_s10 + $0xa0] sm:$0xff] %vm1705_vm14, %v4325_v56 }
 0x510   : > { %v4335_v63 = vpop.permute.xlu1 %4334 }
 0x511   : > { %v4341_v8 = vpop.permute.xlu0 %4340  ;;  %4405 = vst.msk [vmem:[%s8471_s10 + $0xc8] sm:$0xff] %vm1705_vm14, %v4335_v63 }
 0x512   : > { %4408 = vst.msk [vmem:[%s8471_s10 + $0xe0] sm:$0xff] %vm1705_vm14, %v4341_v8 }
 0x514   : > { %v4327_v36 = vpop.permute.xlu1 %4326 }
 0x515   : > { %v4329_v30 = vpop.permute.xlu0 %4328  ;;  %4401 = vst.msk [vmem:[%s8471_s10 + $0xa8] sm:$0xff] %vm1705_vm14, %v4327_v36 }
 0x516   : > { %4402 = vst.msk [vmem:[%s8471_s10 + $0xb0] sm:$0xff] %vm1705_vm14, %v4329_v30 }
 0x518   : > { %v4343_v62 = vpop.permute.xlu1 %4342 }
 0x519   : > { %v4345_v13 = vpop.permute.xlu0 %4344  ;;  %4409 = vst.msk [vmem:[%s8471_s10 + $0xe8] sm:$0xff] %vm1705_vm14, %v4343_v62 }
 0x51a   : > { %4410 = vst.msk [vmem:[%s8471_s10 + $0xf0] sm:$0xff] %vm1705_vm14, %v4345_v13 }
 0x528   : > { %v4331_v60 = vpop.permute.xlu1 %4330 }
 0x529   : > { %4403 = vst.msk [vmem:[%s8471_s10 + $0xb8] sm:$0xff] %vm1705_vm14, %v4331_v60 }
 0x52c   : > { %v4347_v55 = vpop.permute.xlu1 %4346 }
 0x52d   : > { %4411 = vst.msk [vmem:[%s8471_s10 + $0xf8] sm:$0xff] %vm1705_vm14, %v4347_v55 }
 0x52e   : > { %5696 = shalt.err (!%p5693_p9)
}
 0x52f   : > { %s5697_s10 = scalar_lea.hbm %s8542_s24, 4096  ;;  %s5701_s13 = scalar_lea.hbm %s8599_s7, 8192 }
 0x530   : > { %p5698_p10 = scmp.ne.s32.totalorder %s8542_s24, %s5697_s10  ;;  %p5702_p13 = scmp.lt.u32.totalorder %s8542_s24, %s8599_s7 }
 0x531   : > { %p5703_p0 = scmp.lt.u32.totalorder %s5701_s13, %s5697_s10  ;;  %p5705_p2 = scmp.lt.u32.totalorder %s5697_s10, %s8542_s24 }
 0x532   : > { %p5699_p11 = pnand %p5698_p10, %p5848_p5 }
 0x533   : > { %p5704_p1 = por %p5703_p0, %p5702_p13 }
 0x534   : > { %p5700_p12 = pneg %p5699_p11 }
 0x535   : > { %p5706_p3 = por %p5705_p2, %p5704_p1 }
 0x537   : > { %p5707_p4 = pnand %p5706_p3, %p5700_p12 }
 0x539   : > { %5710 = shalt.err (!%p5707_p4)
}
 0x53a   : > { %5004 = dma.vmem_to_hbm [thread:$0]  (%p5848_p5), %s8544_s23, 4096, %s8542_s24, %s4445_s12, %s5762_s18, %s5762_s18, %s5763_s21  }
 0x53b PF: > { %p5015_p7 = scmp.ge.s32.totalorder %s5749_s30, 2  ;;  %s4494_s26 = sand.u32 1, %s5737_s27  }
 0x53c   : > { %s4495_s20 = scalar_lea.sflag [#allocation3], %s4494_s26 }
 0x53d   : > { %p5009_p8 = pnand %p5015_p7, %p5852_p6 }
 0x53f   : > { %5728 = dma.done.wait (!%p5009_p8), %s4495_s20, 4096  }
 0x540   : > { %5730 = vsyncadd (!%p5009_p8), %s4495_s20, 4294963200  ;;  %s4504_s15 = scalar_lea.sflag [#allocation5], %s4494_s26 }
 0x541   : > { %5732 = dma.done.wait (!%p5009_p8), %s4504_s15, 4096  }
 0x542   : > { %5734 = vsyncadd (!%p5009_p8), %s4504_s15, 4294963200  ;;  %p22_p5 = scmp.ge.s32.totalorder %s5835_s11, 4   ;;  %s8841_s27 = smov %s5741_s28 }
 0x543   : > { %s8842_s28 = smov %s5745_s29  ;;  %s8843_s29 = smov %s5846_s14 }
 0x544   : > { %s8844_s30 = smov %s5835_s11  ;;  %24 = sbr.rel (!%p22_p5) target bundleno = 5 (0x5), region = 103 }
 0x54b   :  { %4509 = vsyncpa [#allocation3], 1 }
 0x54c   :  { %4511 = vsyncpa [#allocation3 + $0x1], 1 }
 0x54d   :  { %4512 = vsyncpa [#allocation5], 1 }
 0x54e   :  { %4514 = vsyncpa [#allocation5 + $0x1], 1 }

</bundles_post_ra>
